<compile_context>
chip_gen: v7x
topology: tpu7x:2x2x1
jax: 0.10.0
libtpu: 0.0.40
codegen_flags: <defaults>
</compile_context>

<pallas_src>
import functools

import numpy as np
import jax
import jax.numpy as jnp
from jax.experimental import pallas as pl
from jax.experimental.pallas import tpu as pltpu


# ----------------------------------------------------------------------------
# Fused Pallas kernel: one grid step == BT batch samples, end to end.
# ----------------------------------------------------------------------------
def _lenet5_kernel(x_ref, w1_ref, b1_ref, sv1_ref, ph1_ref,
                   w2_ref, b2_ref, sv2_ref, ph2_ref,
                   w3_ref, b3_ref, wf1_ref, bf1_ref, wf2_ref, bf2_ref,
                   o_ref, z3_ref, *, block_b):
    dot = functools.partial(jnp.dot, preferred_element_type=jnp.float32)

    def per_sample(s, carry):
        x = x_ref[s]                                     # (32, 32) padded input

        # --- conv1 (1->6, 5x5, pad=2) + bias + tanh : (28, 28*8) ------------
        acc = dot(x[0:28, :], w1_ref[0])
        for di in range(1, 5):
            acc = acc + dot(x[di:di + 28, :], w1_ref[di])
        a1 = jnp.tanh(acc + b1_ref[...])

        # --- avgpool 2x2 -> (14, 14*8) ---------------------------------------
        a1p = dot(dot(sv1_ref[...], a1), ph1_ref[...])

        # --- conv2 (6->16, 5x5, valid) + bias + tanh : (10, 10*16) ----------
        acc = dot(a1p[0:10, :], w2_ref[0])
        for di in range(1, 5):
            acc = acc + dot(a1p[di:di + 10, :], w2_ref[di])
        a2 = jnp.tanh(acc + b2_ref[...])

        # --- avgpool 2x2 -> (5, 5*16) ----------------------------------------
        a2p = dot(dot(sv2_ref[...], a2), ph2_ref[...])

        # --- conv3 (16->120, 5x5, valid) pre-activation : (1, 128) -----------
        # Stacked into z3_ref so bias + tanh + fc1/fc2 run batched (M = BT).
        acc = dot(a2p[0:1, :], w3_ref[0])
        for di in range(1, 5):
            acc = acc + dot(a2p[di:di + 1, :], w3_ref[di])
        z3_ref[pl.ds(s, 1), :] = acc
        return carry

    unroll = 2 if (block_b % 2 == 0 and block_b >= 2) else 1
    jax.lax.fori_loop(0, block_b, per_sample, 0, unroll=unroll)

    # --- batched tail: tanh(conv3) -> fc1 -> tanh -> fc2, lane-dense --------
    z = jnp.tanh(z3_ref[...] + b3_ref[...])              # (BT, 128)
    z = jnp.tanh(dot(z, wf1_ref[...]) + bf1_ref[...])    # (BT, 128)
    o_ref[...] = dot(z, wf2_ref[...]) + bf2_ref[...]     # (BT, 128), dense store


# ----------------------------------------------------------------------------
# One-time operand preparation (hoisted out of the per-call jitted path).
# ----------------------------------------------------------------------------
def _shift_mat(k, w_in, w_out):
    """e[j, wi, wo] = 1 iff wi == wo + j (numpy constant)."""
    e = np.zeros((k, w_in, w_out), np.float32)
    for j in range(k):
        e[j, j:j + w_out, :] = np.eye(w_out, dtype=np.float32)
    return e


def _pool_mats(h, w, c):
    """Selectors for 2x2 avg pooling on a (h, w*c) lane-dense activation."""
    sv = np.zeros((h // 2, h), np.float32)               # vertical pair sum
    for i in range(h // 2):
        sv[i, 2 * i] = 1.0
        sv[i, 2 * i + 1] = 1.0
    ph = np.zeros((w * c, (w // 2) * c), np.float32)     # horizontal pair avg
    for j in range(w // 2):
        for d in range(2):
            for cc in range(c):
                ph[(2 * j + d) * c + cc, j * c + cc] = 0.25
    return jnp.asarray(sv), jnp.asarray(ph)


def prepare_lenet5(params):
    """Build banded/padded weight operands once (fixed weights => reuse)."""
    num_classes = params["fc2_b"].shape[0]
    assert num_classes <= 128

    f32 = jnp.float32
    w1 = params["conv1_w"].astype(f32)   # (6, 1, 5, 5)
    b1 = params["conv1_b"].astype(f32)
    w2 = params["conv2_w"].astype(f32)   # (16, 6, 5, 5)
    b2 = params["conv2_b"].astype(f32)
    w3 = params["conv3_w"].astype(f32)   # (120, 16, 5, 5)
    b3 = params["conv3_b"].astype(f32)
    wf1 = params["fc1_w"].astype(f32)    # (120, 84)
    bf1 = params["fc1_b"].astype(f32)
    wf2 = params["fc2_w"].astype(f32)    # (84, num_classes)
    bf2 = params["fc2_b"].astype(f32)

    # conv1 banded weights: (5, 32, 28*8); cols indexed by wo*8 + co.
    e1 = _shift_mat(5, 32, 28)
    w1p = jnp.einsum("jab,odj->dabo", e1, w1[:, 0])              # (5,32,28,6)
    w1p = jnp.pad(w1p, ((0, 0), (0, 0), (0, 0), (0, 2)))
    w1p = w1p.reshape(5, 32, 28 * 8)
    b1t = jnp.tile(jnp.pad(b1, (0, 2)), 28).reshape(1, 28 * 8)

    sv1, ph1 = _pool_mats(28, 28, 8)                             # 28x28x8 -> 14x14x8

    # conv2 banded weights: (5, 14*8, 10*16); rows wi*8+ci, cols wo*16+co.
    e2 = _shift_mat(5, 14, 10)
    w2p = jnp.einsum("jab,oidj->dabio", e2, w2)                  # (5,14,10,6,16)
    w2p = jnp.pad(w2p, ((0, 0), (0, 0), (0, 0), (0, 2), (0, 0)))
    w2p = w2p.transpose(0, 1, 3, 2, 4).reshape(5, 14 * 8, 10 * 16)
    b2t = jnp.tile(b2, 10).reshape(1, 10 * 16)

    sv2, ph2 = _pool_mats(10, 10, 16)                            # 10x10x16 -> 5x5x16

    # conv3 weights: (5, 5*16, 128); rows dj*16+ci, cols co (120 -> 128 pad).
    w3p = jnp.pad(w3.transpose(2, 3, 1, 0), ((0, 0), (0, 0), (0, 0), (0, 8)))
    w3p = w3p.reshape(5, 5 * 16, 128)
    b3t = jnp.pad(b3, (0, 8)).reshape(1, 128)

    # fc weights zero-padded to lane-dense 128x128.
    wf1p = jnp.pad(wf1, ((0, 8), (0, 44)))                       # (128, 128)
    bf1t = jnp.pad(bf1, (0, 44)).reshape(1, 128)
    wf2p = jnp.pad(wf2, ((0, 44), (0, 128 - num_classes)))       # (128, 128)
    bf2t = jnp.pad(bf2, (0, 128 - num_classes)).reshape(1, 128)

    return (w1p, b1t, sv1, ph1, w2p, b2t, sv2, ph2,
            w3p, b3t, wf1p, bf1t, wf2p, bf2t)


# ----------------------------------------------------------------------------
# Forward pass
# ----------------------------------------------------------------------------
@functools.partial(jax.jit, static_argnames=("bt",))
def _lenet5_apply(operands, x, *, bt):
    """x: (B, 1, 28, 28) -> lane-dense logits (B, 128)."""
    B = x.shape[0]
    b_pad = -(-B // bt) * bt
    # Spatial zero-pad for conv1's padding=2 plus batch pad to a BT multiple.
    xp = jnp.pad(x[:, 0, :, :].astype(jnp.float32),
                 ((0, b_pad - B), (2, 2), (2, 2)))               # (B_pad, 32, 32)

    in_specs = [pl.BlockSpec((bt, 32, 32), lambda b: (b, 0, 0))]
    for op in operands:
        zeros = (0,) * op.ndim                                   # fetched once
        in_specs.append(pl.BlockSpec(op.shape, lambda b, _z=zeros: _z))

    out = pl.pallas_call(
        functools.partial(_lenet5_kernel, block_b=bt),
        out_shape=jax.ShapeDtypeStruct((b_pad, 128), jnp.float32),
        grid=(b_pad // bt,),
        in_specs=in_specs,
        out_specs=pl.BlockSpec((bt, 128), lambda b: (b, 0)),
        scratch_shapes=[pltpu.VMEM((bt, 128), jnp.float32)],
        compiler_params=pltpu.CompilerParams(
            dimension_semantics=("parallel",)),
    )(xp, *operands)
    return out[:B]


def lenet5_forward(params, x, *, prepared=None, block_b=128):
    """x: (B, 1, 28, 28) NCHW float32 -> logits (B, num_classes)."""
    num_classes = params["fc2_b"].shape[0]
    if prepared is None:
        prepared = prepare_lenet5(params)
    bt = int(min(block_b, max(int(x.shape[0]), 1)))
    out128 = _lenet5_apply(prepared, x, bt=bt)
    return out128[:, :num_classes]


# ----------------------------------------------------------------------------
# Parameters + pure-JAX reference (for self-check)
# ----------------------------------------------------------------------------
def init_params(key, num_classes=10):
    ks = jax.random.split(key, 10)
    p = {}
    p["conv1_w"] = jax.random.normal(ks[0], (6, 1, 5, 5), jnp.float32) * 0.1
    p["conv1_b"] = jax.random.normal(ks[1], (6,), jnp.float32) * 0.1
    p["conv2_w"] = jax.random.normal(ks[2], (16, 6, 5, 5), jnp.float32) * 0.1
    p["conv2_b"] = jax.random.normal(ks[3], (16,), jnp.float32) * 0.1
    p["conv3_w"] = jax.random.normal(ks[4], (120, 16, 5, 5), jnp.float32) * 0.05
    p["conv3_b"] = jax.random.normal(ks[5], (120,), jnp.float32) * 0.1
    p["fc1_w"] = jax.random.normal(ks[6], (120, 84), jnp.float32) * 0.1
    p["fc1_b"] = jax.random.normal(ks[7], (84,), jnp.float32) * 0.1
    p["fc2_w"] = jax.random.normal(ks[8], (84, num_classes), jnp.float32) * 0.1
    p["fc2_b"] = jax.random.normal(ks[9], (num_classes,), jnp.float32) * 0.1
    return p


def lenet5_reference(params, x):
    """Plain-JAX (XLA) reference matching the PyTorch module."""
    def conv(x, w, b, padding):
        y = jax.lax.conv_general_dilated(
            x, w, window_strides=(1, 1),
            padding=[(padding, padding), (padding, padding)],
            dimension_numbers=("NCHW", "OIHW", "NCHW"))
        return jnp.tanh(y + b[None, :, None, None])

    def pool(x):
        B, C, H, W = x.shape
        return x.reshape(B, C, H // 2, 2, W // 2, 2).mean(axis=(3, 5))

    x = pool(conv(x, params["conv1_w"], params["conv1_b"], 2))
    x = pool(conv(x, params["conv2_w"], params["conv2_b"], 0))
    x = conv(x, params["conv3_w"], params["conv3_b"], 0)
    x = x.reshape(x.shape[0], -1)
    x = jnp.tanh(x @ params["fc1_w"] + params["fc1_b"])
    return x @ params["fc2_w"] + params["fc2_b"]


if __name__ == "__main__":
    key = jax.random.PRNGKey(0)
    pkey, xkey, xkey2 = jax.random.split(key, 3)
    params = init_params(pkey, num_classes=10)
    prepared = prepare_lenet5(params)   # hoisted: computed once, reused below

    # Small MNIST-shaped batch (required for the 120-dim flatten): (2, 1, 28, 28)
    x = jax.random.normal(xkey, (2, 1, 28, 28), jnp.float32)
    logits = jax.block_until_ready(lenet5_forward(params, x, prepared=prepared))
    assert logits.shape == (2, 10), logits.shape
    assert jnp.all(jnp.isfinite(logits))
    ref = lenet5_reference(params, x)
    err = float(jnp.max(jnp.abs(logits - ref)))
    assert err < 5e-3, f"mismatch vs reference: max abs err {err}"

    # Larger batch exercising the batch-tiled path (BT=128, multi-step grid,
    # batch padding 131 -> 256).
    xb = jax.random.normal(xkey2, (131, 1, 28, 28), jnp.float32)
    logits_b = jax.block_until_ready(lenet5_forward(params, xb, prepared=prepared))
    assert logits_b.shape == (131, 10), logits_b.shape
    ref_b = lenet5_reference(params, xb)
    err_b = float(jnp.max(jnp.abs(logits_b - ref_b)))
    assert err_b < 5e-3, f"batched mismatch vs reference: max abs err {err_b}"

    print("KERNEL_OK")
</pallas_src>

<mosaic_0001>
module attributes {stable_mosaic.version = 11 : i64} {
  func.func @_lenet5_kernel(%arg0: i32, %arg1: memref<2x32x32xf32, #tpu.memory_space<vmem>>, %arg2: memref<5x32x224xf32, #tpu.memory_space<vmem>>, %arg3: memref<1x224xf32, #tpu.memory_space<vmem>>, %arg4: memref<14x28xf32, #tpu.memory_space<vmem>>, %arg5: memref<224x112xf32, #tpu.memory_space<vmem>>, %arg6: memref<5x112x160xf32, #tpu.memory_space<vmem>>, %arg7: memref<1x160xf32, #tpu.memory_space<vmem>>, %arg8: memref<5x10xf32, #tpu.memory_space<vmem>>, %arg9: memref<160x80xf32, #tpu.memory_space<vmem>>, %arg10: memref<5x80x128xf32, #tpu.memory_space<vmem>>, %arg11: memref<1x128xf32, #tpu.memory_space<vmem>>, %arg12: memref<128x128xf32, #tpu.memory_space<vmem>>, %arg13: memref<1x128xf32, #tpu.memory_space<vmem>>, %arg14: memref<128x128xf32, #tpu.memory_space<vmem>>, %arg15: memref<1x128xf32, #tpu.memory_space<vmem>>, %arg16: memref<2x128xf32, #tpu.memory_space<vmem>>, %arg17: memref<2x128xf32, #tpu.memory_space<vmem>>) attributes {dimension_semantics = [#tpu.dimension_semantics<parallel>], iteration_bounds = array<i64: 1>, scalar_prefetch = 0 : i64, scratch_operands = 1 : i64, tpu.core_type = #tpu.core_type<tc>, window_params = [{transform_indices = @transform_0, window_bounds = array<i64: 2, 32, 32>}, {pipeline_mode = #tpu.pipeline_mode<synchronous>, transform_indices = @transform_1, window_bounds = array<i64: 5, 32, 224>}, {pipeline_mode = #tpu.pipeline_mode<synchronous>, transform_indices = @transform_2, window_bounds = array<i64: 1, 224>}, {pipeline_mode = #tpu.pipeline_mode<synchronous>, transform_indices = @transform_3, window_bounds = array<i64: 14, 28>}, {pipeline_mode = #tpu.pipeline_mode<synchronous>, transform_indices = @transform_4, window_bounds = array<i64: 224, 112>}, {pipeline_mode = #tpu.pipeline_mode<synchronous>, transform_indices = @transform_5, window_bounds = array<i64: 5, 112, 160>}, {pipeline_mode = #tpu.pipeline_mode<synchronous>, transform_indices = @transform_6, window_bounds = array<i64: 1, 160>}, {pipeline_mode = #tpu.pipeline_mode<synchronous>, transform_indices = @transform_7, window_bounds = array<i64: 5, 10>}, {pipeline_mode = #tpu.pipeline_mode<synchronous>, transform_indices = @transform_8, window_bounds = array<i64: 160, 80>}, {pipeline_mode = #tpu.pipeline_mode<synchronous>, transform_indices = @transform_9, window_bounds = array<i64: 5, 80, 128>}, {pipeline_mode = #tpu.pipeline_mode<synchronous>, transform_indices = @transform_10, window_bounds = array<i64: 1, 128>}, {pipeline_mode = #tpu.pipeline_mode<synchronous>, transform_indices = @transform_11, window_bounds = array<i64: 128, 128>}, {pipeline_mode = #tpu.pipeline_mode<synchronous>, transform_indices = @transform_12, window_bounds = array<i64: 1, 128>}, {pipeline_mode = #tpu.pipeline_mode<synchronous>, transform_indices = @transform_13, window_bounds = array<i64: 128, 128>}, {pipeline_mode = #tpu.pipeline_mode<synchronous>, transform_indices = @transform_14, window_bounds = array<i64: 1, 128>}, {transform_indices = @transform_15, window_bounds = array<i64: 2, 128>}]} {
    %c0_i32 = arith.constant 0 : i32
    %0 = arith.index_cast %c0_i32 : i32 to index
    %c0 = arith.constant 0 : index
    %c0_0 = arith.constant 0 : index
    %1 = vector.load %arg1[%0, %c0, %c0_0] : memref<2x32x32xf32, #tpu.memory_space<vmem>>, vector<1x32x32xf32>
    %2 = vector.shape_cast %1 : vector<1x32x32xf32> to vector<32x32xf32>
    %3 = vector.extract_strided_slice %2 {offsets = [0, 0], sizes = [28, 32], strides = [1, 1]} : vector<32x32xf32> to vector<28x32xf32>
    %c0_1 = arith.constant 0 : index
    %c0_2 = arith.constant 0 : index
    %c0_3 = arith.constant 0 : index
    %4 = vector.load %arg2[%c0_1, %c0_2, %c0_3] : memref<5x32x224xf32, #tpu.memory_space<vmem>>, vector<1x32x224xf32>
    %5 = vector.shape_cast %4 : vector<1x32x224xf32> to vector<32x224xf32>
    %cst = arith.constant dense<0.000000e+00> : vector<28x224xf32>
    %6 = tpu.matmul %3, %5, %cst {dimension_numbers = #tpu.dot_dimension_numbers<[1], [0], [0], [1], [0, 0, 1, 1], [], []>} : vector<28x32xf32>, vector<32x224xf32>, vector<28x224xf32> -> vector<28x224xf32>
    %7 = vector.extract_strided_slice %2 {offsets = [1, 0], sizes = [28, 32], strides = [1, 1]} : vector<32x32xf32> to vector<28x32xf32>
    %c1 = arith.constant 1 : index
    %c0_4 = arith.constant 0 : index
    %c0_5 = arith.constant 0 : index
    %8 = vector.load %arg2[%c1, %c0_4, %c0_5] : memref<5x32x224xf32, #tpu.memory_space<vmem>>, vector<1x32x224xf32>
    %9 = vector.shape_cast %8 : vector<1x32x224xf32> to vector<32x224xf32>
    %cst_6 = arith.constant dense<0.000000e+00> : vector<28x224xf32>
    %10 = tpu.matmul %7, %9, %cst_6 {dimension_numbers = #tpu.dot_dimension_numbers<[1], [0], [0], [1], [0, 0, 1, 1], [], []>} : vector<28x32xf32>, vector<32x224xf32>, vector<28x224xf32> -> vector<28x224xf32>
    %11 = arith.addf %6, %10 : vector<28x224xf32>
    %12 = vector.extract_strided_slice %2 {offsets = [2, 0], sizes = [28, 32], strides = [1, 1]} : vector<32x32xf32> to vector<28x32xf32>
    %c2 = arith.constant 2 : index
    %c0_7 = arith.constant 0 : index
    %c0_8 = arith.constant 0 : index
    %13 = vector.load %arg2[%c2, %c0_7, %c0_8] : memref<5x32x224xf32, #tpu.memory_space<vmem>>, vector<1x32x224xf32>
    %14 = vector.shape_cast %13 : vector<1x32x224xf32> to vector<32x224xf32>
    %cst_9 = arith.constant dense<0.000000e+00> : vector<28x224xf32>
    %15 = tpu.matmul %12, %14, %cst_9 {dimension_numbers = #tpu.dot_dimension_numbers<[1], [0], [0], [1], [0, 0, 1, 1], [], []>} : vector<28x32xf32>, vector<32x224xf32>, vector<28x224xf32> -> vector<28x224xf32>
    %16 = arith.addf %11, %15 : vector<28x224xf32>
    %17 = vector.extract_strided_slice %2 {offsets = [3, 0], sizes = [28, 32], strides = [1, 1]} : vector<32x32xf32> to vector<28x32xf32>
    %c3 = arith.constant 3 : index
    %c0_10 = arith.constant 0 : index
    %c0_11 = arith.constant 0 : index
    %18 = vector.load %arg2[%c3, %c0_10, %c0_11] : memref<5x32x224xf32, #tpu.memory_space<vmem>>, vector<1x32x224xf32>
    %19 = vector.shape_cast %18 : vector<1x32x224xf32> to vector<32x224xf32>
    %cst_12 = arith.constant dense<0.000000e+00> : vector<28x224xf32>
    %20 = tpu.matmul %17, %19, %cst_12 {dimension_numbers = #tpu.dot_dimension_numbers<[1], [0], [0], [1], [0, 0, 1, 1], [], []>} : vector<28x32xf32>, vector<32x224xf32>, vector<28x224xf32> -> vector<28x224xf32>
    %21 = arith.addf %16, %20 : vector<28x224xf32>
    %22 = vector.extract_strided_slice %2 {offsets = [4, 0], sizes = [28, 32], strides = [1, 1]} : vector<32x32xf32> to vector<28x32xf32>
    %c4 = arith.constant 4 : index
    %c0_13 = arith.constant 0 : index
    %c0_14 = arith.constant 0 : index
    %23 = vector.load %arg2[%c4, %c0_13, %c0_14] : memref<5x32x224xf32, #tpu.memory_space<vmem>>, vector<1x32x224xf32>
    %24 = vector.shape_cast %23 : vector<1x32x224xf32> to vector<32x224xf32>
    %cst_15 = arith.constant dense<0.000000e+00> : vector<28x224xf32>
    %25 = tpu.matmul %22, %24, %cst_15 {dimension_numbers = #tpu.dot_dimension_numbers<[1], [0], [0], [1], [0, 0, 1, 1], [], []>} : vector<28x32xf32>, vector<32x224xf32>, vector<28x224xf32> -> vector<28x224xf32>
    %26 = arith.addf %21, %25 : vector<28x224xf32>
    %c0_16 = arith.constant 0 : index
    %c0_17 = arith.constant 0 : index
    %27 = vector.load %arg3[%c0_16, %c0_17] : memref<1x224xf32, #tpu.memory_space<vmem>>, vector<1x224xf32>
    %28 = vector.broadcast %27 : vector<1x224xf32> to vector<28x224xf32>
    %29 = arith.addf %26, %28 : vector<28x224xf32>
    %30 = math.tanh %29 : vector<28x224xf32>
    %c0_18 = arith.constant 0 : index
    %c0_19 = arith.constant 0 : index
    %31 = vector.load %arg4[%c0_18, %c0_19] : memref<14x28xf32, #tpu.memory_space<vmem>>, vector<14x28xf32>
    %cst_20 = arith.constant dense<0.000000e+00> : vector<14x224xf32>
    %32 = tpu.matmul %31, %30, %cst_20 {dimension_numbers = #tpu.dot_dimension_numbers<[1], [0], [0], [1], [0, 0, 1, 1], [], []>} : vector<14x28xf32>, vector<28x224xf32>, vector<14x224xf32> -> vector<14x224xf32>
    %c0_21 = arith.constant 0 : index
    %c0_22 = arith.constant 0 : index
    %33 = vector.load %arg5[%c0_21, %c0_22] : memref<224x112xf32, #tpu.memory_space<vmem>>, vector<224x112xf32>
    %cst_23 = arith.constant dense<0.000000e+00> : vector<14x112xf32>
    %34 = tpu.matmul %32, %33, %cst_23 {dimension_numbers = #tpu.dot_dimension_numbers<[1], [0], [0], [1], [0, 0, 1, 1], [], []>} : vector<14x224xf32>, vector<224x112xf32>, vector<14x112xf32> -> vector<14x112xf32>
    %35 = vector.extract_strided_slice %34 {offsets = [0, 0], sizes = [10, 112], strides = [1, 1]} : vector<14x112xf32> to vector<10x112xf32>
    %c0_24 = arith.constant 0 : index
    %c0_25 = arith.constant 0 : index
    %c0_26 = arith.constant 0 : index
    %36 = vector.load %arg6[%c0_24, %c0_25, %c0_26] : memref<5x112x160xf32, #tpu.memory_space<vmem>>, vector<1x112x160xf32>
    %37 = vector.shape_cast %36 : vector<1x112x160xf32> to vector<112x160xf32>
    %cst_27 = arith.constant dense<0.000000e+00> : vector<10x160xf32>
    %38 = tpu.matmul %35, %37, %cst_27 {dimension_numbers = #tpu.dot_dimension_numbers<[1], [0], [0], [1], [0, 0, 1, 1], [], []>} : vector<10x112xf32>, vector<112x160xf32>, vector<10x160xf32> -> vector<10x160xf32>
    %39 = vector.extract_strided_slice %34 {offsets = [1, 0], sizes = [10, 112], strides = [1, 1]} : vector<14x112xf32> to vector<10x112xf32>
    %c1_28 = arith.constant 1 : index
    %c0_29 = arith.constant 0 : index
    %c0_30 = arith.constant 0 : index
    %40 = vector.load %arg6[%c1_28, %c0_29, %c0_30] : memref<5x112x160xf32, #tpu.memory_space<vmem>>, vector<1x112x160xf32>
    %41 = vector.shape_cast %40 : vector<1x112x160xf32> to vector<112x160xf32>
    %cst_31 = arith.constant dense<0.000000e+00> : vector<10x160xf32>
    %42 = tpu.matmul %39, %41, %cst_31 {dimension_numbers = #tpu.dot_dimension_numbers<[1], [0], [0], [1], [0, 0, 1, 1], [], []>} : vector<10x112xf32>, vector<112x160xf32>, vector<10x160xf32> -> vector<10x160xf32>
    %43 = arith.addf %38, %42 : vector<10x160xf32>
    %44 = vector.extract_strided_slice %34 {offsets = [2, 0], sizes = [10, 112], strides = [1, 1]} : vector<14x112xf32> to vector<10x112xf32>
    %c2_32 = arith.constant 2 : index
    %c0_33 = arith.constant 0 : index
    %c0_34 = arith.constant 0 : index
    %45 = vector.load %arg6[%c2_32, %c0_33, %c0_34] : memref<5x112x160xf32, #tpu.memory_space<vmem>>, vector<1x112x160xf32>
    %46 = vector.shape_cast %45 : vector<1x112x160xf32> to vector<112x160xf32>
    %cst_35 = arith.constant dense<0.000000e+00> : vector<10x160xf32>
    %47 = tpu.matmul %44, %46, %cst_35 {dimension_numbers = #tpu.dot_dimension_numbers<[1], [0], [0], [1], [0, 0, 1, 1], [], []>} : vector<10x112xf32>, vector<112x160xf32>, vector<10x160xf32> -> vector<10x160xf32>
    %48 = arith.addf %43, %47 : vector<10x160xf32>
    %49 = vector.extract_strided_slice %34 {offsets = [3, 0], sizes = [10, 112], strides = [1, 1]} : vector<14x112xf32> to vector<10x112xf32>
    %c3_36 = arith.constant 3 : index
    %c0_37 = arith.constant 0 : index
    %c0_38 = arith.constant 0 : index
    %50 = vector.load %arg6[%c3_36, %c0_37, %c0_38] : memref<5x112x160xf32, #tpu.memory_space<vmem>>, vector<1x112x160xf32>
    %51 = vector.shape_cast %50 : vector<1x112x160xf32> to vector<112x160xf32>
    %cst_39 = arith.constant dense<0.000000e+00> : vector<10x160xf32>
    %52 = tpu.matmul %49, %51, %cst_39 {dimension_numbers = #tpu.dot_dimension_numbers<[1], [0], [0], [1], [0, 0, 1, 1], [], []>} : vector<10x112xf32>, vector<112x160xf32>, vector<10x160xf32> -> vector<10x160xf32>
    %53 = arith.addf %48, %52 : vector<10x160xf32>
    %54 = vector.extract_strided_slice %34 {offsets = [4, 0], sizes = [10, 112], strides = [1, 1]} : vector<14x112xf32> to vector<10x112xf32>
    %c4_40 = arith.constant 4 : index
    %c0_41 = arith.constant 0 : index
    %c0_42 = arith.constant 0 : index
    %55 = vector.load %arg6[%c4_40, %c0_41, %c0_42] : memref<5x112x160xf32, #tpu.memory_space<vmem>>, vector<1x112x160xf32>
    %56 = vector.shape_cast %55 : vector<1x112x160xf32> to vector<112x160xf32>
    %cst_43 = arith.constant dense<0.000000e+00> : vector<10x160xf32>
    %57 = tpu.matmul %54, %56, %cst_43 {dimension_numbers = #tpu.dot_dimension_numbers<[1], [0], [0], [1], [0, 0, 1, 1], [], []>} : vector<10x112xf32>, vector<112x160xf32>, vector<10x160xf32> -> vector<10x160xf32>
    %58 = arith.addf %53, %57 : vector<10x160xf32>
    %c0_44 = arith.constant 0 : index
    %c0_45 = arith.constant 0 : index
    %59 = vector.load %arg7[%c0_44, %c0_45] : memref<1x160xf32, #tpu.memory_space<vmem>>, vector<1x160xf32>
    %60 = vector.broadcast %59 : vector<1x160xf32> to vector<10x160xf32>
    %61 = arith.addf %58, %60 : vector<10x160xf32>
    %62 = math.tanh %61 : vector<10x160xf32>
    %c0_46 = arith.constant 0 : index
    %c0_47 = arith.constant 0 : index
    %63 = vector.load %arg8[%c0_46, %c0_47] : memref<5x10xf32, #tpu.memory_space<vmem>>, vector<5x10xf32>
    %cst_48 = arith.constant dense<0.000000e+00> : vector<5x160xf32>
    %64 = tpu.matmul %63, %62, %cst_48 {dimension_numbers = #tpu.dot_dimension_numbers<[1], [0], [0], [1], [0, 0, 1, 1], [], []>} : vector<5x10xf32>, vector<10x160xf32>, vector<5x160xf32> -> vector<5x160xf32>
    %c0_49 = arith.constant 0 : index
    %c0_50 = arith.constant 0 : index
    %65 = vector.load %arg9[%c0_49, %c0_50] : memref<160x80xf32, #tpu.memory_space<vmem>>, vector<160x80xf32>
    %cst_51 = arith.constant dense<0.000000e+00> : vector<5x80xf32>
    %66 = tpu.matmul %64, %65, %cst_51 {dimension_numbers = #tpu.dot_dimension_numbers<[1], [0], [0], [1], [0, 0, 1, 1], [], []>} : vector<5x160xf32>, vector<160x80xf32>, vector<5x80xf32> -> vector<5x80xf32>
    %67 = vector.extract_strided_slice %66 {offsets = [0, 0], sizes = [1, 80], strides = [1, 1]} : vector<5x80xf32> to vector<1x80xf32>
    %c0_52 = arith.constant 0 : index
    %c0_53 = arith.constant 0 : index
    %c0_54 = arith.constant 0 : index
    %68 = vector.load %arg10[%c0_52, %c0_53, %c0_54] : memref<5x80x128xf32, #tpu.memory_space<vmem>>, vector<1x80x128xf32>
    %69 = vector.shape_cast %68 : vector<1x80x128xf32> to vector<80x128xf32>
    %cst_55 = arith.constant dense<0.000000e+00> : vector<1x128xf32>
    %70 = tpu.matmul %67, %69, %cst_55 {dimension_numbers = #tpu.dot_dimension_numbers<[1], [0], [0], [1], [0, 0, 1, 1], [], []>} : vector<1x80xf32>, vector<80x128xf32>, vector<1x128xf32> -> vector<1x128xf32>
    %71 = vector.extract_strided_slice %66 {offsets = [1, 0], sizes = [1, 80], strides = [1, 1]} : vector<5x80xf32> to vector<1x80xf32>
    %c1_56 = arith.constant 1 : index
    %c0_57 = arith.constant 0 : index
    %c0_58 = arith.constant 0 : index
    %72 = vector.load %arg10[%c1_56, %c0_57, %c0_58] : memref<5x80x128xf32, #tpu.memory_space<vmem>>, vector<1x80x128xf32>
    %73 = vector.shape_cast %72 : vector<1x80x128xf32> to vector<80x128xf32>
    %cst_59 = arith.constant dense<0.000000e+00> : vector<1x128xf32>
    %74 = tpu.matmul %71, %73, %cst_59 {dimension_numbers = #tpu.dot_dimension_numbers<[1], [0], [0], [1], [0, 0, 1, 1], [], []>} : vector<1x80xf32>, vector<80x128xf32>, vector<1x128xf32> -> vector<1x128xf32>
    %75 = arith.addf %70, %74 : vector<1x128xf32>
    %76 = vector.extract_strided_slice %66 {offsets = [2, 0], sizes = [1, 80], strides = [1, 1]} : vector<5x80xf32> to vector<1x80xf32>
    %c2_60 = arith.constant 2 : index
    %c0_61 = arith.constant 0 : index
    %c0_62 = arith.constant 0 : index
    %77 = vector.load %arg10[%c2_60, %c0_61, %c0_62] : memref<5x80x128xf32, #tpu.memory_space<vmem>>, vector<1x80x128xf32>
    %78 = vector.shape_cast %77 : vector<1x80x128xf32> to vector<80x128xf32>
    %cst_63 = arith.constant dense<0.000000e+00> : vector<1x128xf32>
    %79 = tpu.matmul %76, %78, %cst_63 {dimension_numbers = #tpu.dot_dimension_numbers<[1], [0], [0], [1], [0, 0, 1, 1], [], []>} : vector<1x80xf32>, vector<80x128xf32>, vector<1x128xf32> -> vector<1x128xf32>
    %80 = arith.addf %75, %79 : vector<1x128xf32>
    %81 = vector.extract_strided_slice %66 {offsets = [3, 0], sizes = [1, 80], strides = [1, 1]} : vector<5x80xf32> to vector<1x80xf32>
    %c3_64 = arith.constant 3 : index
    %c0_65 = arith.constant 0 : index
    %c0_66 = arith.constant 0 : index
    %82 = vector.load %arg10[%c3_64, %c0_65, %c0_66] : memref<5x80x128xf32, #tpu.memory_space<vmem>>, vector<1x80x128xf32>
    %83 = vector.shape_cast %82 : vector<1x80x128xf32> to vector<80x128xf32>
    %cst_67 = arith.constant dense<0.000000e+00> : vector<1x128xf32>
    %84 = tpu.matmul %81, %83, %cst_67 {dimension_numbers = #tpu.dot_dimension_numbers<[1], [0], [0], [1], [0, 0, 1, 1], [], []>} : vector<1x80xf32>, vector<80x128xf32>, vector<1x128xf32> -> vector<1x128xf32>
    %85 = arith.addf %80, %84 : vector<1x128xf32>
    %86 = vector.extract_strided_slice %66 {offsets = [4, 0], sizes = [1, 80], strides = [1, 1]} : vector<5x80xf32> to vector<1x80xf32>
    %c4_68 = arith.constant 4 : index
    %c0_69 = arith.constant 0 : index
    %c0_70 = arith.constant 0 : index
    %87 = vector.load %arg10[%c4_68, %c0_69, %c0_70] : memref<5x80x128xf32, #tpu.memory_space<vmem>>, vector<1x80x128xf32>
    %88 = vector.shape_cast %87 : vector<1x80x128xf32> to vector<80x128xf32>
    %cst_71 = arith.constant dense<0.000000e+00> : vector<1x128xf32>
    %89 = tpu.matmul %86, %88, %cst_71 {dimension_numbers = #tpu.dot_dimension_numbers<[1], [0], [0], [1], [0, 0, 1, 1], [], []>} : vector<1x80xf32>, vector<80x128xf32>, vector<1x128xf32> -> vector<1x128xf32>
    %90 = arith.addf %85, %89 : vector<1x128xf32>
    %91 = arith.index_cast %c0_i32 : i32 to index
    %c0_72 = arith.constant 0 : index
    %92 = vector.load %arg17[%91, %c0_72] : memref<2x128xf32, #tpu.memory_space<vmem>>, vector<1x128xf32>
    tpu.vector_store %arg17[%91, %c0_72], %90 {strides = array<i32>} : memref<2x128xf32, #tpu.memory_space<vmem>>, vector<1x128xf32>,
    %c1_i32 = arith.constant 1 : i32
    %93 = arith.index_cast %c1_i32 : i32 to index
    %c0_73 = arith.constant 0 : index
    %c0_74 = arith.constant 0 : index
    %94 = vector.load %arg1[%93, %c0_73, %c0_74] : memref<2x32x32xf32, #tpu.memory_space<vmem>>, vector<1x32x32xf32>
    %95 = vector.shape_cast %94 : vector<1x32x32xf32> to vector<32x32xf32>
    %96 = vector.extract_strided_slice %95 {offsets = [0, 0], sizes = [28, 32], strides = [1, 1]} : vector<32x32xf32> to vector<28x32xf32>
    %c0_75 = arith.constant 0 : index
    %c0_76 = arith.constant 0 : index
    %c0_77 = arith.constant 0 : index
    %97 = vector.load %arg2[%c0_75, %c0_76, %c0_77] : memref<5x32x224xf32, #tpu.memory_space<vmem>>, vector<1x32x224xf32>
    %98 = vector.shape_cast %97 : vector<1x32x224xf32> to vector<32x224xf32>
    %cst_78 = arith.constant dense<0.000000e+00> : vector<28x224xf32>
    %99 = tpu.matmul %96, %98, %cst_78 {dimension_numbers = #tpu.dot_dimension_numbers<[1], [0], [0], [1], [0, 0, 1, 1], [], []>} : vector<28x32xf32>, vector<32x224xf32>, vector<28x224xf32> -> vector<28x224xf32>
    %100 = vector.extract_strided_slice %95 {offsets = [1, 0], sizes = [28, 32], strides = [1, 1]} : vector<32x32xf32> to vector<28x32xf32>
    %c1_79 = arith.constant 1 : index
    %c0_80 = arith.constant 0 : index
    %c0_81 = arith.constant 0 : index
    %101 = vector.load %arg2[%c1_79, %c0_80, %c0_81] : memref<5x32x224xf32, #tpu.memory_space<vmem>>, vector<1x32x224xf32>
    %102 = vector.shape_cast %101 : vector<1x32x224xf32> to vector<32x224xf32>
    %cst_82 = arith.constant dense<0.000000e+00> : vector<28x224xf32>
    %103 = tpu.matmul %100, %102, %cst_82 {dimension_numbers = #tpu.dot_dimension_numbers<[1], [0], [0], [1], [0, 0, 1, 1], [], []>} : vector<28x32xf32>, vector<32x224xf32>, vector<28x224xf32> -> vector<28x224xf32>
    %104 = arith.addf %99, %103 : vector<28x224xf32>
    %105 = vector.extract_strided_slice %95 {offsets = [2, 0], sizes = [28, 32], strides = [1, 1]} : vector<32x32xf32> to vector<28x32xf32>
    %c2_83 = arith.constant 2 : index
    %c0_84 = arith.constant 0 : index
    %c0_85 = arith.constant 0 : index
    %106 = vector.load %arg2[%c2_83, %c0_84, %c0_85] : memref<5x32x224xf32, #tpu.memory_space<vmem>>, vector<1x32x224xf32>
    %107 = vector.shape_cast %106 : vector<1x32x224xf32> to vector<32x224xf32>
    %cst_86 = arith.constant dense<0.000000e+00> : vector<28x224xf32>
    %108 = tpu.matmul %105, %107, %cst_86 {dimension_numbers = #tpu.dot_dimension_numbers<[1], [0], [0], [1], [0, 0, 1, 1], [], []>} : vector<28x32xf32>, vector<32x224xf32>, vector<28x224xf32> -> vector<28x224xf32>
    %109 = arith.addf %104, %108 : vector<28x224xf32>
    %110 = vector.extract_strided_slice %95 {offsets = [3, 0], sizes = [28, 32], strides = [1, 1]} : vector<32x32xf32> to vector<28x32xf32>
    %c3_87 = arith.constant 3 : index
    %c0_88 = arith.constant 0 : index
    %c0_89 = arith.constant 0 : index
    %111 = vector.load %arg2[%c3_87, %c0_88, %c0_89] : memref<5x32x224xf32, #tpu.memory_space<vmem>>, vector<1x32x224xf32>
    %112 = vector.shape_cast %111 : vector<1x32x224xf32> to vector<32x224xf32>
    %cst_90 = arith.constant dense<0.000000e+00> : vector<28x224xf32>
    %113 = tpu.matmul %110, %112, %cst_90 {dimension_numbers = #tpu.dot_dimension_numbers<[1], [0], [0], [1], [0, 0, 1, 1], [], []>} : vector<28x32xf32>, vector<32x224xf32>, vector<28x224xf32> -> vector<28x224xf32>
    %114 = arith.addf %109, %113 : vector<28x224xf32>
    %115 = vector.extract_strided_slice %95 {offsets = [4, 0], sizes = [28, 32], strides = [1, 1]} : vector<32x32xf32> to vector<28x32xf32>
    %c4_91 = arith.constant 4 : index
    %c0_92 = arith.constant 0 : index
    %c0_93 = arith.constant 0 : index
    %116 = vector.load %arg2[%c4_91, %c0_92, %c0_93] : memref<5x32x224xf32, #tpu.memory_space<vmem>>, vector<1x32x224xf32>
    %117 = vector.shape_cast %116 : vector<1x32x224xf32> to vector<32x224xf32>
    %cst_94 = arith.constant dense<0.000000e+00> : vector<28x224xf32>
    %118 = tpu.matmul %115, %117, %cst_94 {dimension_numbers = #tpu.dot_dimension_numbers<[1], [0], [0], [1], [0, 0, 1, 1], [], []>} : vector<28x32xf32>, vector<32x224xf32>, vector<28x224xf32> -> vector<28x224xf32>
    %119 = arith.addf %114, %118 : vector<28x224xf32>
    %c0_95 = arith.constant 0 : index
    %c0_96 = arith.constant 0 : index
    %120 = vector.load %arg3[%c0_95, %c0_96] : memref<1x224xf32, #tpu.memory_space<vmem>>, vector<1x224xf32>
    %121 = vector.broadcast %120 : vector<1x224xf32> to vector<28x224xf32>
    %122 = arith.addf %119, %121 : vector<28x224xf32>
    %123 = math.tanh %122 : vector<28x224xf32>
    %c0_97 = arith.constant 0 : index
    %c0_98 = arith.constant 0 : index
    %124 = vector.load %arg4[%c0_97, %c0_98] : memref<14x28xf32, #tpu.memory_space<vmem>>, vector<14x28xf32>
    %cst_99 = arith.constant dense<0.000000e+00> : vector<14x224xf32>
    %125 = tpu.matmul %124, %123, %cst_99 {dimension_numbers = #tpu.dot_dimension_numbers<[1], [0], [0], [1], [0, 0, 1, 1], [], []>} : vector<14x28xf32>, vector<28x224xf32>, vector<14x224xf32> -> vector<14x224xf32>
    %c0_100 = arith.constant 0 : index
    %c0_101 = arith.constant 0 : index
    %126 = vector.load %arg5[%c0_100, %c0_101] : memref<224x112xf32, #tpu.memory_space<vmem>>, vector<224x112xf32>
    %cst_102 = arith.constant dense<0.000000e+00> : vector<14x112xf32>
    %127 = tpu.matmul %125, %126, %cst_102 {dimension_numbers = #tpu.dot_dimension_numbers<[1], [0], [0], [1], [0, 0, 1, 1], [], []>} : vector<14x224xf32>, vector<224x112xf32>, vector<14x112xf32> -> vector<14x112xf32>
    %128 = vector.extract_strided_slice %127 {offsets = [0, 0], sizes = [10, 112], strides = [1, 1]} : vector<14x112xf32> to vector<10x112xf32>
    %c0_103 = arith.constant 0 : index
    %c0_104 = arith.constant 0 : index
    %c0_105 = arith.constant 0 : index
    %129 = vector.load %arg6[%c0_103, %c0_104, %c0_105] : memref<5x112x160xf32, #tpu.memory_space<vmem>>, vector<1x112x160xf32>
    %130 = vector.shape_cast %129 : vector<1x112x160xf32> to vector<112x160xf32>
    %cst_106 = arith.constant dense<0.000000e+00> : vector<10x160xf32>
    %131 = tpu.matmul %128, %130, %cst_106 {dimension_numbers = #tpu.dot_dimension_numbers<[1], [0], [0], [1], [0, 0, 1, 1], [], []>} : vector<10x112xf32>, vector<112x160xf32>, vector<10x160xf32> -> vector<10x160xf32>
    %132 = vector.extract_strided_slice %127 {offsets = [1, 0], sizes = [10, 112], strides = [1, 1]} : vector<14x112xf32> to vector<10x112xf32>
    %c1_107 = arith.constant 1 : index
    %c0_108 = arith.constant 0 : index
    %c0_109 = arith.constant 0 : index
    %133 = vector.load %arg6[%c1_107, %c0_108, %c0_109] : memref<5x112x160xf32, #tpu.memory_space<vmem>>, vector<1x112x160xf32>
    %134 = vector.shape_cast %133 : vector<1x112x160xf32> to vector<112x160xf32>
    %cst_110 = arith.constant dense<0.000000e+00> : vector<10x160xf32>
    %135 = tpu.matmul %132, %134, %cst_110 {dimension_numbers = #tpu.dot_dimension_numbers<[1], [0], [0], [1], [0, 0, 1, 1], [], []>} : vector<10x112xf32>, vector<112x160xf32>, vector<10x160xf32> -> vector<10x160xf32>
    %136 = arith.addf %131, %135 : vector<10x160xf32>
    %137 = vector.extract_strided_slice %127 {offsets = [2, 0], sizes = [10, 112], strides = [1, 1]} : vector<14x112xf32> to vector<10x112xf32>
    %c2_111 = arith.constant 2 : index
    %c0_112 = arith.constant 0 : index
    %c0_113 = arith.constant 0 : index
    %138 = vector.load %arg6[%c2_111, %c0_112, %c0_113] : memref<5x112x160xf32, #tpu.memory_space<vmem>>, vector<1x112x160xf32>
    %139 = vector.shape_cast %138 : vector<1x112x160xf32> to vector<112x160xf32>
    %cst_114 = arith.constant dense<0.000000e+00> : vector<10x160xf32>
    %140 = tpu.matmul %137, %139, %cst_114 {dimension_numbers = #tpu.dot_dimension_numbers<[1], [0], [0], [1], [0, 0, 1, 1], [], []>} : vector<10x112xf32>, vector<112x160xf32>, vector<10x160xf32> -> vector<10x160xf32>
    %141 = arith.addf %136, %140 : vector<10x160xf32>
    %142 = vector.extract_strided_slice %127 {offsets = [3, 0], sizes = [10, 112], strides = [1, 1]} : vector<14x112xf32> to vector<10x112xf32>
    %c3_115 = arith.constant 3 : index
    %c0_116 = arith.constant 0 : index
    %c0_117 = arith.constant 0 : index
    %143 = vector.load %arg6[%c3_115, %c0_116, %c0_117] : memref<5x112x160xf32, #tpu.memory_space<vmem>>, vector<1x112x160xf32>
    %144 = vector.shape_cast %143 : vector<1x112x160xf32> to vector<112x160xf32>
    %cst_118 = arith.constant dense<0.000000e+00> : vector<10x160xf32>
    %145 = tpu.matmul %142, %144, %cst_118 {dimension_numbers = #tpu.dot_dimension_numbers<[1], [0], [0], [1], [0, 0, 1, 1], [], []>} : vector<10x112xf32>, vector<112x160xf32>, vector<10x160xf32> -> vector<10x160xf32>
    %146 = arith.addf %141, %145 : vector<10x160xf32>
    %147 = vector.extract_strided_slice %127 {offsets = [4, 0], sizes = [10, 112], strides = [1, 1]} : vector<14x112xf32> to vector<10x112xf32>
    %c4_119 = arith.constant 4 : index
    %c0_120 = arith.constant 0 : index
    %c0_121 = arith.constant 0 : index
    %148 = vector.load %arg6[%c4_119, %c0_120, %c0_121] : memref<5x112x160xf32, #tpu.memory_space<vmem>>, vector<1x112x160xf32>
    %149 = vector.shape_cast %148 : vector<1x112x160xf32> to vector<112x160xf32>
    %cst_122 = arith.constant dense<0.000000e+00> : vector<10x160xf32>
    %150 = tpu.matmul %147, %149, %cst_122 {dimension_numbers = #tpu.dot_dimension_numbers<[1], [0], [0], [1], [0, 0, 1, 1], [], []>} : vector<10x112xf32>, vector<112x160xf32>, vector<10x160xf32> -> vector<10x160xf32>
    %151 = arith.addf %146, %150 : vector<10x160xf32>
    %c0_123 = arith.constant 0 : index
    %c0_124 = arith.constant 0 : index
    %152 = vector.load %arg7[%c0_123, %c0_124] : memref<1x160xf32, #tpu.memory_space<vmem>>, vector<1x160xf32>
    %153 = vector.broadcast %152 : vector<1x160xf32> to vector<10x160xf32>
    %154 = arith.addf %151, %153 : vector<10x160xf32>
    %155 = math.tanh %154 : vector<10x160xf32>
    %c0_125 = arith.constant 0 : index
    %c0_126 = arith.constant 0 : index
    %156 = vector.load %arg8[%c0_125, %c0_126] : memref<5x10xf32, #tpu.memory_space<vmem>>, vector<5x10xf32>
    %cst_127 = arith.constant dense<0.000000e+00> : vector<5x160xf32>
    %157 = tpu.matmul %156, %155, %cst_127 {dimension_numbers = #tpu.dot_dimension_numbers<[1], [0], [0], [1], [0, 0, 1, 1], [], []>} : vector<5x10xf32>, vector<10x160xf32>, vector<5x160xf32> -> vector<5x160xf32>
    %c0_128 = arith.constant 0 : index
    %c0_129 = arith.constant 0 : index
    %158 = vector.load %arg9[%c0_128, %c0_129] : memref<160x80xf32, #tpu.memory_space<vmem>>, vector<160x80xf32>
    %cst_130 = arith.constant dense<0.000000e+00> : vector<5x80xf32>
    %159 = tpu.matmul %157, %158, %cst_130 {dimension_numbers = #tpu.dot_dimension_numbers<[1], [0], [0], [1], [0, 0, 1, 1], [], []>} : vector<5x160xf32>, vector<160x80xf32>, vector<5x80xf32> -> vector<5x80xf32>
    %160 = vector.extract_strided_slice %159 {offsets = [0, 0], sizes = [1, 80], strides = [1, 1]} : vector<5x80xf32> to vector<1x80xf32>
    %c0_131 = arith.constant 0 : index
    %c0_132 = arith.constant 0 : index
    %c0_133 = arith.constant 0 : index
    %161 = vector.load %arg10[%c0_131, %c0_132, %c0_133] : memref<5x80x128xf32, #tpu.memory_space<vmem>>, vector<1x80x128xf32>
    %162 = vector.shape_cast %161 : vector<1x80x128xf32> to vector<80x128xf32>
    %cst_134 = arith.constant dense<0.000000e+00> : vector<1x128xf32>
    %163 = tpu.matmul %160, %162, %cst_134 {dimension_numbers = #tpu.dot_dimension_numbers<[1], [0], [0], [1], [0, 0, 1, 1], [], []>} : vector<1x80xf32>, vector<80x128xf32>, vector<1x128xf32> -> vector<1x128xf32>
    %164 = vector.extract_strided_slice %159 {offsets = [1, 0], sizes = [1, 80], strides = [1, 1]} : vector<5x80xf32> to vector<1x80xf32>
    %c1_135 = arith.constant 1 : index
    %c0_136 = arith.constant 0 : index
    %c0_137 = arith.constant 0 : index
    %165 = vector.load %arg10[%c1_135, %c0_136, %c0_137] : memref<5x80x128xf32, #tpu.memory_space<vmem>>, vector<1x80x128xf32>
    %166 = vector.shape_cast %165 : vector<1x80x128xf32> to vector<80x128xf32>
    %cst_138 = arith.constant dense<0.000000e+00> : vector<1x128xf32>
    %167 = tpu.matmul %164, %166, %cst_138 {dimension_numbers = #tpu.dot_dimension_numbers<[1], [0], [0], [1], [0, 0, 1, 1], [], []>} : vector<1x80xf32>, vector<80x128xf32>, vector<1x128xf32> -> vector<1x128xf32>
    %168 = arith.addf %163, %167 : vector<1x128xf32>
    %169 = vector.extract_strided_slice %159 {offsets = [2, 0], sizes = [1, 80], strides = [1, 1]} : vector<5x80xf32> to vector<1x80xf32>
    %c2_139 = arith.constant 2 : index
    %c0_140 = arith.constant 0 : index
    %c0_141 = arith.constant 0 : index
    %170 = vector.load %arg10[%c2_139, %c0_140, %c0_141] : memref<5x80x128xf32, #tpu.memory_space<vmem>>, vector<1x80x128xf32>
    %171 = vector.shape_cast %170 : vector<1x80x128xf32> to vector<80x128xf32>
    %cst_142 = arith.constant dense<0.000000e+00> : vector<1x128xf32>
    %172 = tpu.matmul %169, %171, %cst_142 {dimension_numbers = #tpu.dot_dimension_numbers<[1], [0], [0], [1], [0, 0, 1, 1], [], []>} : vector<1x80xf32>, vector<80x128xf32>, vector<1x128xf32> -> vector<1x128xf32>
    %173 = arith.addf %168, %172 : vector<1x128xf32>
    %174 = vector.extract_strided_slice %159 {offsets = [3, 0], sizes = [1, 80], strides = [1, 1]} : vector<5x80xf32> to vector<1x80xf32>
    %c3_143 = arith.constant 3 : index
    %c0_144 = arith.constant 0 : index
    %c0_145 = arith.constant 0 : index
    %175 = vector.load %arg10[%c3_143, %c0_144, %c0_145] : memref<5x80x128xf32, #tpu.memory_space<vmem>>, vector<1x80x128xf32>
    %176 = vector.shape_cast %175 : vector<1x80x128xf32> to vector<80x128xf32>
    %cst_146 = arith.constant dense<0.000000e+00> : vector<1x128xf32>
    %177 = tpu.matmul %174, %176, %cst_146 {dimension_numbers = #tpu.dot_dimension_numbers<[1], [0], [0], [1], [0, 0, 1, 1], [], []>} : vector<1x80xf32>, vector<80x128xf32>, vector<1x128xf32> -> vector<1x128xf32>
    %178 = arith.addf %173, %177 : vector<1x128xf32>
    %179 = vector.extract_strided_slice %159 {offsets = [4, 0], sizes = [1, 80], strides = [1, 1]} : vector<5x80xf32> to vector<1x80xf32>
    %c4_147 = arith.constant 4 : index
    %c0_148 = arith.constant 0 : index
    %c0_149 = arith.constant 0 : index
    %180 = vector.load %arg10[%c4_147, %c0_148, %c0_149] : memref<5x80x128xf32, #tpu.memory_space<vmem>>, vector<1x80x128xf32>
    %181 = vector.shape_cast %180 : vector<1x80x128xf32> to vector<80x128xf32>
    %cst_150 = arith.constant dense<0.000000e+00> : vector<1x128xf32>
    %182 = tpu.matmul %179, %181, %cst_150 {dimension_numbers = #tpu.dot_dimension_numbers<[1], [0], [0], [1], [0, 0, 1, 1], [], []>} : vector<1x80xf32>, vector<80x128xf32>, vector<1x128xf32> -> vector<1x128xf32>
    %183 = arith.addf %178, %182 : vector<1x128xf32>
    %184 = arith.index_cast %c1_i32 : i32 to index
    %c0_151 = arith.constant 0 : index
    %185 = vector.load %arg17[%184, %c0_151] : memref<2x128xf32, #tpu.memory_space<vmem>>, vector<1x128xf32>
    tpu.vector_store %arg17[%184, %c0_151], %183 {strides = array<i32>} : memref<2x128xf32, #tpu.memory_space<vmem>>, vector<1x128xf32>,
    %c2_i32 = arith.constant 2 : i32
    %c0_152 = arith.constant 0 : index
    %c0_153 = arith.constant 0 : index
    %186 = vector.load %arg17[%c0_152, %c0_153] : memref<2x128xf32, #tpu.memory_space<vmem>>, vector<2x128xf32>
    %c0_154 = arith.constant 0 : index
    %c0_155 = arith.constant 0 : index
    %187 = vector.load %arg11[%c0_154, %c0_155] : memref<1x128xf32, #tpu.memory_space<vmem>>, vector<1x128xf32>
    %188 = vector.broadcast %187 : vector<1x128xf32> to vector<2x128xf32>
    %189 = arith.addf %186, %188 : vector<2x128xf32>
    %190 = math.tanh %189 : vector<2x128xf32>
    %c0_156 = arith.constant 0 : index
    %c0_157 = arith.constant 0 : index
    %191 = vector.load %arg12[%c0_156, %c0_157] : memref<128x128xf32, #tpu.memory_space<vmem>>, vector<128x128xf32>
    %cst_158 = arith.constant dense<0.000000e+00> : vector<2x128xf32>
    %192 = tpu.matmul %190, %191, %cst_158 {dimension_numbers = #tpu.dot_dimension_numbers<[1], [0], [0], [1], [0, 0, 1, 1], [], []>} : vector<2x128xf32>, vector<128x128xf32>, vector<2x128xf32> -> vector<2x128xf32>
    %c0_159 = arith.constant 0 : index
    %c0_160 = arith.constant 0 : index
    %193 = vector.load %arg13[%c0_159, %c0_160] : memref<1x128xf32, #tpu.memory_space<vmem>>, vector<1x128xf32>
    %194 = vector.broadcast %193 : vector<1x128xf32> to vector<2x128xf32>
    %195 = arith.addf %192, %194 : vector<2x128xf32>
    %196 = math.tanh %195 : vector<2x128xf32>
    %c0_161 = arith.constant 0 : index
    %c0_162 = arith.constant 0 : index
    %197 = vector.load %arg14[%c0_161, %c0_162] : memref<128x128xf32, #tpu.memory_space<vmem>>, vector<128x128xf32>
    %cst_163 = arith.constant dense<0.000000e+00> : vector<2x128xf32>
    %198 = tpu.matmul %196, %197, %cst_163 {dimension_numbers = #tpu.dot_dimension_numbers<[1], [0], [0], [1], [0, 0, 1, 1], [], []>} : vector<2x128xf32>, vector<128x128xf32>, vector<2x128xf32> -> vector<2x128xf32>
    %c0_164 = arith.constant 0 : index
    %c0_165 = arith.constant 0 : index
    %199 = vector.load %arg15[%c0_164, %c0_165] : memref<1x128xf32, #tpu.memory_space<vmem>>, vector<1x128xf32>
    %200 = vector.broadcast %199 : vector<1x128xf32> to vector<2x128xf32>
    %201 = arith.addf %198, %200 : vector<2x128xf32>
    %c0_166 = arith.constant 0 : index
    %c0_167 = arith.constant 0 : index
    %202 = vector.load %arg16[%c0_166, %c0_167] : memref<2x128xf32, #tpu.memory_space<vmem>>, vector<2x128xf32>
    tpu.vector_store %arg16[%c0_166, %c0_167], %201 {strides = array<i32>} : memref<2x128xf32, #tpu.memory_space<vmem>>, vector<2x128xf32>,
    return
  }
  func.func @transform_0(%arg0: i32) -> (i32, i32, i32) {
    %c0_i32 = arith.constant 0 : i32
    %c0_i32_0 = arith.constant 0 : i32
    %c0_i32_1 = arith.constant 0 : i32
    return %arg0, %c0_i32, %c0_i32_0 : i32, i32, i32
  }
  func.func @transform_1(%arg0: i32) -> (i32, i32, i32) {
    %c0_i32 = arith.constant 0 : i32
    %c0_i32_0 = arith.constant 0 : i32
    %c0_i32_1 = arith.constant 0 : i32
    %c0_i32_2 = arith.constant 0 : i32
    return %c0_i32, %c0_i32_0, %c0_i32_1 : i32, i32, i32
  }
  func.func @transform_2(%arg0: i32) -> (i32, i32) {
    %c0_i32 = arith.constant 0 : i32
    %c0_i32_0 = arith.constant 0 : i32
    %c0_i32_1 = arith.constant 0 : i32
    return %c0_i32, %c0_i32_0 : i32, i32
  }
  func.func @transform_3(%arg0: i32) -> (i32, i32) {
    %c0_i32 = arith.constant 0 : i32
    %c0_i32_0 = arith.constant 0 : i32
    %c0_i32_1 = arith.constant 0 : i32
    return %c0_i32, %c0_i32_0 : i32, i32
  }
  func.func @transform_4(%arg0: i32) -> (i32, i32) {
    %c0_i32 = arith.constant 0 : i32
    %c0_i32_0 = arith.constant 0 : i32
    %c0_i32_1 = arith.constant 0 : i32
    return %c0_i32, %c0_i32_0 : i32, i32
  }
  func.func @transform_5(%arg0: i32) -> (i32, i32, i32) {
    %c0_i32 = arith.constant 0 : i32
    %c0_i32_0 = arith.constant 0 : i32
    %c0_i32_1 = arith.constant 0 : i32
    %c0_i32_2 = arith.constant 0 : i32
    return %c0_i32, %c0_i32_0, %c0_i32_1 : i32, i32, i32
  }
  func.func @transform_6(%arg0: i32) -> (i32, i32) {
    %c0_i32 = arith.constant 0 : i32
    %c0_i32_0 = arith.constant 0 : i32
    %c0_i32_1 = arith.constant 0 : i32
    return %c0_i32, %c0_i32_0 : i32, i32
  }
  func.func @transform_7(%arg0: i32) -> (i32, i32) {
    %c0_i32 = arith.constant 0 : i32
    %c0_i32_0 = arith.constant 0 : i32
    %c0_i32_1 = arith.constant 0 : i32
    return %c0_i32, %c0_i32_0 : i32, i32
  }
  func.func @transform_8(%arg0: i32) -> (i32, i32) {
    %c0_i32 = arith.constant 0 : i32
    %c0_i32_0 = arith.constant 0 : i32
    %c0_i32_1 = arith.constant 0 : i32
    return %c0_i32, %c0_i32_0 : i32, i32
  }
  func.func @transform_9(%arg0: i32) -> (i32, i32, i32) {
    %c0_i32 = arith.constant 0 : i32
    %c0_i32_0 = arith.constant 0 : i32
    %c0_i32_1 = arith.constant 0 : i32
    %c0_i32_2 = arith.constant 0 : i32
    return %c0_i32, %c0_i32_0, %c0_i32_1 : i32, i32, i32
  }
  func.func @transform_10(%arg0: i32) -> (i32, i32) {
    %c0_i32 = arith.constant 0 : i32
    %c0_i32_0 = arith.constant 0 : i32
    %c0_i32_1 = arith.constant 0 : i32
    return %c0_i32, %c0_i32_0 : i32, i32
  }
  func.func @transform_11(%arg0: i32) -> (i32, i32) {
    %c0_i32 = arith.constant 0 : i32
    %c0_i32_0 = arith.constant 0 : i32
    %c0_i32_1 = arith.constant 0 : i32
    return %c0_i32, %c0_i32_0 : i32, i32
  }
  func.func @transform_12(%arg0: i32) -> (i32, i32) {
    %c0_i32 = arith.constant 0 : i32
    %c0_i32_0 = arith.constant 0 : i32
    %c0_i32_1 = arith.constant 0 : i32
    return %c0_i32, %c0_i32_0 : i32, i32
  }
  func.func @transform_13(%arg0: i32) -> (i32, i32) {
    %c0_i32 = arith.constant 0 : i32
    %c0_i32_0 = arith.constant 0 : i32
    %c0_i32_1 = arith.constant 0 : i32
    return %c0_i32, %c0_i32_0 : i32, i32
  }
  func.func @transform_14(%arg0: i32) -> (i32, i32) {
    %c0_i32 = arith.constant 0 : i32
    %c0_i32_0 = arith.constant 0 : i32
    %c0_i32_1 = arith.constant 0 : i32
    return %c0_i32, %c0_i32_0 : i32, i32
  }
  func.func @transform_15(%arg0: i32) -> (i32, i32) {
    %c0_i32 = arith.constant 0 : i32
    %c0_i32_0 = arith.constant 0 : i32
    return %arg0, %c0_i32 : i32, i32
  }
}

</mosaic_0001>

<bundles_post_ra>
// kernel: _lenet5_apply.1
= control target key start
LH: loop header
LB: loop body
LE: loop exit
PB: predicated region body
PF: predicated region fallthrough
CT: control target
= control target key end

     0   :  { %v6117_v7 = vmov 0.0   ;;  %vm76_vm0 = vcmask 1046528   ;;  %vm84_vm1 = vcmask 261120   ;;  %vm532_vm2 = vcmask 1043456   ;;  %s8600_s0 = inlined_call_operand.vmem [shape: f32[2,32,32], index: 0, kind: input, shape index: {}]   ;;  %s8601_s1 = inlined_call_operand.vmem [shape: f32[5,32,224], index: 1, kind: input, shape index: {}]   ;;  %s8602_s2 = inlined_call_operand.vmem [shape: f32[1,224], index: 2, kind: input, shape index: {}]   ;;  %s8603_s3 = inlined_call_operand.vmem [shape: f32[14,28], index: 3, kind: input, shape index: {}]   ;;  %s8604_s4 = inlined_call_operand.vmem [shape: f32[224,112], index: 4, kind: input, shape index: {}]   ;;  %s8605_s5 = inlined_call_operand.vmem [shape: f32[5,112,160], index: 5, kind: input, shape index: {}]   ;;  %s8606_s6 = inlined_call_operand.vmem [shape: f32[1,160], index: 6, kind: input, shape index: {}]   ;;  %s8607_s7 = inlined_call_operand.vmem [shape: f32[5,10], index: 7, kind: input, shape index: {}]   ;;  %s8608_s8 = inlined_call_operand.vmem [shape: f32[160,80], index: 8, kind: input, shape index: {}]   ;;  %s8609_s9 = inlined_call_operand.vmem [shape: f32[5,80,128], index: 9, kind: input, shape index: {}]   ;;  %s8610_s10 = inlined_call_operand.vmem [shape: f32[1,128], index: 10, kind: input, shape index: {}]   ;;  %s8611_s11 = inlined_call_operand.vmem [shape: f32[128,128], index: 11, kind: input, shape index: {}]   ;;  %s8612_s12 = inlined_call_operand.vmem [shape: f32[1,128], index: 12, kind: input, shape index: {}]   ;;  %s8613_s13 = inlined_call_operand.vmem [shape: f32[128,128], index: 13, kind: input, shape index: {}]   ;;  %s8614_s14 = inlined_call_operand.vmem [shape: f32[1,128], index: 14, kind: input, shape index: {}]   ;;  %s8615_s15 = inlined_call_operand.hbm [shape: f32[2,128], index: 15, kind: output, shape index: {}]  }
   0x1   :  { %v4282_v0 = vld [vmem:[%s8601_s1 + $0x48] sm:$0xff]  ;;  %v4284_v1 = vld [vmem:[%s8601_s1 + $0x58] sm:$0xff]  ;;  %v4281_v2 = vld [vmem:[%s8601_s1 + $0x40] sm:$0xff]  ;;  %157 = vmatprep.mubr.f32.mxu0 %v6117_v7  ;;  %752 = vmatprep.mubr.f32.mxu1 %v6117_v7 }
   0x2   :  { %v5190_v3 = vpack.c.bf16 %v4284_v1, %v4282_v0  ;;  %v4283_v4 = vld [vmem:[%s8601_s1 + $0x50] sm:$0xff]  ;;  %v4286_v5 = vld [vmem:[%s8601_s1 + $0x68] sm:$0xff]  ;;  %v4288_v6 = vld [vmem:[%s8601_s1 + $0x78] sm:$0xff] }
   0x3   :  { %v5192_v8 = vpack.c.bf16 %v4283_v4, %v4281_v2  ;;  %v5194_v9 = vpack.c.bf16 %v4288_v6, %v4286_v5  ;;  %v4285_v10 = vld [vmem:[%s8601_s1 + $0x60] sm:$0xff]  ;;  %v4287_v11 = vld [vmem:[%s8601_s1 + $0x70] sm:$0xff]  ;;  %v6236_v13 = vld [vmem:[%s8600_s0 + $0x8] sm:$0xff] }
   0x4   :  { %v6231_v12 = vld [vmem:[%s8600_s0] sm:$0xff]  ;;  %5191 = vmatprep.subr.bf16.mxu0 %v5190_v3  ;;  %v56_v14 = vld [vmem:[%s8601_s1 + $0x8] sm:$0xff]  ;;  %v5196_v15 = vpack.c.bf16 %v4287_v11, %v4285_v10  ;;  %v78_v17 = vrot.slane %v6236_v13, 1  ;;  %v6246_v18 = vld [vmem:[%s8600_s0 + $0x10] sm:$0xff]  ;;  %v534_v35 = vrot.slane %v6236_v13, 4 }
   0x5   :  { %5193 = vmatpush1.bf16.msra.mxu0 %v5192_v8  ;;  %v77_v16 = vrot.slane %v6231_v12, 1  ;;  %v58_v19 = vld [vmem:[%s8601_s1 + $0x18] sm:$0xff]  ;;  %v55_v21 = vld [vmem:[%s8601_s1] sm:$0xff]  ;;  %v57_v22 = vld [vmem:[%s8601_s1 + $0x10] sm:$0xff]  ;;  %v80_v25 = vrot.slane %v6246_v18, 1  ;;  %v533_v34 = vrot.slane %v6231_v12, 4 }
   0x6   :  { %5195 = vmatprep.subr.bf16.mxu0 %v5194_v9  ;;  %v5198_v20 = vpack.c.bf16 %v58_v19, %v56_v14  ;;  %v60_v23 = vld [vmem:[%s8601_s1 + $0x28] sm:$0xff]  ;;  %v62_v24 = vld [vmem:[%s8601_s1 + $0x38] sm:$0xff]  ;;  %v5200_v27 = vpack.c.bf16 %v57_v22, %v55_v21  ;;  %v59_v30 = vld [vmem:[%s8601_s1 + $0x20] sm:$0xff]  ;;  %v536_v37 = vrot.slane %v6246_v18, 4 }
   0x7   :  { %v79_v26 = vsel %vm76_vm0, %v77_v16, %v78_v17  ;;  %v6268_v28 = vld [vmem:[%s8600_s0 + $0x18] sm:$0xff]  ;;  %v5202_v29 = vpack.c.bf16 %v62_v24, %v60_v23  ;;  %v61_v31 = vld [vmem:[%s8601_s1 + $0x30] sm:$0xff]  ;;  %v4298_v32 = vld [vmem:[%s8601_s1 + $0x88] sm:$0xff]  ;;  %v81_v36 = vsel %vm76_vm0, %v78_v17, %v80_v25  ;;  %v6290_v40 = vsel %vm532_vm2, %v533_v34, %v534_v35 }
   0x8   :  { %v4300_v33 = vld [vmem:[%s8601_s1 + $0x98] sm:$0xff]  ;;  %v82_v38 = vrot.slane %v6268_v28, 1  ;;  %v5204_v39 = vpack.c.bf16 %v61_v31, %v59_v30  ;;  %v538_v41 = vrot.slane %v6268_v28, 4  ;;  %v6294_v43 = vsel %vm532_vm2, %v534_v35, %v536_v37 }
   0x9   :  { %5197 = vmatpush1.bf16.msra.mxu0 %v5196_v15  ;;  %v5206_v42 = vpack.c.bf16 %v4300_v33, %v4298_v32 }
   0xa   :  { %5199 = vmatprep.subr.bf16.mxu0 %v5198_v20  ;;  %v6299_v44 = vsel %vm532_vm2, %v536_v37, %v538_v41 }
   0xc   :  { %4289 = vmatmul.mubr.msk.f32.vlgmr.msra.gmra.mrb[0].mxu0 %vm84_vm1, %v79_v26 }
   0xd   :  { %163 = vmatprep.mubr.f32.mxu0 %v6117_v7  ;;  %5201 = vmatpush1.bf16.msra.mxu0 %v5200_v27 }
   0xe   :  { %5203 = vmatprep.subr.bf16.mxu0 %v5202_v29 }
   0xf   :  { %20 = vsyncpa [#allocation4], 0  ;;  %v83_v45 = vsel %vm76_vm0, %v80_v25, %v82_v38  ;;  %v4297_v46 = vld [vmem:[%s8601_s1 + $0x80] sm:$0xff]  ;;  %v4299_v47 = vld [vmem:[%s8601_s1 + $0x90] sm:$0xff]  ;;  %v289_v58 = vrot.slane %v6231_v12, 2  ;;  %v290_v59 = vrot.slane %v6236_v13, 2  ;;  %v647_v32 = vlaneseq }
  0x10   :  { %4290 = vmatmul.mubr.msk.f32.gmra.mrb[2].mxu0 %vm84_vm1, %v81_v36  ;;  %v4302_v48 = vld [vmem:[%s8601_s1 + $0xa8] sm:$0xff]  ;;  %v4304_v49 = vld [vmem:[%s8601_s1 + $0xb8] sm:$0xff]  ;;  %v5208_v50 = vpack.c.bf16 %v4299_v47, %v4297_v46  ;;  %v4301_v52 = vld [vmem:[%s8601_s1 + $0xa0] sm:$0xff]  ;;  %vm288_vm3 = vcmask 1045504   ;;  %v292_v1 = vrot.slane %v6246_v18, 2  ;;  %v294_v10 = vrot.slane %v6268_v28, 2 }
  0x11   :  { %169 = vmatprep.mubr.f32.mxu0 %v6117_v7  ;;  %5205 = vmatpush1.bf16.msra.mxu0 %v5204_v39  ;;  %v5210_v51 = vpack.c.bf16 %v4304_v49, %v4302_v48  ;;  %v4303_v53 = vld [vmem:[%s8601_s1 + $0xb0] sm:$0xff]  ;;  %v4310_v54 = vld [vmem:[%s8601_s1 + $0xc8] sm:$0xff]  ;;  %v4312_v55 = vld [vmem:[%s8601_s1 + $0xd8] sm:$0xff]  ;;  %v291_v0 = vsel %vm288_vm3, %v289_v58, %v290_v59  ;;  %v411_v16 = vrot.slane %v6231_v12, 3  ;;  %v412_v17 = vrot.slane %v6236_v13, 3 }
  0x12   :  { %5207 = vmatprep.subr.bf16.mxu0 %v5206_v42  ;;  %v5212_v56 = vpack.c.bf16 %v4303_v53, %v4301_v52  ;;  %v5214_v57 = vpack.c.bf16 %v4312_v55, %v4310_v54  ;;  %v4309_v60 = vld [vmem:[%s8601_s1 + $0xc0] sm:$0xff]  ;;  %v4311_v61 = vld [vmem:[%s8601_s1 + $0xd0] sm:$0xff]  ;;  %v4314_v62 = vld [vmem:[%s8601_s1 + $0xe8] sm:$0xff]  ;;  %v293_v9 = vsel %vm288_vm3, %v290_v59, %v292_v1  ;;  %v295_v15 = vsel %vm288_vm3, %v292_v1, %v294_v10 }
  0x13   :  { %v4316_v63 = vld [vmem:[%s8601_s1 + $0xf8] sm:$0xff]  ;;  %v5216_v2 = vpack.c.bf16 %v4311_v61, %v4309_v60  ;;  %v4313_v4 = vld [vmem:[%s8601_s1 + $0xe0] sm:$0xff]  ;;  %v4315_v5 = vld [vmem:[%s8601_s1 + $0xf0] sm:$0xff]  ;;  %vm410_vm4 = vcmask 1044480   ;;  %v416_v29 = vrot.slane %v6268_v28, 3  ;;  %v6118_v31 = vmov 0.0|0.0  }
  0x14   :  { %4291 = vmatmul.mubr.msk.f32.gmra.mrb[4].mxu0 %vm84_vm1, %v83_v45  ;;  %v5218_v3 = vpack.c.bf16 %v4316_v63, %v4314_v62  ;;  %v4322_v6 = vld [vmem:[%s8601_s1 + $0x108] sm:$0xff]  ;;  %v4324_v8 = vld [vmem:[%s8601_s1 + $0x118] sm:$0xff]  ;;  %v5220_v11 = vpack.c.bf16 %v4315_v5, %v4313_v4  ;;  %v4321_v19 = vld [vmem:[%s8601_s1 + $0x100] sm:$0xff]  ;;  %v648_v33 = vshrl.u32 %v647_v32, 7  ;;  %vm6119_vm5 = vmmov 1  }
  0x15   :  { %175 = vmatprep.mubr.f32.mxu0 %v6117_v7  ;;  %v5222_v14 = vpack.c.bf16 %v4324_v8, %v4322_v6  ;;  %v4323_v20 = vld [vmem:[%s8601_s1 + $0x110] sm:$0xff]  ;;  %v4326_v21 = vld [vmem:[%s8601_s1 + $0x128] sm:$0xff]  ;;  %v4328_v22 = vld [vmem:[%s8601_s1 + $0x138] sm:$0xff]  ;;  %vm675_vm7 = vcmask 228352   ;;  %vm793_vm8 = vcmask 785408   ;;  %vm937_vm9 = vcmask 916480  }
  0x16   :  { %v5224_v23 = vpack.c.bf16 %v4323_v20, %v4321_v19  ;;  %v5226_v24 = vpack.c.bf16 %v4328_v22, %v4326_v21  ;;  %v4325_v25 = vld [vmem:[%s8601_s1 + $0x120] sm:$0xff]  ;;  %v4327_v26 = vld [vmem:[%s8601_s1 + $0x130] sm:$0xff]  ;;  %v6429_v34 = vsub.s32 0, %v648_v33  ;;  %v6434_v36 = vsub.s32 1, %v648_v33  ;;  %vm6440_vm6 = vmpackc.low %vm532_vm2, %vm6119_vm5 }
  0x17   :  { %v645_v35 = vld [vmem:[%s8602_s2] sm:$0x3]  ;;  %v766_v4 = vld [vmem:[%s8604_s4 + $0x8] sm:$0xff]  ;;  %v767_v8 = vld [vmem:[%s8604_s4 + $0x10] sm:$0xff]  ;;  %vm1476_vm10 = vcmask 1041408   ;;  %vm1472_vm12 = vcmask 80896  }
  0x18   :  { %4292 = vmatmul.mubr.msk.f32.gmra.mrb[6].mxu0 %vm84_vm1, %v82_v38  ;;  %v650_v37 = vrot.slane %v645_v35, %v6429_v34  ;;  %v654_v38 = vrot.slane %v645_v35, %v6434_v36  ;;  %v673_v5 = vld [vmem:[%s8603_s3] sm:$0xff]  ;;  %v772_v19 = vld [vmem:[%s8604_s4 + $0x38] sm:$0xff]  ;;  %v774_v22 = vld [vmem:[%s8604_s4 + $0x48] sm:$0xff]  ;;  %vm6120_vm13 = vmmov 0   ;;  %vm1670_vm14 = vcmask 654336  }
  0x19   :  { %254 = vmatprep.mubr.f32.mxu0 %v6117_v7  ;;  %v773_v21 = vld [vmem:[%s8604_s4 + $0x40] sm:$0xff]  ;;  %v782_v33 = vld [vmem:[%s8604_s4 + $0x88] sm:$0xff]  ;;  %vm7147_vm11 = vmpackc.low %vm1476_vm10, %vm6119_vm5 }
  0x1a   :  { %v781_v32 = vld [vmem:[%s8604_s4 + $0x80] sm:$0xff] }
  0x1b   :  { %v5265_v35 = vpack.c.bf16 %v782_v33, %v781_v32  ;;  %v4366_v32 = vld [vmem:[%s8605_s5 + $0x1b8] sm:$0xff] }
  0x1c   :  { %4293 = vmatmul.mubr.msk.f32.vlgmr.msra.gmra.mrb[0].mxu0 %vm84_vm1, %v6231_v12  ;;  %v413_v12 = vsel %vm410_vm4, %v411_v16, %v412_v17 }
  0x1d   :  { %260 = vmatprep.mubr.f32.mxu0 %v6117_v7  ;;  %5209 = vmatpush1.bf16.msra.mxu0 %v5208_v50 }
  0x1e   :  { %5211 = vmatprep.subr.bf16.mxu0 %v5210_v51 }
  0x20   :  { %4294 = vmatmul.mubr.msk.f32.gmra.mrb[2].mxu0 %vm84_vm1, %v6236_v13  ;;  %v414_v13 = vrot.slane %v6246_v18, 3 }
  0x21   :  { %266 = vmatprep.mubr.f32.mxu0 %v6117_v7  ;;  %5213 = vmatpush1.bf16.msra.mxu0 %v5212_v56 }
  0x22   :  { %5215 = vmatprep.subr.bf16.mxu0 %v5214_v57  ;;  %v415_v27 = vsel %vm410_vm4, %v412_v17, %v414_v13  ;;  %v417_v30 = vsel %vm410_vm4, %v414_v13, %v416_v29  ;;  %v771_v17 = vld [vmem:[%s8604_s4 + $0x30] sm:$0xff] }
  0x23   :  { %v5250_v20 = vpack.c.bf16 %v772_v19, %v771_v17  ;;  %v775_v13 = vld [vmem:[%s8604_s4 + $0x50] sm:$0xff]  ;;  %v4356_v19 = vld [vmem:[%s8605_s5 + $0x168] sm:$0xff] }
  0x24   :  { %4295 = vmatmul.mubr.msk.f32.gmra.mrb[4].mxu0 %vm84_vm1, %v6246_v18  ;;  %v5228_v18 = vpack.c.bf16 %v4327_v26, %v4325_v25  ;;  %v777_v25 = vld [vmem:[%s8604_s4 + $0x60] sm:$0xff]  ;;  %v778_v26 = vld [vmem:[%s8604_s4 + $0x68] sm:$0xff]  ;;  %v4353_v17 = vld [vmem:[%s8605_s5 + $0x150] sm:$0xff] }
  0x25   :  { %272 = vmatprep.mubr.f32.mxu0 %v6117_v7 }
  0x28   :  { %4296 = vmatmul.mubr.msk.f32.gmra.mrb[6].mxu0 %vm84_vm1, %v6268_v28 }
  0x29   :  { %368 = vmatprep.mubr.f32.mxu0 %v6117_v7 }
  0x2c   :  { %4305 = vmatmul.mubr.msk.f32.vlgmr.msra.gmra.mrb[0].mxu0 %vm84_vm1, %v291_v0  ;;  %v2686_v0 = vld [vmem:[%s8603_s3 + $0x8] sm:$0x3f] }
  0x2d   :  { %374 = vmatprep.mubr.f32.mxu0 %v6117_v7  ;;  %5217 = vmatpush1.bf16.msra.mxu0 %v5216_v2 }
  0x2e   :  { %5219 = vmatprep.subr.bf16.mxu0 %v5218_v3  ;;  %v765_v3 = vld [vmem:[%s8604_s4] sm:$0xff] }
  0x2f   :  { %v5241_v6 = vpack.c.bf16 %v766_v4, %v765_v3 }
  0x30   :  { %4306 = vmatmul.mubr.msk.f32.gmra.mrb[2].mxu0 %vm84_vm1, %v293_v9  ;;  %v768_v9 = vld [vmem:[%s8604_s4 + $0x18] sm:$0xff] }
  0x31   :  { %380 = vmatprep.mubr.f32.mxu0 %v6117_v7  ;;  %5221 = vmatpush1.bf16.msra.mxu0 %v5220_v11  ;;  %v5244_v11 = vpack.c.bf16 %v768_v9, %v767_v8  ;;  %v4347_v8 = vld [vmem:[%s8605_s5 + $0x120] sm:$0xff]  ;;  %v4349_v9 = vld [vmem:[%s8605_s5 + $0x130] sm:$0xff] }
  0x32   :  { %5223 = vmatprep.subr.bf16.mxu0 %v5222_v14  ;;  %v769_v14 = vld [vmem:[%s8604_s4 + $0x20] sm:$0xff] }
  0x34   :  { %4307 = vmatmul.mubr.msk.f32.gmra.mrb[4].mxu0 %vm84_vm1, %v295_v15  ;;  %v770_v15 = vld [vmem:[%s8604_s4 + $0x28] sm:$0xff] }
  0x35   :  { %386 = vmatprep.mubr.f32.mxu0 %v6117_v7  ;;  %v5247_v16 = vpack.c.bf16 %v770_v15, %v769_v14  ;;  %v5292_v14 = vpack.c.bf16 %v4349_v9, %v4347_v8  ;;  %v885_v8 = vld [vmem:[%s8605_s5 + $0x50] sm:$0xff]  ;;  %v888_v9 = vld [vmem:[%s8605_s5 + $0x68] sm:$0xff] }
  0x38   :  { %4308 = vmatmul.mubr.msk.f32.gmra.mrb[6].mxu0 %vm84_vm1, %v294_v10  ;;  %v674_v10 = vld [vmem:[%s8603_s3 + $0x8] sm:$0x3f] }
  0x39   :  { %490 = vmatprep.mubr.f32.mxu0 %v6117_v7 }
  0x3c   :  { %4317 = vmatmul.mubr.msk.f32.vlgmr.msra.gmra.mrb[0].mxu0 %vm84_vm1, %v413_v12  ;;  %v5253_v12 = vpack.c.bf16 %v774_v22, %v773_v21 }
  0x3d   :  { %496 = vmatprep.mubr.f32.mxu0 %v6117_v7  ;;  %5225 = vmatpush1.bf16.msra.mxu0 %v5224_v23  ;;  %v776_v23 = vld [vmem:[%s8604_s4 + $0x58] sm:$0xff] }
  0x3e   :  { %5227 = vmatprep.subr.bf16.mxu0 %v5226_v24  ;;  %v5256_v24 = vpack.c.bf16 %v776_v23, %v775_v13  ;;  %v4357_v13 = vld [vmem:[%s8605_s5 + $0x170] sm:$0xff]  ;;  %v4360_v23 = vld [vmem:[%s8605_s5 + $0x188] sm:$0xff] }
  0x40   :  { %4318 = vmatmul.mubr.msk.f32.gmra.mrb[2].mxu0 %vm84_vm1, %v415_v27  ;;  %v5259_v27 = vpack.c.bf16 %v778_v26, %v777_v25 }
  0x41   :  { %502 = vmatprep.mubr.f32.mxu0 %v6117_v7  ;;  %5229 = vmatpush1.bf16.msra.mxu0 %v5228_v18  ;;  %v780_v18 = vld [vmem:[%s8604_s4 + $0x78] sm:$0xff] }
  0x42   :  { %5428 = vmatprep.subr.bf16.mxu0 %v6118_v31 }
  0x44   :  { %4319 = vmatmul.mubr.msk.f32.gmra.mrb[4].mxu0 %vm84_vm1, %v417_v30 }
  0x45   :  { %508 = vmatprep.mubr.f32.mxu0 %v6117_v7 }
  0x48   :  { %4320 = vmatmul.mubr.msk.f32.gmra.mrb[6].mxu0 %vm84_vm1, %v416_v29  ;;  %v779_v29 = vld [vmem:[%s8604_s4 + $0x70] sm:$0xff] }
  0x49   :  { %612 = vmatprep.mubr.f32.mxu0 %v6117_v7  ;;  %v5262_v30 = vpack.c.bf16 %v780_v18, %v779_v29  ;;  %v4361_v29 = vld [vmem:[%s8605_s5 + $0x190] sm:$0xff] }
  0x4c   :  { %4329 = vmatmul.mubr.msk.f32.vlgmr.msra.gmra.mrb[0].mxu0 %vm84_vm1, %v6290_v40 }
  0x4d   :  { %618 = vmatprep.mubr.f32.mxu0 %v6117_v7 }
  0x50   :  { %4330 = vmatmul.mubr.msk.f32.gmra.mrb[2].mxu0 %vm84_vm1, %v6294_v43 }
  0x51   :  { %624 = vmatprep.mubr.f32.mxu0 %v6117_v7 }
  0x54   :  { %4331 = vmatmul.mubr.msk.f32.gmra.mrb[4].mxu0 %vm84_vm1, %v6299_v44 }
  0x55   :  { %630 = vmatprep.mubr.f32.mxu0 %v6117_v7 }
  0x58   :  { %4332 = vmatmul.mubr.msk.f32.gmra.mrb[6].mxu0 %vm84_vm1, %v538_v41 }
 0x11f   :  { %v614_v28 = vpop.f32.mrb[0].mxu0 }
 0x120   :  { %v657_v39 = vadd.f32 %v650_v37, %v614_v28  ;;  %v616_v40 = vpop.f32.mrb[1].mxu0 }
 0x121   :  { %v658_v41 = vadd.f32 %v654_v38, %v616_v40  ;;  %v786_v40 = vld [vmem:[%s8604_s4 + $0xa8] sm:$0xff] }
 0x122   :  { %6041 = vtanh.f32 %v657_v39  ;;  %v785_v39 = vld [vmem:[%s8604_s4 + $0xa0] sm:$0xff] }
 0x123   :  { %v620_v42 = vpop.f32.mrb[2].mxu0  ;;  %6043 = vtanh.f32 %v658_v41  ;;  %v5271_v41 = vpack.c.bf16 %v786_v40, %v785_v39  ;;  %v878_v39 = vld [vmem:[%s8605_s5 + $0x18] sm:$0xff] }
 0x124   :  { %v659_v43 = vadd.f32 %v650_v37, %v620_v42  ;;  %v622_v44 = vpop.f32.mrb[3].mxu0  ;;  %v787_v42 = vld [vmem:[%s8604_s4 + $0xb0] sm:$0xff] }
 0x125   :  { %v660_v45 = vadd.f32 %v654_v38, %v622_v44 }
 0x126   :  { %6045 = vtanh.f32 %v659_v43  ;;  %v788_v43 = vld [vmem:[%s8604_s4 + $0xb8] sm:$0xff] }
 0x127   :  { %6047 = vtanh.f32 %v660_v45  ;;  %v626_v46 = vpop.f32.mrb[4].mxu0  ;;  %v5274_v44 = vpack.c.bf16 %v788_v43, %v787_v42  ;;  %v789_v45 = vld [vmem:[%s8604_s4 + $0xc0] sm:$0xff]  ;;  %v877_v43 = vld [vmem:[%s8605_s5 + $0x10] sm:$0xff] }
 0x128   :  { %v661_v47 = vadd.f32 %v650_v37, %v626_v46  ;;  %v628_v48 = vpop.f32.mrb[5].mxu0  ;;  %v790_v46 = vld [vmem:[%s8604_s4 + $0xc8] sm:$0xff]  ;;  %v875_v42 = vld [vmem:[%s8605_s5] sm:$0xff] }
 0x129   :  { %v662_v49 = vadd.f32 %v654_v38, %v628_v48  ;;  %v791_v48 = vld [vmem:[%s8604_s4 + $0xd0] sm:$0xff] }
 0x12a   :  { %6049 = vtanh.f32 %v661_v47  ;;  %v5277_v47 = vpack.c.bf16 %v790_v46, %v789_v45  ;;  %v5312_v45 = vpack.c.bf16 %v877_v43, %v875_v42  ;;  %v880_v46 = vld [vmem:[%s8605_s5 + $0x28] sm:$0xff]  ;;  %v4373_v42 = vld [vmem:[%s8605_s5 + $0x1d0] sm:$0xff] }
 0x12b   :  { %v632_v50 = vpop.f32.mrb[6].mxu0  ;;  %6051 = vtanh.f32 %v662_v49  ;;  %v792_v49 = vld [vmem:[%s8604_s4 + $0xd8] sm:$0xff]  ;;  %v4376_v43 = vld [vmem:[%s8605_s5 + $0x1e8] sm:$0xff] }
 0x12c   :  { %v663_v51 = vadd.f32 %v650_v37, %v632_v50  ;;  %v634_v52 = vpop.f32.mrb[7].mxu0  ;;  %v6042_v54 = vpop.eup %6041  ;;  %v783_v37 = vld [vmem:[%s8604_s4 + $0x90] sm:$0xff]  ;;  %v5280_v50 = vpack.c.bf16 %v792_v49, %v791_v48 }
 0x12d   :  { %v664_v53 = vadd.f32 %v654_v38, %v634_v52  ;;  %v6044_v55 = vpop.eup %6043  ;;  %v784_v38 = vld [vmem:[%s8604_s4 + $0x98] sm:$0xff] }
 0x12e   :  { %6053 = vtanh.f32 %v663_v51  ;;  %v5268_v28 = vpack.c.bf16 %v784_v38, %v783_v37  ;;  %v4340_v51 = vld [vmem:[%s8605_s5 + $0xe8] sm:$0xff]  ;;  %v4342_v52 = vld [vmem:[%s8605_s5 + $0xf8] sm:$0xff]  ;;  %v4365_v37 = vld [vmem:[%s8605_s5 + $0x1b0] sm:$0xff] }
 0x12f   :  { %6055 = vtanh.f32 %v664_v53  ;;  %v5282_v53 = vpack.c.bf16 %v4342_v52, %v4340_v51 }
 0x130   :  { %v6046_v56 = vpop.eup %6045 }
 0x131   :  { %v6048_v57 = vpop.eup %6047  ;;  %v5232_v58 = vpack.c.bf16 %v6046_v56, %v6042_v54  ;;  %v4339_v54 = vld [vmem:[%s8605_s5 + $0xe0] sm:$0xff]  ;;  %v4344_v56 = vld [vmem:[%s8605_s5 + $0x108] sm:$0xff] }
 0x132   :  { %v5230_v59 = vpack.c.bf16 %v6048_v57, %v6044_v55  ;;  %v4341_v55 = vld [vmem:[%s8605_s5 + $0xf0] sm:$0xff]  ;;  %v4346_v57 = vld [vmem:[%s8605_s5 + $0x118] sm:$0xff] }
 0x134   :  { %5231 = vmatprep.subr.bf16.mxu1 %v5230_v59  ;;  %v6050_v60 = vpop.eup %6049  ;;  %v5284_v59 = vpack.c.bf16 %v4341_v55, %v4339_v54 }
 0x135   :  { %5233 = vmatpush1.bf16.msra.mxu1 %v5232_v58  ;;  %v6052_v61 = vpop.eup %6051 }
 0x138   :  { %v6054_v62 = vpop.eup %6053 }
 0x139   :  { %v6056_v63 = vpop.eup %6055  ;;  %v5237_v1 = vpack.c.bf16 %v6054_v62, %v6050_v60  ;;  %v4343_v62 = vld [vmem:[%s8605_s5 + $0x100] sm:$0xff] }
 0x13a   :  { %v5234_v2 = vpack.c.bf16 %v6056_v63, %v6052_v61  ;;  %v5286_v61 = vpack.c.bf16 %v4346_v57, %v4344_v56  ;;  %v4345_v63 = vld [vmem:[%s8605_s5 + $0x110] sm:$0xff] }
 0x13b   :  { %v5288_v4 = vpack.c.bf16 %v4345_v63, %v4343_v62  ;;  %v884_v62 = vld [vmem:[%s8605_s5 + $0x48] sm:$0xff]  ;;  %v886_v63 = vld [vmem:[%s8605_s5 + $0x58] sm:$0xff] }
 0x13c   :  { %5236 = vmatprep.subr.msk.bf16.mxu1 %vm6440_vm6, %v5234_v2  ;;  %v4350_v2 = vld [vmem:[%s8605_s5 + $0x138] sm:$0xff] }
 0x13d   :  { %5239 = vmatpush1.bf16.msk.msra.mxu1 %vm6440_vm6, %v5237_v1  ;;  %v4348_v1 = vld [vmem:[%s8605_s5 + $0x128] sm:$0xff] }
 0x13e   :  { %5240 = vmatprep.subr.bf16.mxu1 %v6118_v31 }
 0x140   :  { %4335 = vmatmul.mubr.msk.f32.vlgmr.msra.gmra.mrb[0].mxu1 %vm675_vm7, %v673_v5 }
 0x141   :  { %758 = vmatprep.mubr.f32.mxu1 %v6117_v7  ;;  %5242 = vmatpush1.bf16.msra.mxu1 %v5241_v6  ;;  %v5290_v6 = vpack.c.bf16 %v4350_v2, %v4348_v1 }
 0x142   :  { %5243 = vmatprep.subr.bf16.mxu1 %v6118_v31 }
 0x144   :  { %4336 = vmatmul.mubr.msk.f32.gmra.mrb[2].mxu1 %vm675_vm7, %v674_v10  ;;  %v4352_v10 = vld [vmem:[%s8605_s5 + $0x148] sm:$0xff] }
 0x145   :  { %5245 = vmatpush1.bf16.msra.mxu1 %v5244_v11  ;;  %v4354_v11 = vld [vmem:[%s8605_s5 + $0x158] sm:$0xff] }
 0x146   :  { %5246 = vmatprep.subr.bf16.mxu1 %v6118_v31  ;;  %v5294_v15 = vpack.c.bf16 %v4354_v11, %v4352_v10  ;;  %v890_v10 = vld [vmem:[%s8605_s5 + $0x78] sm:$0xff] }
 0x149   :  { %5248 = vmatpush1.bf16.msra.mxu1 %v5247_v16  ;;  %v4351_v16 = vld [vmem:[%s8605_s5 + $0x140] sm:$0xff] }
 0x14a   :  { %5249 = vmatprep.subr.bf16.mxu1 %v6118_v31  ;;  %v5296_v21 = vpack.c.bf16 %v4353_v17, %v4351_v16  ;;  %v889_v16 = vld [vmem:[%s8605_s5 + $0x70] sm:$0xff]  ;;  %v892_v17 = vld [vmem:[%s8605_s5 + $0x88] sm:$0xff] }
 0x14d   :  { %5251 = vmatpush1.bf16.msra.mxu1 %v5250_v20  ;;  %v4358_v20 = vld [vmem:[%s8605_s5 + $0x178] sm:$0xff] }
 0x14e   :  { %5252 = vmatprep.subr.bf16.mxu1 %v6118_v31  ;;  %v5298_v22 = vpack.c.bf16 %v4358_v20, %v4356_v19  ;;  %v894_v19 = vld [vmem:[%s8605_s5 + $0x98] sm:$0xff] }
 0x151   :  { %5254 = vmatpush1.bf16.msra.mxu1 %v5253_v12  ;;  %v4355_v12 = vld [vmem:[%s8605_s5 + $0x160] sm:$0xff] }
 0x152   :  { %5255 = vmatprep.subr.bf16.mxu1 %v6118_v31  ;;  %v5300_v25 = vpack.c.bf16 %v4357_v13, %v4355_v12  ;;  %v893_v12 = vld [vmem:[%s8605_s5 + $0x90] sm:$0xff]  ;;  %v896_v13 = vld [vmem:[%s8605_s5 + $0xa8] sm:$0xff] }
 0x155   :  { %5257 = vmatpush1.bf16.msra.mxu1 %v5256_v24  ;;  %v4362_v24 = vld [vmem:[%s8605_s5 + $0x198] sm:$0xff] }
 0x156   :  { %5258 = vmatprep.subr.bf16.mxu1 %v6118_v31  ;;  %v5302_v26 = vpack.c.bf16 %v4362_v24, %v4360_v23  ;;  %v898_v23 = vld [vmem:[%s8605_s5 + $0xb8] sm:$0xff] }
 0x159   :  { %5260 = vmatpush1.bf16.msra.mxu1 %v5259_v27  ;;  %v4359_v27 = vld [vmem:[%s8605_s5 + $0x180] sm:$0xff] }
 0x15a   :  { %5261 = vmatprep.subr.bf16.mxu1 %v6118_v31  ;;  %v5304_v18 = vpack.c.bf16 %v4361_v29, %v4359_v27  ;;  %v897_v27 = vld [vmem:[%s8605_s5 + $0xb0] sm:$0xff]  ;;  %v900_v29 = vld [vmem:[%s8605_s5 + $0xc8] sm:$0xff] }
 0x15d   :  { %5263 = vmatpush1.bf16.msra.mxu1 %v5262_v30  ;;  %v4364_v30 = vld [vmem:[%s8605_s5 + $0x1a8] sm:$0xff] }
 0x15e   :  { %5264 = vmatprep.subr.bf16.mxu1 %v6118_v31  ;;  %v5306_v33 = vpack.c.bf16 %v4366_v32, %v4364_v30 }
 0x161   :  { %5266 = vmatpush1.bf16.msra.mxu1 %v5265_v35  ;;  %v4363_v35 = vld [vmem:[%s8605_s5 + $0x1a0] sm:$0xff] }
 0x162   :  { %5267 = vmatprep.subr.bf16.mxu1 %v6118_v31  ;;  %v5308_v38 = vpack.c.bf16 %v4365_v37, %v4363_v35  ;;  %v901_v35 = vld [vmem:[%s8605_s5 + $0xd0] sm:$0xff]  ;;  %v4372_v37 = vld [vmem:[%s8605_s5 + $0x1c8] sm:$0xff] }
 0x165   :  { %5269 = vmatpush1.bf16.msra.mxu1 %v5268_v28  ;;  %v876_v28 = vld [vmem:[%s8605_s5 + $0x8] sm:$0xff] }
 0x166   :  { %5270 = vmatprep.subr.bf16.mxu1 %v6118_v31  ;;  %v5310_v40 = vpack.c.bf16 %v878_v39, %v876_v28 }
 0x169   :  { %5272 = vmatpush1.bf16.msra.mxu1 %v5271_v41 }
 0x16a   :  { %5273 = vmatprep.subr.bf16.mxu1 %v6118_v31 }
 0x16d   :  { %5275 = vmatpush1.bf16.msra.mxu1 %v5274_v44 }
 0x16e   :  { %5276 = vmatprep.subr.bf16.mxu1 %v6118_v31 }
 0x171   :  { %5278 = vmatpush1.bf16.msra.mxu1 %v5277_v47  ;;  %v882_v47 = vld [vmem:[%s8605_s5 + $0x38] sm:$0xff] }
 0x172   :  { %5279 = vmatprep.subr.bf16.mxu1 %v6118_v31 }
 0x175   :  { %5281 = vmatpush1.bf16.msra.mxu1 %v5280_v50 }
 0x176   :  { %5283 = vmatprep.subr.bf16.mxu1 %v5282_v53 }
 0x213   :  { %v754_v58 = vpop.f32.mrb[0].mxu1 }
 0x214   :  { %v756_v60 = vpop.f32.mrb[1].mxu1 }
 0x215   :  { %4337 = vmatprep.mubr.msk.f32.mxu1 %vm793_vm8, %v756_v60  ;;  %v881_v60 = vld [vmem:[%s8605_s5 + $0x30] sm:$0xff] }
 0x216   :  { %865 = vmatmul.mubr.f32.vlgmr.msra.gmra.mrb[4].mxu1 %v754_v58  ;;  %v5314_v58 = vpack.c.bf16 %v882_v47, %v880_v46  ;;  %v4375_v47 = vld [vmem:[%s8605_s5 + $0x1e0] sm:$0xff] }
 0x217   :  { %v760_v3 = vpop.f32.mrb[2].mxu1  ;;  %5285 = vmatpush1.bf16.msra.mxu1 %v5284_v59  ;;  %v879_v59 = vld [vmem:[%s8605_s5 + $0x20] sm:$0xff] }
 0x218   :  { %v762_v5 = vpop.f32.mrb[3].mxu1  ;;  %5287 = vmatprep.subr.bf16.mxu1 %v5286_v61 }
 0x219   :  { %4338 = vmatprep.mubr.msk.f32.mxu1 %vm793_vm8, %v762_v5  ;;  %v5318_v5 = vpack.c.bf16 %v886_v63, %v884_v62  ;;  %v4383_v62 = vld [vmem:[%s8605_s5 + $0x220] sm:$0xff]  ;;  %v4385_v63 = vld [vmem:[%s8605_s5 + $0x230] sm:$0xff] }
 0x21a   :  { %870 = vmatmul.mubr.f32.gmra.mrb[6].mxu1 %v760_v3 }
 0x21b   :  { %5289 = vmatpush1.bf16.msra.mxu1 %v5288_v4  ;;  %1006 = vmatprep.mubr.f32.mxu1 %v6117_v7  ;;  %v5316_v4 = vpack.c.bf16 %v881_v60, %v879_v59  ;;  %v4384_v59 = vld [vmem:[%s8605_s5 + $0x228] sm:$0xff] }
 0x21c   :  { %5291 = vmatprep.subr.bf16.mxu1 %v5290_v6  ;;  %v883_v6 = vld [vmem:[%s8605_s5 + $0x40] sm:$0xff] }
 0x21d   :  { %v5320_v11 = vpack.c.bf16 %v885_v8, %v883_v6  ;;  %v5352_v6 = vpack.c.bf16 %v4385_v63, %v4383_v62  ;;  %v4421_v62 = vld [vmem:[%s8605_s5 + $0x340] sm:$0xff]  ;;  %v4423_v63 = vld [vmem:[%s8605_s5 + $0x350] sm:$0xff] }
 0x21f   :  { %5293 = vmatpush1.bf16.msra.mxu1 %v5292_v14  ;;  %v5322_v14 = vpack.c.bf16 %v890_v10, %v888_v9  ;;  %v4387_v9 = vld [vmem:[%s8605_s5 + $0x240] sm:$0xff]  ;;  %v4389_v10 = vld [vmem:[%s8605_s5 + $0x250] sm:$0xff] }
 0x220   :  { %5295 = vmatprep.subr.bf16.mxu1 %v5294_v15  ;;  %v887_v15 = vld [vmem:[%s8605_s5 + $0x60] sm:$0xff] }
 0x221   :  { %v5324_v20 = vpack.c.bf16 %v889_v16, %v887_v15  ;;  %v5356_v15 = vpack.c.bf16 %v4389_v10, %v4387_v9  ;;  %v4425_v9 = vld [vmem:[%s8605_s5 + $0x360] sm:$0xff]  ;;  %v4427_v10 = vld [vmem:[%s8605_s5 + $0x370] sm:$0xff] }
 0x223   :  { %5297 = vmatpush1.bf16.msra.mxu1 %v5296_v21  ;;  %v5326_v21 = vpack.c.bf16 %v894_v19, %v892_v17  ;;  %v4391_v17 = vld [vmem:[%s8605_s5 + $0x260] sm:$0xff]  ;;  %v4393_v19 = vld [vmem:[%s8605_s5 + $0x270] sm:$0xff] }
 0x224   :  { %5299 = vmatprep.subr.bf16.mxu1 %v5298_v22  ;;  %v891_v22 = vld [vmem:[%s8605_s5 + $0x80] sm:$0xff] }
 0x225   :  { %v5328_v24 = vpack.c.bf16 %v893_v12, %v891_v22  ;;  %v5360_v22 = vpack.c.bf16 %v4393_v19, %v4391_v17  ;;  %v4431_v17 = vld [vmem:[%s8605_s5 + $0x380] sm:$0xff]  ;;  %v4433_v19 = vld [vmem:[%s8605_s5 + $0x390] sm:$0xff] }
 0x227   :  { %5301 = vmatpush1.bf16.msra.mxu1 %v5300_v25  ;;  %v5330_v25 = vpack.c.bf16 %v898_v23, %v896_v13  ;;  %v4395_v13 = vld [vmem:[%s8605_s5 + $0x280] sm:$0xff]  ;;  %v4397_v23 = vld [vmem:[%s8605_s5 + $0x290] sm:$0xff] }
 0x228   :  { %5303 = vmatprep.subr.bf16.mxu1 %v5302_v26  ;;  %v895_v26 = vld [vmem:[%s8605_s5 + $0xa0] sm:$0xff] }
 0x229   :  { %v5332_v30 = vpack.c.bf16 %v897_v27, %v895_v26  ;;  %v5364_v26 = vpack.c.bf16 %v4397_v23, %v4395_v13  ;;  %v4435_v13 = vld [vmem:[%s8605_s5 + $0x3a0] sm:$0xff]  ;;  %v4437_v23 = vld [vmem:[%s8605_s5 + $0x3b0] sm:$0xff] }
 0x22b   :  { %5305 = vmatpush1.bf16.msra.mxu1 %v5304_v18  ;;  %v902_v18 = vld [vmem:[%s8605_s5 + $0xd8] sm:$0xff] }
 0x22c   :  { %5307 = vmatprep.subr.bf16.mxu1 %v5306_v33  ;;  %v5334_v32 = vpack.c.bf16 %v902_v18, %v900_v29  ;;  %v899_v33 = vld [vmem:[%s8605_s5 + $0xc0] sm:$0xff]  ;;  %v4403_v18 = vld [vmem:[%s8605_s5 + $0x2b0] sm:$0xff] }
 0x22d   :  { %v5336_v28 = vpack.c.bf16 %v901_v35, %v899_v33  ;;  %v4401_v29 = vld [vmem:[%s8605_s5 + $0x2a0] sm:$0xff] }
 0x22e   :  { %v5368_v33 = vpack.c.bf16 %v4403_v18, %v4401_v29  ;;  %v4439_v29 = vld [vmem:[%s8605_s5 + $0x3c0] sm:$0xff]  ;;  %v4441_v18 = vld [vmem:[%s8605_s5 + $0x3d0] sm:$0xff] }
 0x22f   :  { %5309 = vmatpush1.bf16.msra.mxu1 %v5308_v38  ;;  %v4374_v38 = vld [vmem:[%s8605_s5 + $0x1d8] sm:$0xff] }
 0x230   :  { %5311 = vmatprep.subr.bf16.mxu1 %v5310_v40  ;;  %v5338_v39 = vpack.c.bf16 %v4374_v38, %v4372_v37  ;;  %v4371_v40 = vld [vmem:[%s8605_s5 + $0x1c0] sm:$0xff]  ;;  %v4407_v38 = vld [vmem:[%s8605_s5 + $0x2d0] sm:$0xff] }
 0x231   :  { %v4405_v37 = vld [vmem:[%s8605_s5 + $0x2c0] sm:$0xff] }
 0x2e9   :  { %v6648_v41 = vpop.f32.mrb[4].mxu1 }
 0x2ea   :  { %v868_v44 = vpop.f32.mrb[5].mxu1  ;;  %v934_v48 = vrot.slane %v6648_v41, 1  ;;  %v1129_v49 = vrot.slane %v6648_v41, 2  ;;  %v1246_v50 = vrot.slane %v6648_v41, 3  ;;  %v1363_v51 = vrot.slane %v6648_v41, 4 }
 0x2eb   :  { %v4378_v44 = vld [vmem:[%s8605_s5 + $0x1f8] sm:$0xff] }
 0x2ec   :  { %v5342_v46 = vpack.c.bf16 %v4378_v44, %v4376_v43  ;;  %v4409_v43 = vld [vmem:[%s8605_s5 + $0x2e0] sm:$0xff]  ;;  %v4411_v44 = vld [vmem:[%s8605_s5 + $0x2f0] sm:$0xff] }
 0x2ed   :  { %v6666_v52 = vpop.f32.mrb[6].mxu1 }
 0x2ee   :  { %v935_v53 = vrot.slane %v6666_v52, 1  ;;  %v1130_v54 = vrot.slane %v6666_v52, 2  ;;  %v1247_v55 = vrot.slane %v6666_v52, 3  ;;  %v1364_v56 = vrot.slane %v6666_v52, 4  ;;  %v873_v57 = vpop.f32.mrb[7].mxu1 }
 0x2ef   :  { %v4379_v57 = vld [vmem:[%s8605_s5 + $0x200] sm:$0xff] }
 0x2f0   :  { %v936_v61 = vsel %vm76_vm0, %v934_v48, %v935_v53  ;;  %v6688_v1 = vsel %vm288_vm3, %v1129_v49, %v1130_v54  ;;  %v6693_v2 = vsel %vm410_vm4, %v1246_v50, %v1247_v55  ;;  %v6698_v3 = vsel %vm532_vm2, %v1363_v51, %v1364_v56  ;;  %v4377_v48 = vld [vmem:[%s8605_s5 + $0x1f0] sm:$0xff]  ;;  %v4380_v49 = vld [vmem:[%s8605_s5 + $0x208] sm:$0xff]  ;;  %v4382_v50 = vld [vmem:[%s8605_s5 + $0x218] sm:$0xff] }
 0x2f1   :  { %4367 = vmatmul.mubr.msk.f32.vlgmr.msra.gmra.mrb[8].mxu1 %vm937_vm9, %v936_v61  ;;  %v5344_v51 = vpack.c.bf16 %v4377_v48, %v4375_v47  ;;  %v4413_v48 = vld [vmem:[%s8605_s5 + $0x300] sm:$0xff] }
 0x2f2   :  { %5313 = vmatpush1.bf16.msra.mxu1 %v5312_v45  ;;  %1012 = vmatprep.mubr.f32.mxu1 %v6117_v7  ;;  %v5340_v45 = vpack.c.bf16 %v4373_v42, %v4371_v40  ;;  %v5372_v40 = vpack.c.bf16 %v4407_v38, %v4405_v37  ;;  %v4445_v37 = vld [vmem:[%s8605_s5 + $0x3f0] sm:$0xff]  ;;  %v4448_v38 = vld [vmem:[%s8605_s5 + $0x408] sm:$0xff] }
 0x2f3   :  { %5315 = vmatprep.subr.bf16.mxu1 %v5314_v58  ;;  %v4381_v58 = vld [vmem:[%s8605_s5 + $0x210] sm:$0xff] }
 0x2f4   :  { %v5348_v60 = vpack.c.bf16 %v4381_v58, %v4379_v57  ;;  %v4417_v57 = vld [vmem:[%s8605_s5 + $0x320] sm:$0xff]  ;;  %v4419_v58 = vld [vmem:[%s8605_s5 + $0x330] sm:$0xff] }
 0x2f5   :  { %4368 = vmatmul.mubr.msk.f32.gmra.mrb[10].mxu1 %vm937_vm9, %v935_v53  ;;  %v5346_v53 = vpack.c.bf16 %v4382_v50, %v4380_v49  ;;  %v4415_v49 = vld [vmem:[%s8605_s5 + $0x310] sm:$0xff]  ;;  %v4418_v50 = vld [vmem:[%s8605_s5 + $0x328] sm:$0xff] }
 0x2f6   :  { %5317 = vmatpush1.bf16.msra.mxu1 %v5316_v4  ;;  %1087 = vmatprep.mubr.f32.mxu1 %v6117_v7  ;;  %v4388_v4 = vld [vmem:[%s8605_s5 + $0x248] sm:$0xff] }
 0x2f7   :  { %5319 = vmatprep.subr.bf16.mxu1 %v5318_v5  ;;  %v4390_v5 = vld [vmem:[%s8605_s5 + $0x258] sm:$0xff] }
 0x2f8   :  { %v5354_v8 = vpack.c.bf16 %v4390_v5, %v4388_v4  ;;  %v4426_v4 = vld [vmem:[%s8605_s5 + $0x368] sm:$0xff]  ;;  %v4428_v5 = vld [vmem:[%s8605_s5 + $0x378] sm:$0xff] }
 0x2fa   :  { %5321 = vmatpush1.bf16.msra.mxu1 %v5320_v11  ;;  %v4392_v11 = vld [vmem:[%s8605_s5 + $0x268] sm:$0xff] }
 0x2fb   :  { %5323 = vmatprep.subr.bf16.mxu1 %v5322_v14  ;;  %v4394_v14 = vld [vmem:[%s8605_s5 + $0x278] sm:$0xff] }
 0x2fc   :  { %v5358_v16 = vpack.c.bf16 %v4394_v14, %v4392_v11  ;;  %v4432_v11 = vld [vmem:[%s8605_s5 + $0x388] sm:$0xff]  ;;  %v4434_v14 = vld [vmem:[%s8605_s5 + $0x398] sm:$0xff] }
 0x2fe   :  { %5325 = vmatpush1.bf16.msra.mxu1 %v5324_v20  ;;  %v4396_v20 = vld [vmem:[%s8605_s5 + $0x288] sm:$0xff] }
 0x2ff   :  { %5327 = vmatprep.subr.bf16.mxu1 %v5326_v21  ;;  %v4398_v21 = vld [vmem:[%s8605_s5 + $0x298] sm:$0xff] }
 0x300   :  { %v5362_v12 = vpack.c.bf16 %v4398_v21, %v4396_v20  ;;  %v4436_v20 = vld [vmem:[%s8605_s5 + $0x3a8] sm:$0xff]  ;;  %v4438_v21 = vld [vmem:[%s8605_s5 + $0x3b8] sm:$0xff] }
 0x302   :  { %5329 = vmatpush1.bf16.msra.mxu1 %v5328_v24  ;;  %v4402_v24 = vld [vmem:[%s8605_s5 + $0x2a8] sm:$0xff] }
 0x303   :  { %5331 = vmatprep.subr.bf16.mxu1 %v5330_v25  ;;  %v4404_v25 = vld [vmem:[%s8605_s5 + $0x2b8] sm:$0xff] }
 0x304   :  { %v5366_v27 = vpack.c.bf16 %v4404_v25, %v4402_v24  ;;  %v4440_v24 = vld [vmem:[%s8605_s5 + $0x3c8] sm:$0xff]  ;;  %v4442_v25 = vld [vmem:[%s8605_s5 + $0x3d8] sm:$0xff] }
 0x306   :  { %5333 = vmatpush1.bf16.msra.mxu1 %v5332_v30  ;;  %v4406_v30 = vld [vmem:[%s8605_s5 + $0x2c8] sm:$0xff] }
 0x307   :  { %5335 = vmatprep.subr.bf16.mxu1 %v5334_v32  ;;  %v4408_v32 = vld [vmem:[%s8605_s5 + $0x2d8] sm:$0xff] }
 0x308   :  { %v5370_v35 = vpack.c.bf16 %v4408_v32, %v4406_v30  ;;  %v4444_v30 = vld [vmem:[%s8605_s5 + $0x3e8] sm:$0xff]  ;;  %v5404_v32 = vpack.c.bf16 %v4441_v18, %v4439_v29  ;;  %v7119_v29 = vld [vmem:[%s8600_s0 + $0x38] sm:$0xff]  ;;  %v1570_v18 = vld [vmem:[%s8608_s8 + $0x80] sm:$0xff] }
 0x30a   :  { %5337 = vmatpush1.bf16.msra.mxu1 %v5336_v28  ;;  %v4410_v28 = vld [vmem:[%s8605_s5 + $0x2e8] sm:$0xff] }
 0x30b   :  { %5339 = vmatprep.subr.bf16.mxu1 %v5338_v39  ;;  %v4412_v39 = vld [vmem:[%s8605_s5 + $0x2f8] sm:$0xff] }
 0x30c   :  { %v5374_v42 = vpack.c.bf16 %v4412_v39, %v4410_v28 }
 0x30d   :  { %4369 = vmatmul.mubr.msk.f32.vlgmr.msra.gmra.mrb[8].mxu1 %vm937_vm9, %v6648_v41  ;;  %v4386_v41 = vld [vmem:[%s8605_s5 + $0x238] sm:$0xff] }
 0x30e   :  { %5341 = vmatpush1.bf16.msra.mxu1 %v5340_v45  ;;  %1093 = vmatprep.mubr.f32.mxu1 %v6117_v7  ;;  %v5350_v61 = vpack.c.bf16 %v4386_v41, %v4384_v59  ;;  %v4414_v45 = vld [vmem:[%s8605_s5 + $0x308] sm:$0xff]  ;;  %v4424_v41 = vld [vmem:[%s8605_s5 + $0x358] sm:$0xff] }
 0x30f   :  { %5343 = vmatprep.subr.bf16.mxu1 %v5342_v46  ;;  %v5376_v46 = vpack.c.bf16 %v4411_v44, %v4409_v43  ;;  %v4422_v59 = vld [vmem:[%s8605_s5 + $0x348] sm:$0xff]  ;;  %v4454_v44 = vld [vmem:[%s8605_s5 + $0x438] sm:$0xff] }
 0x310   :  { %v4452_v43 = vld [vmem:[%s8605_s5 + $0x428] sm:$0xff] }
 0x311   :  { %4370 = vmatmul.mubr.msk.f32.gmra.mrb[10].mxu1 %vm937_vm9, %v6666_v52  ;;  %v1556_v52 = vld [vmem:[%s8608_s8 + $0x10] sm:$0xff] }
 0x312   :  { %5345 = vmatpush1.bf16.msra.mxu1 %v5344_v51  ;;  %1200 = vmatprep.mubr.f32.mxu1 %v6117_v7  ;;  %v5380_v51 = vpack.c.bf16 %v4415_v49, %v4413_v48  ;;  %v4456_v48 = vld [vmem:[%s8605_s5 + $0x448] sm:$0xff]  ;;  %v4458_v49 = vld [vmem:[%s8605_s5 + $0x458] sm:$0xff] }
 0x313   :  { %5347 = vmatprep.subr.bf16.mxu1 %v5346_v53 }
 0x316   :  { %5349 = vmatpush1.bf16.msra.mxu1 %v5348_v60  ;;  %v5384_v60 = vpack.c.bf16 %v4419_v58, %v4417_v57  ;;  %v1554_v58 = vld [vmem:[%s8608_s8] sm:$0xff] }
 0x317   :  { %5351 = vmatprep.subr.bf16.mxu1 %v5350_v61  ;;  %v5386_v61 = vpack.c.bf16 %v4424_v41, %v4422_v59  ;;  %v1555_v59 = vld [vmem:[%s8608_s8 + $0x8] sm:$0xff] }
 0x318   :  { %v5429_v41 = vpack.c.bf16 %v1555_v59, %v1554_v58  ;;  %v4514_v58 = vld [vmem:[%s8601_s1 + $0x40] sm:$0xff]  ;;  %v4516_v59 = vld [vmem:[%s8601_s1 + $0x50] sm:$0xff] }
 0x31a   :  { %5353 = vmatpush1.bf16.msra.mxu1 %v5352_v6  ;;  %v5388_v6 = vpack.c.bf16 %v4423_v63, %v4421_v62  ;;  %5430 = vmatpush1.bf16.msra.mxu0 %v5429_v41  ;;  %v1560_v63 = vld [vmem:[%s8608_s8 + $0x30] sm:$0xff]  ;;  %v4519_v41 = vld [vmem:[%s8601_s1 + $0x68] sm:$0xff] }
 0x31b   :  { %5355 = vmatprep.subr.bf16.mxu1 %v5354_v8  ;;  %v5390_v8 = vpack.c.bf16 %v4428_v5, %v4426_v4  ;;  %5431 = vmatprep.subr.bf16.mxu0 %v6118_v31  ;;  %v1561_v4 = vld [vmem:[%s8608_s8 + $0x38] sm:$0xff] }
 0x31c   :  { %v5438_v5 = vpack.c.bf16 %v1561_v4, %v1560_v63  ;;  %v2077_v63 = vld [vmem:[%s8601_s1 + $0x8] sm:$0xff]  ;;  %v2079_v4 = vld [vmem:[%s8601_s1 + $0x18] sm:$0xff] }
 0x31e   :  { %5357 = vmatpush1.bf16.msra.mxu1 %v5356_v15  ;;  %v5392_v15 = vpack.c.bf16 %v4427_v10, %v4425_v9  ;;  %v1564_v10 = vld [vmem:[%s8608_s8 + $0x50] sm:$0xff] }
 0x31f   :  { %5359 = vmatprep.subr.bf16.mxu1 %v5358_v16  ;;  %v5394_v16 = vpack.c.bf16 %v4434_v14, %v4432_v11  ;;  %v1565_v11 = vld [vmem:[%s8608_s8 + $0x58] sm:$0xff] }
 0x320   :  { %v5444_v14 = vpack.c.bf16 %v1565_v11, %v1564_v10  ;;  %v2076_v10 = vld [vmem:[%s8601_s1] sm:$0xff]  ;;  %v2078_v11 = vld [vmem:[%s8601_s1 + $0x10] sm:$0xff] }
 0x322   :  { %5361 = vmatpush1.bf16.msra.mxu1 %v5360_v22  ;;  %v5396_v22 = vpack.c.bf16 %v4433_v19, %v4431_v17  ;;  %v1566_v17 = vld [vmem:[%s8608_s8 + $0x60] sm:$0xff]  ;;  %v1567_v19 = vld [vmem:[%s8608_s8 + $0x68] sm:$0xff] }
 0x323   :  { %5363 = vmatprep.subr.bf16.mxu1 %v5362_v12  ;;  %v5398_v12 = vpack.c.bf16 %v4438_v21, %v4436_v20 }
 0x326   :  { %5365 = vmatpush1.bf16.msra.mxu1 %v5364_v26  ;;  %v5400_v26 = vpack.c.bf16 %v4437_v23, %v4435_v13  ;;  %v7103_v13 = vld [vmem:[%s8600_s0 + $0x30] sm:$0xff] }
 0x327   :  { %5367 = vmatprep.subr.bf16.mxu1 %v5366_v27  ;;  %v5402_v27 = vpack.c.bf16 %v4442_v25, %v4440_v24  ;;  %v1568_v23 = vld [vmem:[%s8608_s8 + $0x70] sm:$0xff]  ;;  %v1569_v24 = vld [vmem:[%s8608_s8 + $0x78] sm:$0xff] }
 0x328   :  { %v5450_v25 = vpack.c.bf16 %v1569_v24, %v1568_v23  ;;  %v2080_v23 = vld [vmem:[%s8601_s1 + $0x20] sm:$0xff]  ;;  %v2082_v24 = vld [vmem:[%s8601_s1 + $0x30] sm:$0xff] }
 0x329   :  { %4399 = vmatmul.mubr.msk.f32.vlgmr.msra.gmra.mrb[8].mxu1 %vm937_vm9, %v6688_v1  ;;  %v4416_v1 = vld [vmem:[%s8605_s5 + $0x318] sm:$0xff] }
 0x32a   :  { %5369 = vmatpush1.bf16.msra.mxu1 %v5368_v33  ;;  %1206 = vmatprep.mubr.f32.mxu1 %v6117_v7  ;;  %v5378_v47 = vpack.c.bf16 %v4416_v1, %v4414_v45  ;;  %v5414_v1 = vpack.c.bf16 %v4454_v44, %v4452_v43 }
 0x32b   :  { %5371 = vmatprep.subr.bf16.mxu1 %v5370_v35  ;;  %v4443_v35 = vld [vmem:[%s8605_s5 + $0x3e0] sm:$0xff] }
 0x32c   :  { %v5408_v28 = vpack.c.bf16 %v4445_v37, %v4443_v35  ;;  %v1451_v35 = vld [vmem:[%s8606_s6] sm:$0x3] }
 0x32d   :  { %4400 = vmatmul.mubr.msk.f32.gmra.mrb[10].mxu1 %vm937_vm9, %v1130_v54  ;;  %v4420_v54 = vld [vmem:[%s8605_s5 + $0x338] sm:$0xff]  ;;  %v1456_v37 = vrot.slane %v1451_v35, %v6429_v34 }
 0x32e   :  { %5373 = vmatpush1.bf16.msra.mxu1 %v5372_v40  ;;  %1317 = vmatprep.mubr.f32.mxu1 %v6117_v7  ;;  %v5382_v53 = vpack.c.bf16 %v4420_v54, %v4418_v50  ;;  %v4447_v40 = vld [vmem:[%s8605_s5 + $0x400] sm:$0xff]  ;;  %v5418_v54 = vpack.c.bf16 %v4458_v49, %v4456_v48  ;;  %v4517_v48 = vld [vmem:[%s8601_s1 + $0x58] sm:$0xff] }
 0x32f   :  { %5375 = vmatprep.subr.bf16.mxu1 %v5374_v42  ;;  %v4449_v42 = vld [vmem:[%s8605_s5 + $0x410] sm:$0xff] }
 0x330   :  { %v5412_v45 = vpack.c.bf16 %v4449_v42, %v4447_v40 }
 0x332   :  { %5377 = vmatpush1.bf16.msra.mxu1 %v5376_v46  ;;  %v4451_v46 = vld [vmem:[%s8605_s5 + $0x420] sm:$0xff] }
 0x333   :  { %5379 = vmatprep.subr.bf16.mxu1 %v5378_v47  ;;  %v4453_v47 = vld [vmem:[%s8605_s5 + $0x430] sm:$0xff] }
 0x334   :  { %v5416_v50 = vpack.c.bf16 %v4453_v47, %v4451_v46  ;;  %v4515_v47 = vld [vmem:[%s8601_s1 + $0x48] sm:$0xff] }
 0x336   :  { %5381 = vmatpush1.bf16.msra.mxu1 %v5380_v51  ;;  %v4455_v51 = vld [vmem:[%s8605_s5 + $0x440] sm:$0xff] }
 0x337   :  { %5383 = vmatprep.subr.bf16.mxu1 %v5382_v53  ;;  %v4457_v53 = vld [vmem:[%s8605_s5 + $0x450] sm:$0xff] }
 0x338   :  { %v5420_v57 = vpack.c.bf16 %v4457_v53, %v4455_v51 }
 0x33a   :  { %5385 = vmatpush1.bf16.msra.mxu1 %v5384_v60  ;;  %v1558_v60 = vld [vmem:[%s8608_s8 + $0x20] sm:$0xff] }
 0x33b   :  { %5387 = vmatprep.subr.bf16.mxu1 %v5386_v61  ;;  %v1559_v61 = vld [vmem:[%s8608_s8 + $0x28] sm:$0xff] }
 0x33c   :  { %v5435_v62 = vpack.c.bf16 %v1559_v61, %v1558_v60  ;;  %v4518_v61 = vld [vmem:[%s8601_s1 + $0x60] sm:$0xff] }
 0x33e   :  { %5389 = vmatpush1.bf16.msra.mxu1 %v5388_v6  ;;  %v1562_v6 = vld [vmem:[%s8608_s8 + $0x40] sm:$0xff] }
 0x33f   :  { %5391 = vmatprep.subr.bf16.mxu1 %v5390_v8  ;;  %v1563_v8 = vld [vmem:[%s8608_s8 + $0x48] sm:$0xff] }
 0x340   :  { %v5441_v9 = vpack.c.bf16 %v1563_v8, %v1562_v6 }
 0x342   :  { %5393 = vmatpush1.bf16.msra.mxu1 %v5392_v15  ;;  %v7081_v15 = vld [vmem:[%s8600_s0 + $0x20] sm:$0xff] }
 0x343   :  { %5395 = vmatprep.subr.bf16.mxu1 %v5394_v16  ;;  %v7086_v16 = vld [vmem:[%s8600_s0 + $0x28] sm:$0xff]  ;;  %v2545_v20 = vrot.slane %v7081_v15, 4  ;;  %v2096_v6 = vrot.slane %v7081_v15, 1 }
 0x344   :  { %v2546_v21 = vrot.slane %v7086_v16, 4  ;;  %v2097_v8 = vrot.slane %v7086_v16, 1 }
 0x345   :  { %4429 = vmatmul.mubr.msk.f32.vlgmr.msra.gmra.mrb[8].mxu1 %vm937_vm9, %v6693_v2  ;;  %v4446_v2 = vld [vmem:[%s8605_s5 + $0x3f8] sm:$0xff] }
 0x346   :  { %5397 = vmatpush1.bf16.msra.mxu1 %v5396_v22  ;;  %1323 = vmatprep.mubr.f32.mxu1 %v6117_v7  ;;  %v5406_v33 = vpack.c.bf16 %v4446_v2, %v4444_v30  ;;  %v5447_v22 = vpack.c.bf16 %v1567_v19, %v1566_v17  ;;  %v1571_v30 = vld [vmem:[%s8608_s8 + $0x88] sm:$0xff]  ;;  %v2083_v17 = vld [vmem:[%s8601_s1 + $0x38] sm:$0xff]  ;;  %v2098_v19 = vsel %vm76_vm0, %v2096_v6, %v2097_v8 }
 0x347   :  { %5399 = vmatprep.subr.bf16.mxu1 %v5398_v12  ;;  %v7098_v12 = vsel %vm532_vm2, %v2545_v20, %v2546_v21  ;;  %v5453_v2 = vpack.c.bf16 %v1571_v30, %v1570_v18  ;;  %v2099_v20 = vrot.slane %v7103_v13, 1  ;;  %v2101_v30 = vrot.slane %v7119_v29, 1 }
 0x349   :  { %4430 = vmatmul.mubr.msk.f32.gmra.mrb[10].mxu1 %vm937_vm9, %v1247_v55  ;;  %v4450_v55 = vld [vmem:[%s8605_s5 + $0x418] sm:$0xff]  ;;  %v2100_v18 = vsel %vm76_vm0, %v2097_v8, %v2099_v20  ;;  %v2425_v8 = vrot.slane %v7081_v15, 3 }
 0x34a   :  { %5401 = vmatpush1.bf16.msra.mxu1 %v5400_v26  ;;  %1434 = vmatprep.mubr.f32.mxu1 %v6117_v7  ;;  %v5410_v39 = vpack.c.bf16 %v4450_v55, %v4448_v38  ;;  %v2548_v26 = vrot.slane %v7103_v13, 4  ;;  %v1460_v38 = vrot.slane %v1451_v35, %v6434_v36 }
 0x34b   :  { %5403 = vmatprep.subr.bf16.mxu1 %v5402_v27 }
 0x34c   :  { %v7114_v27 = vsel %vm532_vm2, %v2546_v21, %v2548_v26  ;;  %v5543_v21 = vpack.c.bf16 %v2078_v11, %v2076_v10  ;;  %v4554_v10 = vld [vmem:[%s8601_s1 + $0x100] sm:$0xff]  ;;  %v4556_v11 = vld [vmem:[%s8601_s1 + $0x110] sm:$0xff] }
 0x34e   :  { %5405 = vmatpush1.bf16.msra.mxu1 %v5404_v32  ;;  %v2550_v32 = vrot.slane %v7119_v29, 4 }
 0x34f   :  { %5407 = vmatprep.subr.bf16.mxu1 %v5406_v33 }
 0x350   :  { %v7132_v33 = vsel %vm532_vm2, %v2548_v26, %v2550_v32  ;;  %v4533_v26 = vld [vmem:[%s8601_s1 + $0x98] sm:$0xff] }
 0x352   :  { %5409 = vmatpush1.bf16.msra.mxu1 %v5408_v28 }
 0x353   :  { %5411 = vmatprep.subr.bf16.mxu1 %v5410_v39 }
 0x356   :  { %5413 = vmatpush1.bf16.msra.mxu1 %v5412_v45 }
 0x357   :  { %5415 = vmatprep.subr.bf16.mxu1 %v5414_v1 }
 0x35a   :  { %5417 = vmatpush1.bf16.msra.mxu1 %v5416_v50 }
 0x35b   :  { %5419 = vmatprep.subr.bf16.mxu1 %v5418_v54 }
 0x35e   :  { %5421 = vmatpush1.bf16.msra.mxu1 %v5420_v57  ;;  %v5533_v57 = vpack.c.bf16 %v4517_v48, %v4515_v47  ;;  %v2305_v48 = vrot.slane %v7081_v15, 2 }
 0x361   :  { %4459 = vmatmul.mubr.msk.f32.vlgmr.msra.gmra.mrb[8].mxu1 %vm937_vm9, %v6698_v3 }
 0x362   :  { %1440 = vmatprep.mubr.f32.mxu1 %v6117_v7 }
 0x365   :  { %4460 = vmatmul.mubr.msk.f32.gmra.mrb[10].mxu1 %vm937_vm9, %v1364_v56  ;;  %v1557_v56 = vld [vmem:[%s8608_s8 + $0x18] sm:$0xff] }
 0x366   :  { %1547 = vmatprep.mubr.f32.mxu1 %v6117_v7  ;;  %v5432_v3 = vpack.c.bf16 %v1557_v56, %v1556_v52  ;;  %v4521_v52 = vld [vmem:[%s8601_s1 + $0x78] sm:$0xff]  ;;  %v1471_v56 = vld [vmem:[%s8607_s7] sm:$0x1f] }
 0x367   :  { %v5537_v60 = vpack.c.bf16 %v4521_v52, %v4519_v41 }
 0x368   :  { %5433 = vmatpush1.bf16.msra.mxu0 %v5432_v3  ;;  %v5535_v3 = vpack.c.bf16 %v4516_v59, %v4514_v58  ;;  %v2308_v59 = vrot.slane %v7103_v13, 2 }
 0x369   :  { %5434 = vmatprep.subr.bf16.mxu0 %v6118_v31 }
 0x36c   :  { %5436 = vmatpush1.bf16.msra.mxu0 %v5435_v62  ;;  %v4520_v62 = vld [vmem:[%s8601_s1 + $0x70] sm:$0xff] }
 0x36d   :  { %5437 = vmatprep.subr.bf16.mxu0 %v6118_v31 }
 0x370   :  { %5439 = vmatpush1.bf16.msra.mxu0 %v5438_v5  ;;  %v5539_v5 = vpack.c.bf16 %v4520_v62, %v4518_v61  ;;  %v4557_v61 = vld [vmem:[%s8601_s1 + $0x118] sm:$0xff] }
 0x371   :  { %5440 = vmatprep.subr.bf16.mxu0 %v6118_v31 }
 0x374   :  { %5442 = vmatpush1.bf16.msra.mxu0 %v5441_v9  ;;  %v5541_v9 = vpack.c.bf16 %v2079_v4, %v2077_v63  ;;  %v2310_v63 = vrot.slane %v7119_v29, 2 }
 0x375   :  { %5443 = vmatprep.subr.bf16.mxu0 %v6118_v31 }
 0x376   :  { %v2311_v6 = vsel %vm288_vm3, %v2308_v59, %v2310_v63 }
 0x378   :  { %5445 = vmatpush1.bf16.msra.mxu0 %v5444_v14  ;;  %v2081_v14 = vld [vmem:[%s8601_s1 + $0x28] sm:$0xff] }
 0x379   :  { %5446 = vmatprep.subr.bf16.mxu0 %v6118_v31 }
 0x37c   :  { %5448 = vmatpush1.bf16.msra.mxu0 %v5447_v22  ;;  %v5545_v22 = vpack.c.bf16 %v2083_v17, %v2081_v14  ;;  %v4559_v14 = vld [vmem:[%s8601_s1 + $0x128] sm:$0xff]  ;;  %v4561_v17 = vld [vmem:[%s8601_s1 + $0x138] sm:$0xff] }
 0x37d   :  { %5449 = vmatprep.subr.bf16.mxu0 %v6118_v31 }
 0x380   :  { %5451 = vmatpush1.bf16.msra.mxu0 %v5450_v25  ;;  %v4531_v25 = vld [vmem:[%s8601_s1 + $0x88] sm:$0xff] }
 0x381   :  { %5452 = vmatprep.subr.bf16.mxu0 %v6118_v31  ;;  %v5549_v35 = vpack.c.bf16 %v4533_v26, %v4531_v25  ;;  %v1572_v26 = vld [vmem:[%s8608_s8 + $0x90] sm:$0xff] }
 0x384   :  { %5454 = vmatpush1.bf16.msra.mxu0 %v5453_v2  ;;  %v5547_v2 = vpack.c.bf16 %v2082_v24, %v2080_v23  ;;  %v2430_v24 = vrot.slane %v7119_v29, 3 }
 0x385   :  { %5455 = vmatprep.subr.bf16.mxu0 %v6118_v31 }
 0x434   :  { %v1436_v55 = vpop.f32.mrb[8].mxu1 }
 0x435   :  { %v1463_v28 = vadd.f32 %v1456_v37, %v1436_v55  ;;  %v1438_v39 = vpop.f32.mrb[9].mxu1  ;;  %v4532_v55 = vld [vmem:[%s8601_s1 + $0x90] sm:$0xff] }
 0x436   :  { %v1464_v40 = vadd.f32 %v1460_v38, %v1438_v39  ;;  %v4537_v39 = vld [vmem:[%s8601_s1 + $0xb8] sm:$0xff] }
 0x437   :  { %6057 = vtanh.f32 %v1463_v28  ;;  %v4535_v28 = vld [vmem:[%s8601_s1 + $0xa8] sm:$0xff] }
 0x438   :  { %v1442_v42 = vpop.f32.mrb[10].mxu1  ;;  %6059 = vtanh.f32 %v1464_v40 }
 0x439   :  { %v1465_v43 = vadd.f32 %v1456_v37, %v1442_v42  ;;  %v1444_v44 = vpop.f32.mrb[11].mxu1  ;;  %v2102_v37 = vsel %vm76_vm0, %v2099_v20, %v2101_v30  ;;  %v5553_v42 = vpack.c.bf16 %v4537_v39, %v4535_v28  ;;  %v5569_v20 = vpack.c.bf16 %v4561_v17, %v4559_v14  ;;  %v4471_v39 = vld [vmem:[%s8609_s9 + $0x80] sm:$0xff] }
 0x43a   :  { %v1466_v45 = vadd.f32 %v1460_v38, %v1444_v44  ;;  %v4530_v38 = vld [vmem:[%s8601_s1 + $0x80] sm:$0xff]  ;;  %v4536_v44 = vld [vmem:[%s8601_s1 + $0xb0] sm:$0xff] }
 0x43b   :  { %6061 = vtanh.f32 %v1465_v43  ;;  %v5551_v40 = vpack.c.bf16 %v4532_v55, %v4530_v38  ;;  %v4534_v43 = vld [vmem:[%s8601_s1 + $0xa0] sm:$0xff]  ;;  %v4469_v38 = vld [vmem:[%s8609_s9 + $0x70] sm:$0xff]  ;;  %v4470_v55 = vld [vmem:[%s8609_s9 + $0x78] sm:$0xff] }
 0x43c   :  { %6063 = vtanh.f32 %v1466_v45  ;;  %v4543_v45 = vld [vmem:[%s8601_s1 + $0xc8] sm:$0xff]  ;;  %v5465_v28 = vpack.c.bf16 %v4470_v55, %v4469_v38  ;;  %v4477_v38 = vld [vmem:[%s8609_s9 + $0xa0] sm:$0xff] }
 0x43d   :  { %v4478_v55 = vld [vmem:[%s8609_s9 + $0xa8] sm:$0xff] }
 0x441   :  { %v6058_v1 = vpop.eup %6057 }
 0x442   :  { %v6060_v46 = vpop.eup %6059 }
 0x445   :  { %v6062_v49 = vpop.eup %6061 }
 0x446   :  { %v6064_v50 = vpop.eup %6063  ;;  %v5425_v51 = vpack.c.bf16 %v6062_v49, %v6058_v1  ;;  %v4545_v1 = vld [vmem:[%s8601_s1 + $0xd8] sm:$0xff]  ;;  %v2306_v49 = vrot.slane %v7086_v16, 2 }
 0x447   :  { %v5422_v53 = vpack.c.bf16 %v6064_v50, %v6060_v46  ;;  %v5555_v46 = vpack.c.bf16 %v4536_v44, %v4534_v43  ;;  %v5557_v47 = vpack.c.bf16 %v4545_v1, %v4543_v45  ;;  %v4542_v50 = vld [vmem:[%s8601_s1 + $0xc0] sm:$0xff]  ;;  %v4473_v43 = vld [vmem:[%s8609_s9 + $0x90] sm:$0xff]  ;;  %v4474_v44 = vld [vmem:[%s8609_s9 + $0x98] sm:$0xff] }
 0x448   :  { %v2307_v58 = vsel %vm288_vm3, %v2305_v48, %v2306_v49  ;;  %v2309_v62 = vsel %vm288_vm3, %v2306_v49, %v2308_v59  ;;  %v5471_v45 = vpack.c.bf16 %v4474_v44, %v4473_v43  ;;  %v2657_v1 = vld [vmem:[%s8602_s2] sm:$0x3]  ;;  %v4482_v44 = vld [vmem:[%s8609_s9 + $0xc8] sm:$0xff] }
 0x449   :  { %5424 = vmatprep.subr.msk.bf16.mxu1 %vm7147_vm11, %v5422_v53  ;;  %v4547_v53 = vld [vmem:[%s8601_s1 + $0xe8] sm:$0xff]  ;;  %v4481_v43 = vld [vmem:[%s8609_s9 + $0xc0] sm:$0xff] }
 0x44a   :  { %5427 = vmatpush1.bf16.msk.msra.mxu1 %vm7147_vm11, %v5425_v51  ;;  %v4544_v51 = vld [vmem:[%s8601_s1 + $0xd0] sm:$0xff] }
 0x44b   :  { %5534 = vmatprep.subr.bf16.mxu1 %v5533_v57  ;;  %v4549_v57 = vld [vmem:[%s8601_s1 + $0xf8] sm:$0xff]  ;;  %v5559_v41 = vpack.c.bf16 %v4544_v51, %v4542_v50 }
 0x44c   :  { %v5561_v52 = vpack.c.bf16 %v4549_v57, %v4547_v53 }
 0x44d   :  { %4463 = vmatmul.mubr.msk.f32.vlgmr.msra.gmra.mrb[12].mxu1 %vm1472_vm12, %v1471_v56  ;;  %v4546_v56 = vld [vmem:[%s8601_s1 + $0xe0] sm:$0xff] }
 0x44e   :  { %5536 = vmatpush1.bf16.msra.mxu1 %v5535_v3  ;;  %2175 = vmatprep.mubr.f32.mxu1 %v6117_v7  ;;  %v4548_v3 = vld [vmem:[%s8601_s1 + $0xf0] sm:$0xff] }
 0x44f   :  { %5538 = vmatprep.subr.bf16.mxu1 %v5537_v60  ;;  %v4555_v60 = vld [vmem:[%s8601_s1 + $0x108] sm:$0xff]  ;;  %v5563_v4 = vpack.c.bf16 %v4548_v3, %v4546_v56 }
 0x452   :  { %5540 = vmatpush1.bf16.msra.mxu1 %v5539_v5  ;;  %v5565_v5 = vpack.c.bf16 %v4557_v61, %v4555_v60 }
 0x453   :  { %5542 = vmatprep.subr.bf16.mxu1 %v5541_v9  ;;  %v2426_v9 = vrot.slane %v7086_v16, 3 }
 0x455   :  { %4522 = vmatmul.mubr.msk.f32.vlgmr.msra.gmra.mrb[14].mxu1 %vm84_vm1, %v2098_v19  ;;  %v5567_v19 = vpack.c.bf16 %v4556_v11, %v4554_v10 }
 0x456   :  { %2181 = vmatprep.mubr.f32.mxu1 %v6117_v7  ;;  %5544 = vmatpush1.bf16.msra.mxu1 %v5543_v21  ;;  %v4558_v21 = vld [vmem:[%s8601_s1 + $0x120] sm:$0xff] }
 0x457   :  { %5546 = vmatprep.subr.bf16.mxu1 %v5545_v22  ;;  %v4560_v22 = vld [vmem:[%s8601_s1 + $0x130] sm:$0xff] }
 0x459   :  { %4523 = vmatmul.mubr.msk.f32.gmra.mrb[16].mxu1 %vm84_vm1, %v2100_v18  ;;  %v1573_v18 = vld [vmem:[%s8608_s8 + $0x98] sm:$0xff] }
 0x45a   :  { %2187 = vmatprep.mubr.f32.mxu1 %v6117_v7  ;;  %5548 = vmatpush1.bf16.msra.mxu1 %v5547_v2 }
 0x45b   :  { %5550 = vmatprep.subr.bf16.mxu1 %v5549_v35 }
 0x45d   :  { %4524 = vmatmul.mubr.msk.f32.gmra.mrb[18].mxu1 %vm84_vm1, %v2102_v37 }
 0x45e   :  { %2193 = vmatprep.mubr.f32.mxu1 %v6117_v7 }
 0x461   :  { %4525 = vmatmul.mubr.msk.f32.gmra.mrb[20].mxu1 %vm84_vm1, %v2101_v30  ;;  %v5456_v30 = vpack.c.bf16 %v1573_v18, %v1572_v26  ;;  %v1650_v26 = vld [vmem:[%s8609_s9 + $0x18] sm:$0xff] }
 0x462   :  { %2272 = vmatprep.mubr.f32.mxu1 %v6117_v7 }
 0x463   :  { %5457 = vmatpush1.bf16.msra.mxu0 %v5456_v30  ;;  %v1651_v30 = vld [vmem:[%s8609_s9 + $0x20] sm:$0xff] }
 0x464   :  { %5458 = vmatprep.subr.bf16.mxu0 %v6118_v31 }
 0x465   :  { %4526 = vmatmul.mubr.msk.f32.vlgmr.msra.gmra.mrb[14].mxu1 %vm84_vm1, %v7081_v15  ;;  %v2427_v15 = vsel %vm410_vm4, %v2425_v8, %v2426_v9 }
 0x466   :  { %2278 = vmatprep.mubr.f32.mxu1 %v6117_v7  ;;  %5552 = vmatpush1.bf16.msra.mxu1 %v5551_v40  ;;  %v4472_v40 = vld [vmem:[%s8609_s9 + $0x88] sm:$0xff] }
 0x467   :  { %5554 = vmatprep.subr.bf16.mxu1 %v5553_v42  ;;  %v5468_v42 = vpack.c.bf16 %v4472_v40, %v4471_v39  ;;  %v4479_v39 = vld [vmem:[%s8609_s9 + $0xb0] sm:$0xff]  ;;  %v4480_v40 = vld [vmem:[%s8609_s9 + $0xb8] sm:$0xff] }
 0x469   :  { %4527 = vmatmul.mubr.msk.f32.gmra.mrb[16].mxu1 %vm84_vm1, %v7086_v16  ;;  %v2428_v16 = vrot.slane %v7103_v13, 3 }
 0x46a   :  { %2284 = vmatprep.mubr.f32.mxu1 %v6117_v7  ;;  %5556 = vmatpush1.bf16.msra.mxu1 %v5555_v46  ;;  %v2662_v46 = vrot.slane %v2657_v1, %v6429_v34 }
 0x46b   :  { %5558 = vmatprep.subr.bf16.mxu1 %v5557_v47  ;;  %v2429_v23 = vsel %vm410_vm4, %v2426_v9, %v2428_v16  ;;  %v2431_v25 = vsel %vm410_vm4, %v2428_v16, %v2430_v24  ;;  %v2666_v47 = vrot.slane %v2657_v1, %v6434_v36  ;;  %v4483_v1 = vld [vmem:[%s8609_s9 + $0xd0] sm:$0xff] }
 0x46d   :  { %4528 = vmatmul.mubr.msk.f32.gmra.mrb[18].mxu1 %vm84_vm1, %v7103_v13  ;;  %v5571_v13 = vpack.c.bf16 %v4560_v22, %v4558_v21  ;;  %v1648_v21 = vld [vmem:[%s8609_s9 + $0x8] sm:$0xff] }
 0x46e   :  { %2290 = vmatprep.mubr.f32.mxu1 %v6117_v7 }
 0x471   :  { %4529 = vmatmul.mubr.msk.f32.gmra.mrb[20].mxu1 %vm84_vm1, %v7119_v29  ;;  %v4467_v29 = vld [vmem:[%s8609_s9 + $0x60] sm:$0xff] }
 0x472   :  { %2384 = vmatprep.mubr.f32.mxu1 %v6117_v7 }
 0x475   :  { %4538 = vmatmul.mubr.msk.f32.vlgmr.msra.gmra.mrb[14].mxu1 %vm84_vm1, %v2307_v58 }
 0x476   :  { %2390 = vmatprep.mubr.f32.mxu1 %v6117_v7  ;;  %5560 = vmatpush1.bf16.msra.mxu1 %v5559_v41 }
 0x477   :  { %5562 = vmatprep.subr.bf16.mxu1 %v5561_v52 }
 0x479   :  { %4539 = vmatmul.mubr.msk.f32.gmra.mrb[16].mxu1 %vm84_vm1, %v2309_v62 }
 0x47a   :  { %2396 = vmatprep.mubr.f32.mxu1 %v6117_v7  ;;  %5564 = vmatpush1.bf16.msra.mxu1 %v5563_v4 }
 0x47b   :  { %5566 = vmatprep.subr.bf16.mxu1 %v5565_v5 }
 0x47d   :  { %4540 = vmatmul.mubr.msk.f32.gmra.mrb[18].mxu1 %vm84_vm1, %v2311_v6 }
 0x47e   :  { %2402 = vmatprep.mubr.f32.mxu1 %v6117_v7 }
 0x481   :  { %4541 = vmatmul.mubr.msk.f32.gmra.mrb[20].mxu1 %vm84_vm1, %v2310_v63 }
 0x482   :  { %2504 = vmatprep.mubr.f32.mxu1 %v6117_v7 }
 0x485   :  { %4550 = vmatmul.mubr.msk.f32.vlgmr.msra.gmra.mrb[14].mxu1 %vm84_vm1, %v2427_v15 }
 0x486   :  { %2510 = vmatprep.mubr.f32.mxu1 %v6117_v7  ;;  %5568 = vmatpush1.bf16.msra.mxu1 %v5567_v19 }
 0x487   :  { %5570 = vmatprep.subr.bf16.mxu1 %v5569_v20  ;;  %v1647_v20 = vld [vmem:[%s8609_s9] sm:$0xff] }
 0x489   :  { %4551 = vmatmul.mubr.msk.f32.gmra.mrb[16].mxu1 %vm84_vm1, %v2429_v23  ;;  %v5474_v23 = vpack.c.bf16 %v1648_v21, %v1647_v20  ;;  %v4496_v20 = vld [vmem:[%s8609_s9 + $0x130] sm:$0xff]  ;;  %v4497_v21 = vld [vmem:[%s8609_s9 + $0x138] sm:$0xff] }
 0x48a   :  { %2516 = vmatprep.mubr.f32.mxu1 %v6117_v7  ;;  %5572 = vmatpush1.bf16.msra.mxu1 %v5571_v13 }
 0x48d   :  { %4552 = vmatmul.mubr.msk.f32.gmra.mrb[18].mxu1 %vm84_vm1, %v2431_v25  ;;  %v1649_v25 = vld [vmem:[%s8609_s9 + $0x10] sm:$0xff] }
 0x48e   :  { %2522 = vmatprep.mubr.f32.mxu1 %v6117_v7  ;;  %v5477_v18 = vpack.c.bf16 %v1650_v26, %v1649_v25 }
 0x491   :  { %4553 = vmatmul.mubr.msk.f32.gmra.mrb[20].mxu1 %vm84_vm1, %v2430_v24 }
 0x492   :  { %2624 = vmatprep.mubr.f32.mxu1 %v6117_v7 }
 0x495   :  { %4562 = vmatmul.mubr.msk.f32.vlgmr.msra.gmra.mrb[14].mxu1 %vm84_vm1, %v7098_v12  ;;  %v4465_v12 = vld [vmem:[%s8609_s9 + $0x50] sm:$0xff] }
 0x496   :  { %2630 = vmatprep.mubr.f32.mxu1 %v6117_v7 }
 0x499   :  { %4563 = vmatmul.mubr.msk.f32.gmra.mrb[16].mxu1 %vm84_vm1, %v7114_v27  ;;  %v4466_v27 = vld [vmem:[%s8609_s9 + $0x58] sm:$0xff] }
 0x49a   :  { %2636 = vmatprep.mubr.f32.mxu1 %v6117_v7  ;;  %v5459_v2 = vpack.c.bf16 %v4466_v27, %v4465_v12  ;;  %v1652_v12 = vld [vmem:[%s8609_s9 + $0x28] sm:$0xff] }
 0x49b   :  { %v5480_v27 = vpack.c.bf16 %v1652_v12, %v1651_v30  ;;  %v4502_v30 = vld [vmem:[%s8609_s9 + $0x158] sm:$0xff] }
 0x49d   :  { %4564 = vmatmul.mubr.msk.f32.gmra.mrb[18].mxu1 %vm84_vm1, %v7132_v33 }
 0x49e   :  { %2642 = vmatprep.mubr.f32.mxu1 %v6117_v7 }
 0x4a1   :  { %4565 = vmatmul.mubr.msk.f32.gmra.mrb[20].mxu1 %vm84_vm1, %v2550_v32  ;;  %v4468_v32 = vld [vmem:[%s8609_s9 + $0x68] sm:$0xff] }
 0x4a2   :  { %3014 = vmatprep.mubr.f32.mxu1 %v6117_v7  ;;  %v5462_v37 = vpack.c.bf16 %v4468_v32, %v4467_v29  ;;  %v1655_v29 = vld [vmem:[%s8609_s9 + $0x40] sm:$0xff]  ;;  %v1656_v32 = vld [vmem:[%s8609_s9 + $0x48] sm:$0xff] }
 0x520   :  { %v1549_v33 = vpop.f32.mrb[12].mxu1 }
 0x521   :  { %v1551_v35 = vpop.f32.mrb[13].mxu1 }
 0x522   :  { %4464 = vmatprep.mubr.msk.f32.mxu0 %vm84_vm1, %v1551_v35 }
 0x523   :  { %1642 = vmatmul.mubr.f32.vlgmr.msra.gmra.mrb[8].mxu0 %v1549_v33  ;;  %v1653_v33 = vld [vmem:[%s8609_s9 + $0x30] sm:$0xff] }
 0x524   :  { %5460 = vmatpush3.bf16.msra.mxu0 %v5459_v2  ;;  %4910 = vmatprep.mubr.msk.f32.mxu0 %vm6120_vm13, %v6117_v7  ;;  %v1654_v2 = vld [vmem:[%s8609_s9 + $0x38] sm:$0xff] }
 0x525   :  { %5461 = vmatprep.subr.bf16.mxu0 %v6118_v31  ;;  %v5483_v35 = vpack.c.bf16 %v1654_v2, %v1653_v33  ;;  %v4504_v33 = vld [vmem:[%s8609_s9 + $0x168] sm:$0xff] }
 0x528   :  { %5463 = vmatpush3.bf16.msra.mxu0 %v5462_v37  ;;  %v5486_v37 = vpack.c.bf16 %v1656_v32, %v1655_v29  ;;  %v4506_v29 = vld [vmem:[%s8609_s9 + $0x178] sm:$0xff] }
 0x529   :  { %5464 = vmatprep.subr.bf16.mxu0 %v6118_v31 }
 0x52c   :  { %5466 = vmatpush3.bf16.msra.mxu0 %v5465_v28  ;;  %v5489_v28 = vpack.c.bf16 %v4478_v55, %v4477_v38  ;;  %v4508_v38 = vld [vmem:[%s8609_s9 + $0x188] sm:$0xff] }
 0x52d   :  { %5467 = vmatprep.subr.bf16.mxu0 %v6118_v31 }
 0x530   :  { %5469 = vmatpush3.bf16.msra.mxu0 %v5468_v42  ;;  %v5492_v42 = vpack.c.bf16 %v4480_v40, %v4479_v39  ;;  %v2784_v39 = vld [vmem:[%s8604_s4 + $0x40] sm:$0xff]  ;;  %v2785_v40 = vld [vmem:[%s8604_s4 + $0x48] sm:$0xff] }
 0x531   :  { %5470 = vmatprep.subr.bf16.mxu0 %v6118_v31 }
 0x534   :  { %5472 = vmatpush3.bf16.msra.mxu0 %v5471_v45  ;;  %v5495_v45 = vpack.c.bf16 %v4482_v44, %v4481_v43  ;;  %v2786_v43 = vld [vmem:[%s8604_s4 + $0x50] sm:$0xff]  ;;  %v2787_v44 = vld [vmem:[%s8604_s4 + $0x58] sm:$0xff] }
 0x535   :  { %5473 = vmatprep.subr.bf16.mxu0 %v6118_v31 }
 0x568   :  { %v2626_v48 = vpop.f32.mrb[14].mxu1 }
 0x569   :  { %v2628_v49 = vpop.f32.mrb[15].mxu1  ;;  %v2669_v50 = vadd.f32 %v2662_v46, %v2626_v48  ;;  %v4485_v48 = vld [vmem:[%s8609_s9 + $0xe0] sm:$0xff] }
 0x56a   :  { %v2670_v51 = vadd.f32 %v2666_v47, %v2628_v49  ;;  %v4486_v49 = vld [vmem:[%s8609_s9 + $0xe8] sm:$0xff] }
 0x56b   :  { %6065 = vtanh.f32 %v2669_v50  ;;  %v5501_v50 = vpack.c.bf16 %v4486_v49, %v4485_v48  ;;  %v2790_v48 = vld [vmem:[%s8604_s4 + $0x70] sm:$0xff]  ;;  %v2791_v49 = vld [vmem:[%s8604_s4 + $0x78] sm:$0xff] }
 0x56c   :  { %v2632_v53 = vpop.f32.mrb[16].mxu1  ;;  %6067 = vtanh.f32 %v2670_v51  ;;  %v4488_v51 = vld [vmem:[%s8609_s9 + $0xf0] sm:$0xff] }
 0x56d   :  { %v2671_v57 = vadd.f32 %v2662_v46, %v2632_v53  ;;  %v2634_v58 = vpop.f32.mrb[17].mxu1  ;;  %v4489_v53 = vld [vmem:[%s8609_s9 + $0xf8] sm:$0xff] }
 0x56e   :  { %v2672_v59 = vadd.f32 %v2666_v47, %v2634_v58 }
 0x56f   :  { %6069 = vtanh.f32 %v2671_v57  ;;  %v5504_v57 = vpack.c.bf16 %v4489_v53, %v4488_v51  ;;  %v2792_v51 = vld [vmem:[%s8604_s4 + $0x80] sm:$0xff]  ;;  %v2793_v53 = vld [vmem:[%s8604_s4 + $0x88] sm:$0xff] }
 0x570   :  { %v2638_v41 = vpop.f32.mrb[18].mxu1  ;;  %6071 = vtanh.f32 %v2672_v59  ;;  %v4490_v59 = vld [vmem:[%s8609_s9 + $0x100] sm:$0xff] }
 0x571   :  { %v2640_v52 = vpop.f32.mrb[19].mxu1  ;;  %v2673_v56 = vadd.f32 %v2662_v46, %v2638_v41  ;;  %v4491_v41 = vld [vmem:[%s8609_s9 + $0x108] sm:$0xff] }
 0x572   :  { %v2674_v3 = vadd.f32 %v2666_v47, %v2640_v52  ;;  %v5507_v52 = vpack.c.bf16 %v4491_v41, %v4490_v59  ;;  %v2795_v59 = vld [vmem:[%s8604_s4 + $0x98] sm:$0xff] }
 0x573   :  { %6073 = vtanh.f32 %v2673_v56  ;;  %v4492_v56 = vld [vmem:[%s8609_s9 + $0x110] sm:$0xff] }
 0x574   :  { %v2644_v60 = vpop.f32.mrb[20].mxu1  ;;  %6075 = vtanh.f32 %v2674_v3  ;;  %v4493_v3 = vld [vmem:[%s8609_s9 + $0x118] sm:$0xff] }
 0x575   :  { %v2675_v61 = vadd.f32 %v2662_v46, %v2644_v60  ;;  %v2646_v62 = vpop.f32.mrb[21].mxu1  ;;  %v7392_v63 = vpop.eup %6065  ;;  %v4484_v46 = vld [vmem:[%s8609_s9 + $0xd8] sm:$0xff]  ;;  %v5510_v60 = vpack.c.bf16 %v4493_v3, %v4492_v56  ;;  %v2797_v56 = vld [vmem:[%s8604_s4 + $0xa8] sm:$0xff] }
 0x576   :  { %v2676_v4 = vadd.f32 %v2666_v47, %v2646_v62  ;;  %v7396_v5 = vpop.eup %6067  ;;  %v5498_v47 = vpack.c.bf16 %v4484_v46, %v4483_v1  ;;  %v4495_v62 = vld [vmem:[%s8609_s9 + $0x128] sm:$0xff]  ;;  %v2788_v1 = vld [vmem:[%s8604_s4 + $0x60] sm:$0xff] }
 0x577   :  { %6077 = vtanh.f32 %v2675_v61  ;;  %v4494_v61 = vld [vmem:[%s8609_s9 + $0x120] sm:$0xff]  ;;  %v2789_v46 = vld [vmem:[%s8604_s4 + $0x68] sm:$0xff] }
 0x578   :  { %6079 = vtanh.f32 %v2676_v4  ;;  %v5513_v4 = vpack.c.bf16 %v4495_v62, %v4494_v61  ;;  %v2799_v61 = vld [vmem:[%s8604_s4 + $0xb8] sm:$0xff] }
 0x579   :  { %v7398_v6 = vpop.eup %6069 }
 0x57a   :  { %v7400_v8 = vpop.eup %6071  ;;  %v5575_v10 = vpack.c.bf16 %v7398_v6, %v7392_v63  ;;  %v2685_v63 = vld [vmem:[%s8603_s3] sm:$0xff] }
 0x57b   :  { %v5573_v9 = vpack.c.bf16 %v7400_v8, %v7396_v5  ;;  %v2777_v5 = vld [vmem:[%s8604_s4 + $0x8] sm:$0xff]  ;;  %v2778_v8 = vld [vmem:[%s8604_s4 + $0x10] sm:$0xff] }
 0x57d   :  { %v7406_v11 = vpop.eup %6073 }
 0x57e   :  { %v7408_v14 = vpop.eup %6075 }
 0x581   :  { %v7410_v17 = vpop.eup %6077 }
 0x582   :  { %v7412_v15 = vpop.eup %6079  ;;  %v5580_v19 = vpack.c.bf16 %v7410_v17, %v7406_v11  ;;  %v2780_v11 = vld [vmem:[%s8604_s4 + $0x20] sm:$0xff] }
 0x583   :  { %v5577_v16 = vpack.c.bf16 %v7412_v15, %v7408_v14  ;;  %v2781_v14 = vld [vmem:[%s8604_s4 + $0x28] sm:$0xff]  ;;  %v2782_v15 = vld [vmem:[%s8604_s4 + $0x30] sm:$0xff] }
 0x584   :  { %v5590_v17 = vpack.c.bf16 %v2781_v14, %v2780_v11  ;;  %v4589_v11 = vld [vmem:[%s8605_s5 + $0x168] sm:$0xff]  ;;  %v4591_v14 = vld [vmem:[%s8605_s5 + $0x178] sm:$0xff] }
 0x5f6   :  { %v7424_v22 = vpop.f32.mrb[8].mxu0 }
 0x5f7   :  { %v1669_v24 = vrot.slane %v7424_v22, 1  ;;  %v1645_v13 = vpop.f32.mrb[9].mxu0  ;;  %v1826_v58 = vrot.slane %v7424_v22, 2  ;;  %v1911_v26 = vrot.slane %v7424_v22, 3 }
 0x5f8   :  { %v4500_v13 = vld [vmem:[%s8609_s9 + $0x148] sm:$0xff] }
 0x5f9   :  { %4911 = vmatmul.mubr.msk.f32.vlgmr.msra.gmra.mrb[10].mxu0 %vm1670_vm14, %v1669_v24  ;;  %v4499_v24 = vld [vmem:[%s8609_s9 + $0x140] sm:$0xff] }
 0x5fa   :  { %5475 = vmatpush3.bf16.msra.mxu0 %v5474_v23  ;;  %4933 = vmatprep.mubr.msk.f32.mxu0 %vm6120_vm13, %v6117_v7  ;;  %v5516_v23 = vpack.c.bf16 %v4497_v21, %v4496_v20  ;;  %v5519_v25 = vpack.c.bf16 %v4500_v13, %v4499_v24  ;;  %v2801_v20 = vld [vmem:[%s8604_s4 + $0xc8] sm:$0xff]  ;;  %v2803_v24 = vld [vmem:[%s8604_s4 + $0xd8] sm:$0xff] }
 0x5fb   :  { %5476 = vmatprep.subr.bf16.mxu0 %v6118_v31 }
 0x5fe   :  { %5478 = vmatpush3.bf16.msra.mxu0 %v5477_v18  ;;  %v4501_v18 = vld [vmem:[%s8609_s9 + $0x150] sm:$0xff] }
 0x5ff   :  { %5479 = vmatprep.subr.bf16.mxu0 %v6118_v31  ;;  %v5522_v12 = vpack.c.bf16 %v4502_v30, %v4501_v18  ;;  %v4572_v18 = vld [vmem:[%s8605_s5 + $0xe0] sm:$0xff] }
 0x602   :  { %5481 = vmatpush3.bf16.msra.mxu0 %v5480_v27  ;;  %v4503_v27 = vld [vmem:[%s8609_s9 + $0x160] sm:$0xff] }
 0x603   :  { %5482 = vmatprep.subr.bf16.mxu0 %v6118_v31  ;;  %v5525_v2 = vpack.c.bf16 %v4504_v33, %v4503_v27  ;;  %v4577_v27 = vld [vmem:[%s8605_s5 + $0x108] sm:$0xff]  ;;  %v4579_v33 = vld [vmem:[%s8605_s5 + $0x118] sm:$0xff] }
 0x606   :  { %5484 = vmatpush3.bf16.msra.mxu0 %v5483_v35  ;;  %v4505_v35 = vld [vmem:[%s8609_s9 + $0x170] sm:$0xff] }
 0x607   :  { %5485 = vmatprep.subr.bf16.mxu0 %v6118_v31  ;;  %v5528_v32 = vpack.c.bf16 %v4506_v29, %v4505_v35  ;;  %v5629_v35 = vpack.c.bf16 %v4579_v33, %v4577_v27  ;;  %v4576_v29 = vld [vmem:[%s8605_s5 + $0x100] sm:$0xff] }
 0x60a   :  { %5487 = vmatpush3.bf16.msra.mxu0 %v5486_v37  ;;  %v4507_v37 = vld [vmem:[%s8609_s9 + $0x180] sm:$0xff] }
 0x60b   :  { %5488 = vmatprep.subr.bf16.mxu0 %v6118_v31  ;;  %v5531_v55 = vpack.c.bf16 %v4508_v38, %v4507_v37  ;;  %v4581_v37 = vld [vmem:[%s8605_s5 + $0x128] sm:$0xff]  ;;  %v4583_v38 = vld [vmem:[%s8605_s5 + $0x138] sm:$0xff] }
 0x60d   :  { %4934 = vmatmul.mubr.msk.f32.vlgmr.msra.gmra.mrb[10].mxu0 %vm1670_vm14, %v7424_v22 }
 0x60e   :  { %5490 = vmatpush3.bf16.msra.mxu0 %v5489_v28  ;;  %4956 = vmatprep.mubr.msk.f32.mxu0 %vm6120_vm13, %v6117_v7  ;;  %v1996_v28 = vrot.slane %v7424_v22, 4  ;;  %v2776_v22 = vld [vmem:[%s8604_s4] sm:$0xff] }
 0x60f   :  { %5491 = vmatprep.subr.bf16.mxu0 %v6118_v31  ;;  %v5584_v6 = vpack.c.bf16 %v2777_v5, %v2776_v22  ;;  %v4580_v22 = vld [vmem:[%s8605_s5 + $0x120] sm:$0xff]  ;;  %v4582_v5 = vld [vmem:[%s8605_s5 + $0x130] sm:$0xff] }
 0x612   :  { %5493 = vmatpush3.bf16.msra.mxu0 %v5492_v42  ;;  %v5596_v42 = vpack.c.bf16 %v2785_v40, %v2784_v39  ;;  %v4593_v39 = vld [vmem:[%s8605_s5 + $0x188] sm:$0xff]  ;;  %v4595_v40 = vld [vmem:[%s8605_s5 + $0x198] sm:$0xff] }
 0x613   :  { %5494 = vmatprep.subr.bf16.mxu0 %v6118_v31 }
 0x616   :  { %5496 = vmatpush3.bf16.msra.mxu0 %v5495_v45  ;;  %v5599_v45 = vpack.c.bf16 %v2787_v44, %v2786_v43  ;;  %v5645_v43 = vpack.c.bf16 %v4595_v40, %v4593_v39  ;;  %v2904_v39 = vld [vmem:[%s8605_s5 + $0x98] sm:$0xff] }
 0x617   :  { %5497 = vmatprep.subr.bf16.mxu0 %v6118_v31 }
 0x61a   :  { %5499 = vmatpush3.bf16.msra.mxu0 %v5498_v47  ;;  %v5602_v47 = vpack.c.bf16 %v2789_v46, %v2788_v1 }
 0x61b   :  { %5500 = vmatprep.subr.bf16.mxu0 %v6118_v31 }
 0x61e   :  { %5502 = vmatpush3.bf16.msra.mxu0 %v5501_v50  ;;  %v5605_v50 = vpack.c.bf16 %v2791_v49, %v2790_v48  ;;  %v4592_v49 = vld [vmem:[%s8605_s5 + $0x180] sm:$0xff] }
 0x61f   :  { %5503 = vmatprep.subr.bf16.mxu0 %v6118_v31 }
 0x621   :  { %4957 = vmatmul.mubr.msk.f32.vlgmr.msra.gmra.mrb[10].mxu0 %vm1670_vm14, %v1826_v58  ;;  %v2794_v58 = vld [vmem:[%s8604_s4 + $0x90] sm:$0xff] }
 0x622   :  { %5505 = vmatpush3.bf16.msra.mxu0 %v5504_v57  ;;  %4979 = vmatprep.mubr.msk.f32.mxu0 %vm6120_vm13, %v6117_v7  ;;  %v5608_v57 = vpack.c.bf16 %v2793_v53, %v2792_v51  ;;  %v5611_v41 = vpack.c.bf16 %v2795_v59, %v2794_v58  ;;  %v4597_v53 = vld [vmem:[%s8605_s5 + $0x1a8] sm:$0xff]  ;;  %v4596_v59 = vld [vmem:[%s8605_s5 + $0x1a0] sm:$0xff] }
 0x623   :  { %5506 = vmatprep.subr.bf16.mxu0 %v6118_v31 }
 0x626   :  { %5508 = vmatpush3.bf16.msra.mxu0 %v5507_v52  ;;  %v2796_v52 = vld [vmem:[%s8604_s4 + $0xa0] sm:$0xff] }
 0x627   :  { %5509 = vmatprep.subr.bf16.mxu0 %v6118_v31  ;;  %v5614_v3 = vpack.c.bf16 %v2797_v56, %v2796_v52  ;;  %v2886_v56 = vld [vmem:[%s8605_s5 + $0x8] sm:$0xff] }
 0x62a   :  { %5511 = vmatpush3.bf16.msra.mxu0 %v5510_v60  ;;  %v2798_v60 = vld [vmem:[%s8604_s4 + $0xb0] sm:$0xff] }
 0x62b   :  { %5512 = vmatprep.subr.bf16.mxu0 %v6118_v31  ;;  %v5617_v62 = vpack.c.bf16 %v2799_v61, %v2798_v60 }
 0x62e   :  { %5514 = vmatpush3.bf16.msra.mxu0 %v5513_v4  ;;  %v2800_v4 = vld [vmem:[%s8604_s4 + $0xc0] sm:$0xff] }
 0x62f   :  { %5515 = vmatprep.subr.bf16.mxu0 %v6118_v31  ;;  %v5620_v21 = vpack.c.bf16 %v2801_v20, %v2800_v4  ;;  %v2887_v4 = vld [vmem:[%s8605_s5 + $0x10] sm:$0xff] }
 0x632   :  { %5517 = vmatpush3.bf16.msra.mxu0 %v5516_v23  ;;  %v2802_v23 = vld [vmem:[%s8604_s4 + $0xd0] sm:$0xff] }
 0x633   :  { %5518 = vmatprep.subr.bf16.mxu0 %v6118_v31  ;;  %v5623_v13 = vpack.c.bf16 %v2803_v24, %v2802_v23  ;;  %v2890_v23 = vld [vmem:[%s8605_s5 + $0x28] sm:$0xff]  ;;  %v2892_v24 = vld [vmem:[%s8605_s5 + $0x38] sm:$0xff] }
 0x635   :  { %4980 = vmatmul.mubr.msk.f32.vlgmr.msra.gmra.mrb[10].mxu0 %vm1670_vm14, %v1911_v26  ;;  %v4575_v26 = vld [vmem:[%s8605_s5 + $0xf8] sm:$0xff] }
 0x636   :  { %5520 = vmatpush3.bf16.msra.mxu0 %v5519_v25  ;;  %5002 = vmatprep.mubr.msk.f32.mxu0 %vm6120_vm13, %v6117_v7  ;;  %v4573_v25 = vld [vmem:[%s8605_s5 + $0xe8] sm:$0xff] }
 0x637   :  { %5521 = vmatprep.subr.bf16.mxu0 %v6118_v31  ;;  %v5625_v30 = vpack.c.bf16 %v4575_v26, %v4573_v25 }
 0x639   :  { %5626 = vmatprep.subr.bf16.mxu1 %v5625_v30 }
 0x63a   :  { %5523 = vmatpush3.bf16.msra.mxu0 %v5522_v12  ;;  %v4574_v12 = vld [vmem:[%s8605_s5 + $0xf0] sm:$0xff] }
 0x63b   :  { %5524 = vmatprep.subr.bf16.mxu0 %v6118_v31 }
 0x63e   :  { %5526 = vmatpush3.bf16.msra.mxu0 %v5525_v2  ;;  %v5627_v2 = vpack.c.bf16 %v4574_v12, %v4572_v18 }
 0x63f   :  { %5527 = vmatprep.subr.bf16.mxu0 %v6118_v31 }
 0x640   :  { %5628 = vmatpush1.bf16.msra.mxu1 %v5627_v2 }
 0x641   :  { %5630 = vmatprep.subr.bf16.mxu1 %v5629_v35 }
 0x642   :  { %5529 = vmatpush3.bf16.msra.mxu0 %v5528_v32  ;;  %v4578_v32 = vld [vmem:[%s8605_s5 + $0x110] sm:$0xff] }
 0x643   :  { %5530 = vmatprep.subr.bf16.mxu0 %v6118_v31 }
 0x646   :  { %5532 = vmatpush3.bf16.msra.mxu0 %v5531_v55  ;;  %v5631_v55 = vpack.c.bf16 %v4578_v32, %v4576_v29  ;;  %v5657_v29 = vpack.c.bf16 %v2892_v24, %v2890_v23  ;;  %v2889_v32 = vld [vmem:[%s8605_s5 + $0x20] sm:$0xff] }
 0x647   :  { %5574 = vmatprep.subr.bf16.mxu0 %v5573_v9  ;;  %v2779_v9 = vld [vmem:[%s8604_s4 + $0x18] sm:$0xff]  ;;  %v4608_v24 = vld [vmem:[%s8605_s5 + $0x1e0] sm:$0xff] }
 0x648   :  { %5632 = vmatpush1.bf16.msra.mxu1 %v5631_v55  ;;  %v2894_v55 = vld [vmem:[%s8605_s5 + $0x48] sm:$0xff] }
 0x649   :  { %5003 = vmatmul.mubr.msk.f32.vlgmr.msra.gmra.mrb[10].mxu0 %vm1670_vm14, %v1996_v28  ;;  %v5633_v28 = vpack.c.bf16 %v4583_v38, %v4581_v37  ;;  %v2891_v37 = vld [vmem:[%s8605_s5 + $0x30] sm:$0xff] }
 0x64a   :  { %5576 = vmatpush1.bf16.msra.mxu0 %v5575_v10  ;;  %2763 = vmatprep.mubr.f32.mxu0 %v6117_v7  ;;  %v5587_v10 = vpack.c.bf16 %v2779_v9, %v2778_v8  ;;  %v5635_v8 = vpack.c.bf16 %v4582_v5, %v4580_v22 }
 0x64b   :  { %5579 = vmatprep.subr.msk.bf16.mxu0 %vm6440_vm6, %v5577_v16  ;;  %v2783_v16 = vld [vmem:[%s8604_s4 + $0x38] sm:$0xff]  ;;  %5634 = vmatprep.subr.bf16.mxu1 %v5633_v28 }
 0x64c   :  { %5636 = vmatpush1.bf16.msra.mxu1 %v5635_v8  ;;  %v2896_v28 = vld [vmem:[%s8605_s5 + $0x58] sm:$0xff] }
 0x64d   :  { %v5661_v8 = vpack.c.bf16 %v2896_v28, %v2894_v55  ;;  %v4616_v55 = vld [vmem:[%s8605_s5 + $0x220] sm:$0xff]  ;;  %v4618_v28 = vld [vmem:[%s8605_s5 + $0x230] sm:$0xff] }
 0x64e   :  { %5582 = vmatpush1.bf16.msk.msra.mxu0 %vm6440_vm6, %v5580_v19  ;;  %v5593_v19 = vpack.c.bf16 %v2783_v16, %v2782_v15  ;;  %v5641_v15 = vpack.c.bf16 %v4591_v14, %v4589_v11  ;;  %v4588_v16 = vld [vmem:[%s8605_s5 + $0x160] sm:$0xff]  ;;  %v2900_v11 = vld [vmem:[%s8605_s5 + $0x78] sm:$0xff] }
 0x64f   :  { %5583 = vmatprep.subr.bf16.mxu0 %v6118_v31 }
 0x651   :  { %4568 = vmatmul.mubr.msk.f32.vlgmr.msra.gmra.mrb[12].mxu0 %vm675_vm7, %v2685_v63  ;;  %v4585_v63 = vld [vmem:[%s8605_s5 + $0x148] sm:$0xff] }
 0x652   :  { %2769 = vmatprep.mubr.f32.mxu0 %v6117_v7  ;;  %5585 = vmatpush1.bf16.msra.mxu0 %v5584_v6  ;;  %v4587_v6 = vld [vmem:[%s8605_s5 + $0x158] sm:$0xff] }
 0x653   :  { %5586 = vmatprep.subr.bf16.mxu0 %v6118_v31  ;;  %v5637_v9 = vpack.c.bf16 %v4587_v6, %v4585_v63  ;;  %v5659_v6 = vpack.c.bf16 %v2891_v37, %v2889_v32  ;;  %v4617_v32 = vld [vmem:[%s8605_s5 + $0x228] sm:$0xff] }
 0x655   :  { %4569 = vmatmul.mubr.msk.f32.gmra.mrb[14].mxu0 %vm675_vm7, %v2686_v0  ;;  %v4584_v0 = vld [vmem:[%s8605_s5 + $0x140] sm:$0xff]  ;;  %5638 = vmatprep.subr.bf16.mxu1 %v5637_v9 }
 0x656   :  { %5588 = vmatpush1.bf16.msra.mxu0 %v5587_v10  ;;  %v4586_v10 = vld [vmem:[%s8605_s5 + $0x150] sm:$0xff]  ;;  %v2893_v9 = vld [vmem:[%s8605_s5 + $0x40] sm:$0xff] }
 0x657   :  { %5589 = vmatprep.subr.bf16.mxu0 %v6118_v31 }
 0x65a   :  { %5591 = vmatpush1.bf16.msra.mxu0 %v5590_v17  ;;  %v5639_v17 = vpack.c.bf16 %v4586_v10, %v4584_v0  ;;  %v2895_v0 = vld [vmem:[%s8605_s5 + $0x50] sm:$0xff]  ;;  %v2898_v10 = vld [vmem:[%s8605_s5 + $0x68] sm:$0xff] }
 0x65b   :  { %5592 = vmatprep.subr.bf16.mxu0 %v6118_v31  ;;  %v5663_v14 = vpack.c.bf16 %v2895_v0, %v2893_v9  ;;  %v5695_v9 = vpack.c.bf16 %v4618_v28, %v4616_v55  ;;  %v4654_v55 = vld [vmem:[%s8605_s5 + $0x340] sm:$0xff]  ;;  %v4656_v28 = vld [vmem:[%s8605_s5 + $0x350] sm:$0xff] }
 0x65c   :  { %5640 = vmatpush1.bf16.msra.mxu1 %v5639_v17  ;;  %v5665_v17 = vpack.c.bf16 %v2900_v11, %v2898_v10  ;;  %v4620_v10 = vld [vmem:[%s8605_s5 + $0x240] sm:$0xff]  ;;  %v4622_v11 = vld [vmem:[%s8605_s5 + $0x250] sm:$0xff] }
 0x65d   :  { %5642 = vmatprep.subr.bf16.mxu1 %v5641_v15  ;;  %v2897_v15 = vld [vmem:[%s8605_s5 + $0x60] sm:$0xff] }
 0x65e   :  { %5594 = vmatpush1.bf16.msra.mxu0 %v5593_v19  ;;  %v4590_v19 = vld [vmem:[%s8605_s5 + $0x170] sm:$0xff] }
 0x65f   :  { %5595 = vmatprep.subr.bf16.mxu0 %v6118_v31 }
 0x662   :  { %5597 = vmatpush1.bf16.msra.mxu0 %v5596_v42  ;;  %v5643_v42 = vpack.c.bf16 %v4590_v19, %v4588_v16  ;;  %v2899_v16 = vld [vmem:[%s8605_s5 + $0x70] sm:$0xff]  ;;  %v2902_v19 = vld [vmem:[%s8605_s5 + $0x88] sm:$0xff] }
 0x663   :  { %5598 = vmatprep.subr.bf16.mxu0 %v6118_v31  ;;  %v5667_v40 = vpack.c.bf16 %v2899_v16, %v2897_v15  ;;  %v5699_v15 = vpack.c.bf16 %v4622_v11, %v4620_v10  ;;  %v4658_v10 = vld [vmem:[%s8605_s5 + $0x360] sm:$0xff]  ;;  %v4660_v11 = vld [vmem:[%s8605_s5 + $0x370] sm:$0xff] }
 0x664   :  { %5644 = vmatpush1.bf16.msra.mxu1 %v5643_v42  ;;  %v5669_v42 = vpack.c.bf16 %v2904_v39, %v2902_v19  ;;  %v4624_v19 = vld [vmem:[%s8605_s5 + $0x260] sm:$0xff]  ;;  %v4626_v39 = vld [vmem:[%s8605_s5 + $0x270] sm:$0xff] }
 0x665   :  { %5646 = vmatprep.subr.bf16.mxu1 %v5645_v43  ;;  %v2901_v43 = vld [vmem:[%s8605_s5 + $0x80] sm:$0xff] }
 0x666   :  { %5600 = vmatpush1.bf16.msra.mxu0 %v5599_v45 }
 0x667   :  { %5601 = vmatprep.subr.bf16.mxu0 %v6118_v31 }
 0x66a   :  { %5603 = vmatpush1.bf16.msra.mxu0 %v5602_v47 }
 0x66b   :  { %5604 = vmatprep.subr.bf16.mxu0 %v6118_v31 }
 0x66e   :  { %5606 = vmatpush1.bf16.msra.mxu0 %v5605_v50  ;;  %v4594_v50 = vld [vmem:[%s8605_s5 + $0x190] sm:$0xff] }
 0x66f   :  { %5607 = vmatprep.subr.bf16.mxu0 %v6118_v31  ;;  %v5647_v51 = vpack.c.bf16 %v4594_v50, %v4592_v49  ;;  %v2907_v49 = vld [vmem:[%s8605_s5 + $0xb0] sm:$0xff]  ;;  %v2910_v50 = vld [vmem:[%s8605_s5 + $0xc8] sm:$0xff] }
 0x671   :  { %5648 = vmatpush1.bf16.msra.mxu1 %v5647_v51  ;;  %v2912_v51 = vld [vmem:[%s8605_s5 + $0xd8] sm:$0xff] }
 0x672   :  { %5609 = vmatpush1.bf16.msra.mxu0 %v5608_v57  ;;  %v4599_v57 = vld [vmem:[%s8605_s5 + $0x1b8] sm:$0xff] }
 0x673   :  { %5610 = vmatprep.subr.bf16.mxu0 %v6118_v31  ;;  %v5649_v58 = vpack.c.bf16 %v4599_v57, %v4597_v53  ;;  %v5677_v57 = vpack.c.bf16 %v2912_v51, %v2910_v50  ;;  %v4634_v50 = vld [vmem:[%s8605_s5 + $0x2a0] sm:$0xff]  ;;  %v4636_v51 = vld [vmem:[%s8605_s5 + $0x2b0] sm:$0xff] }
 0x675   :  { %5650 = vmatprep.subr.bf16.mxu1 %v5649_v58  ;;  %v2909_v58 = vld [vmem:[%s8605_s5 + $0xc0] sm:$0xff] }
 0x676   :  { %5612 = vmatpush1.bf16.msra.mxu0 %v5611_v41  ;;  %v4598_v41 = vld [vmem:[%s8605_s5 + $0x1b0] sm:$0xff] }
 0x677   :  { %5613 = vmatprep.subr.bf16.mxu0 %v6118_v31  ;;  %v5651_v52 = vpack.c.bf16 %v4598_v41, %v4596_v59  ;;  %v2911_v59 = vld [vmem:[%s8605_s5 + $0xd0] sm:$0xff]  ;;  %v4605_v41 = vld [vmem:[%s8605_s5 + $0x1c8] sm:$0xff] }
 0x679   :  { %5652 = vmatpush1.bf16.msra.mxu1 %v5651_v52  ;;  %v4607_v52 = vld [vmem:[%s8605_s5 + $0x1d8] sm:$0xff] }
 0x67a   :  { %5615 = vmatpush1.bf16.msra.mxu0 %v5614_v3  ;;  %v2888_v3 = vld [vmem:[%s8605_s5 + $0x18] sm:$0xff] }
 0x67b   :  { %5616 = vmatprep.subr.bf16.mxu0 %v6118_v31  ;;  %v5653_v60 = vpack.c.bf16 %v2888_v3, %v2886_v56  ;;  %v5679_v56 = vpack.c.bf16 %v2911_v59, %v2909_v58  ;;  %v5681_v3 = vpack.c.bf16 %v4607_v52, %v4605_v41  ;;  %v5711_v58 = vpack.c.bf16 %v4636_v51, %v4634_v50  ;;  %v4638_v41 = vld [vmem:[%s8605_s5 + $0x2c0] sm:$0xff]  ;;  %v4640_v52 = vld [vmem:[%s8605_s5 + $0x2d0] sm:$0xff] }
 0x67c   :  { %v4672_v50 = vld [vmem:[%s8605_s5 + $0x3c0] sm:$0xff]  ;;  %v4674_v51 = vld [vmem:[%s8605_s5 + $0x3d0] sm:$0xff] }
 0x67d   :  { %5654 = vmatprep.subr.bf16.mxu1 %v5653_v60  ;;  %v4604_v60 = vld [vmem:[%s8605_s5 + $0x1c0] sm:$0xff] }
 0x67e   :  { %5618 = vmatpush1.bf16.msra.mxu0 %v5617_v62  ;;  %v2885_v62 = vld [vmem:[%s8605_s5] sm:$0xff] }
 0x67f   :  { %5619 = vmatprep.subr.bf16.mxu0 %v6118_v31 }
 0x682   :  { %5621 = vmatpush1.bf16.msra.mxu0 %v5620_v21  ;;  %v5655_v21 = vpack.c.bf16 %v2887_v4, %v2885_v62  ;;  %v4606_v62 = vld [vmem:[%s8605_s5 + $0x1d0] sm:$0xff]  ;;  %v4609_v4 = vld [vmem:[%s8605_s5 + $0x1e8] sm:$0xff] }
 0x683   :  { %5622 = vmatprep.subr.bf16.mxu0 %v6118_v31 }
 0x686   :  { %5624 = vmatpush1.bf16.msra.mxu0 %v5623_v13 }
 0x71c   :  { %v2065_v44 = vpop.f32.mrb[10].mxu0 }
 0x71d   :  { %2070 = vst [vmem:[#allocation2] sm:$0x1] %v2065_v44  ;;  %v5004_v45 = vpop.f32.mrb[11].mxu0  ;;  %v2903_v44 = vld [vmem:[%s8605_s5 + $0x90] sm:$0xff] }
 0x71e   :  { %v2906_v45 = vld [vmem:[%s8605_s5 + $0xa8] sm:$0xff] }
 0x724   :  { %v2765_v1 = vpop.f32.mrb[12].mxu0 }
 0x725   :  { %v2767_v46 = vpop.f32.mrb[13].mxu0 }
 0x726   :  { %4570 = vmatprep.mubr.msk.f32.mxu0 %vm793_vm8, %v2767_v46  ;;  %v5671_v46 = vpack.c.bf16 %v2903_v44, %v2901_v43  ;;  %v5703_v43 = vpack.c.bf16 %v4626_v39, %v4624_v19  ;;  %v4664_v19 = vld [vmem:[%s8605_s5 + $0x380] sm:$0xff]  ;;  %v4666_v39 = vld [vmem:[%s8605_s5 + $0x390] sm:$0xff] }
 0x727   :  { %2875 = vmatmul.mubr.f32.vlgmr.msra.gmra.mrb[16].mxu0 %v2765_v1  ;;  %v2908_v1 = vld [vmem:[%s8605_s5 + $0xb8] sm:$0xff] }
 0x728   :  { %v2771_v47 = vpop.f32.mrb[14].mxu0 }
 0x729   :  { %v2773_v48 = vpop.f32.mrb[15].mxu0 }
 0x72a   :  { %4571 = vmatprep.mubr.msk.f32.mxu0 %vm793_vm8, %v2773_v48  ;;  %v2905_v48 = vld [vmem:[%s8605_s5 + $0xa0] sm:$0xff] }
 0x72b   :  { %2880 = vmatmul.mubr.f32.gmra.mrb[18].mxu0 %v2771_v47  ;;  %v5673_v47 = vpack.c.bf16 %v2908_v1, %v2906_v45  ;;  %v5675_v53 = vpack.c.bf16 %v2907_v49, %v2905_v48  ;;  %v4628_v45 = vld [vmem:[%s8605_s5 + $0x280] sm:$0xff]  ;;  %v4630_v1 = vld [vmem:[%s8605_s5 + $0x290] sm:$0xff] }
 0x72c   :  { %3550 = vmatprep.mubr.f32.mxu0 %v6117_v7  ;;  %v5707_v48 = vpack.c.bf16 %v4630_v1, %v4628_v45  ;;  %v4668_v45 = vld [vmem:[%s8605_s5 + $0x3a0] sm:$0xff]  ;;  %v4670_v1 = vld [vmem:[%s8605_s5 + $0x3b0] sm:$0xff] }
 0x7fa   :  { %v7794_v61 = vpop.f32.mrb[16].mxu0 }
 0x7fb   :  { %v2878_v20 = vpop.f32.mrb[17].mxu0  ;;  %v2943_v13 = vrot.slane %v7794_v61, 1  ;;  %v3136_v25 = vrot.slane %v7794_v61, 2  ;;  %v3252_v26 = vrot.slane %v7794_v61, 3  ;;  %v3368_v18 = vrot.slane %v7794_v61, 4 }
 0x7fc   :  { %v4611_v20 = vld [vmem:[%s8605_s5 + $0x1f8] sm:$0xff] }
 0x7fd   :  { %v5685_v23 = vpack.c.bf16 %v4611_v20, %v4609_v4  ;;  %v4642_v4 = vld [vmem:[%s8605_s5 + $0x2e0] sm:$0xff]  ;;  %v4644_v20 = vld [vmem:[%s8605_s5 + $0x2f0] sm:$0xff] }
 0x7fe   :  { %v7812_v30 = vpop.f32.mrb[18].mxu0 }
 0x7ff   :  { %v2944_v12 = vrot.slane %v7812_v30, 1  ;;  %v3137_v27 = vrot.slane %v7812_v30, 2  ;;  %v3253_v33 = vrot.slane %v7812_v30, 3  ;;  %v3369_v2 = vrot.slane %v7812_v30, 4  ;;  %v2883_v35 = vpop.f32.mrb[19].mxu0 }
 0x800   :  { %v4612_v35 = vld [vmem:[%s8605_s5 + $0x200] sm:$0xff] }
 0x801   :  { %v2945_v38 = vsel %vm76_vm0, %v2943_v13, %v2944_v12  ;;  %v7834_v22 = vsel %vm288_vm3, %v3136_v25, %v3137_v27  ;;  %v7839_v5 = vsel %vm410_vm4, %v3252_v26, %v3253_v33  ;;  %v7844_v63 = vsel %vm532_vm2, %v3368_v18, %v3369_v2  ;;  %v4610_v13 = vld [vmem:[%s8605_s5 + $0x1f0] sm:$0xff]  ;;  %v4613_v25 = vld [vmem:[%s8605_s5 + $0x208] sm:$0xff]  ;;  %v4615_v26 = vld [vmem:[%s8605_s5 + $0x218] sm:$0xff] }
 0x802   :  { %4600 = vmatmul.mubr.msk.f32.vlgmr.msra.gmra.mrb[22].mxu1 %vm937_vm9, %v2945_v38  ;;  %v5687_v18 = vpack.c.bf16 %v4610_v13, %v4608_v24  ;;  %v4646_v13 = vld [vmem:[%s8605_s5 + $0x300] sm:$0xff] }
 0x803   :  { %5656 = vmatpush1.bf16.msra.mxu1 %v5655_v21  ;;  %3020 = vmatprep.mubr.f32.mxu1 %v6117_v7  ;;  %v5683_v21 = vpack.c.bf16 %v4606_v62, %v4604_v60  ;;  %v5715_v60 = vpack.c.bf16 %v4640_v52, %v4638_v41  ;;  %v4678_v41 = vld [vmem:[%s8605_s5 + $0x3f0] sm:$0xff]  ;;  %v4681_v52 = vld [vmem:[%s8605_s5 + $0x408] sm:$0xff] }
 0x804   :  { %5658 = vmatprep.subr.bf16.mxu1 %v5657_v29  ;;  %v4614_v29 = vld [vmem:[%s8605_s5 + $0x210] sm:$0xff] }
 0x805   :  { %v5691_v37 = vpack.c.bf16 %v4614_v29, %v4612_v35  ;;  %v4650_v35 = vld [vmem:[%s8605_s5 + $0x320] sm:$0xff]  ;;  %v4652_v29 = vld [vmem:[%s8605_s5 + $0x330] sm:$0xff] }
 0x806   :  { %4601 = vmatmul.mubr.msk.f32.gmra.mrb[24].mxu1 %vm937_vm9, %v2944_v12  ;;  %v5689_v12 = vpack.c.bf16 %v4615_v26, %v4613_v25  ;;  %v4648_v25 = vld [vmem:[%s8605_s5 + $0x310] sm:$0xff]  ;;  %v4651_v26 = vld [vmem:[%s8605_s5 + $0x328] sm:$0xff] }
 0x807   :  { %5660 = vmatpush1.bf16.msra.mxu1 %v5659_v6  ;;  %3095 = vmatprep.mubr.f32.mxu1 %v6117_v7  ;;  %v4621_v6 = vld [vmem:[%s8605_s5 + $0x248] sm:$0xff] }
 0x808   :  { %5662 = vmatprep.subr.bf16.mxu1 %v5661_v8  ;;  %v4623_v8 = vld [vmem:[%s8605_s5 + $0x258] sm:$0xff] }
 0x809   :  { %v5697_v0 = vpack.c.bf16 %v4623_v8, %v4621_v6  ;;  %v4659_v6 = vld [vmem:[%s8605_s5 + $0x368] sm:$0xff]  ;;  %v4661_v8 = vld [vmem:[%s8605_s5 + $0x378] sm:$0xff] }
 0x80b   :  { %5664 = vmatpush1.bf16.msra.mxu1 %v5663_v14  ;;  %v4625_v14 = vld [vmem:[%s8605_s5 + $0x268] sm:$0xff] }
 0x80c   :  { %5666 = vmatprep.subr.bf16.mxu1 %v5665_v17  ;;  %v4627_v17 = vld [vmem:[%s8605_s5 + $0x278] sm:$0xff] }
 0x80d   :  { %v5701_v16 = vpack.c.bf16 %v4627_v17, %v4625_v14  ;;  %v4665_v14 = vld [vmem:[%s8605_s5 + $0x388] sm:$0xff]  ;;  %v4667_v17 = vld [vmem:[%s8605_s5 + $0x398] sm:$0xff] }
 0x80f   :  { %5668 = vmatpush1.bf16.msra.mxu1 %v5667_v40  ;;  %v4629_v40 = vld [vmem:[%s8605_s5 + $0x288] sm:$0xff] }
 0x810   :  { %5670 = vmatprep.subr.bf16.mxu1 %v5669_v42  ;;  %v4631_v42 = vld [vmem:[%s8605_s5 + $0x298] sm:$0xff] }
 0x811   :  { %v5705_v44 = vpack.c.bf16 %v4631_v42, %v4629_v40  ;;  %v4669_v40 = vld [vmem:[%s8605_s5 + $0x3a8] sm:$0xff]  ;;  %v4671_v42 = vld [vmem:[%s8605_s5 + $0x3b8] sm:$0xff] }
 0x813   :  { %5672 = vmatpush1.bf16.msra.mxu1 %v5671_v46  ;;  %v4635_v46 = vld [vmem:[%s8605_s5 + $0x2a8] sm:$0xff] }
 0x814   :  { %5674 = vmatprep.subr.bf16.mxu1 %v5673_v47  ;;  %v4637_v47 = vld [vmem:[%s8605_s5 + $0x2b8] sm:$0xff] }
 0x815   :  { %v5709_v49 = vpack.c.bf16 %v4637_v47, %v4635_v46  ;;  %v4673_v46 = vld [vmem:[%s8605_s5 + $0x3c8] sm:$0xff]  ;;  %v4675_v47 = vld [vmem:[%s8605_s5 + $0x3d8] sm:$0xff] }
 0x817   :  { %5676 = vmatpush1.bf16.msra.mxu1 %v5675_v53  ;;  %v4639_v53 = vld [vmem:[%s8605_s5 + $0x2c8] sm:$0xff] }
 0x818   :  { %5678 = vmatprep.subr.bf16.mxu1 %v5677_v57  ;;  %v4641_v57 = vld [vmem:[%s8605_s5 + $0x2d8] sm:$0xff] }
 0x819   :  { %v5713_v59 = vpack.c.bf16 %v4641_v57, %v4639_v53  ;;  %v4677_v53 = vld [vmem:[%s8605_s5 + $0x3e8] sm:$0xff]  ;;  %v5747_v57 = vpack.c.bf16 %v4674_v51, %v4672_v50  ;;  %v3569_v51 = vld [vmem:[%s8608_s8 + $0x60] sm:$0xff] }
 0x81b   :  { %5680 = vmatpush1.bf16.msra.mxu1 %v5679_v56  ;;  %v4643_v56 = vld [vmem:[%s8605_s5 + $0x2e8] sm:$0xff] }
 0x81c   :  { %5682 = vmatprep.subr.bf16.mxu1 %v5681_v3  ;;  %v4645_v3 = vld [vmem:[%s8605_s5 + $0x2f8] sm:$0xff] }
 0x81d   :  { %v5717_v62 = vpack.c.bf16 %v4645_v3, %v4643_v56 }
 0x81e   :  { %4602 = vmatmul.mubr.msk.f32.vlgmr.msra.gmra.mrb[22].mxu1 %vm937_vm9, %v7794_v61  ;;  %v4619_v61 = vld [vmem:[%s8605_s5 + $0x238] sm:$0xff] }
 0x81f   :  { %5684 = vmatpush1.bf16.msra.mxu1 %v5683_v21  ;;  %3101 = vmatprep.mubr.f32.mxu1 %v6117_v7  ;;  %v5693_v38 = vpack.c.bf16 %v4619_v61, %v4617_v32  ;;  %v4647_v21 = vld [vmem:[%s8605_s5 + $0x308] sm:$0xff]  ;;  %v4657_v61 = vld [vmem:[%s8605_s5 + $0x358] sm:$0xff] }
 0x820   :  { %5686 = vmatprep.subr.bf16.mxu1 %v5685_v23  ;;  %v5719_v23 = vpack.c.bf16 %v4644_v20, %v4642_v4  ;;  %v4655_v32 = vld [vmem:[%s8605_s5 + $0x348] sm:$0xff]  ;;  %v4687_v20 = vld [vmem:[%s8605_s5 + $0x438] sm:$0xff] }
 0x821   :  { %v4685_v4 = vld [vmem:[%s8605_s5 + $0x428] sm:$0xff] }
 0x822   :  { %4603 = vmatmul.mubr.msk.f32.gmra.mrb[24].mxu1 %vm937_vm9, %v7812_v30 }
 0x823   :  { %5688 = vmatpush1.bf16.msra.mxu1 %v5687_v18  ;;  %3207 = vmatprep.mubr.f32.mxu1 %v6117_v7  ;;  %v5723_v18 = vpack.c.bf16 %v4648_v25, %v4646_v13  ;;  %v4689_v13 = vld [vmem:[%s8605_s5 + $0x448] sm:$0xff]  ;;  %v4691_v25 = vld [vmem:[%s8605_s5 + $0x458] sm:$0xff] }
 0x824   :  { %5690 = vmatprep.subr.bf16.mxu1 %v5689_v12 }
 0x827   :  { %5692 = vmatpush1.bf16.msra.mxu1 %v5691_v37  ;;  %v5727_v37 = vpack.c.bf16 %v4652_v29, %v4650_v35  ;;  %v3456_v29 = vld [vmem:[%s8606_s6] sm:$0x3] }
 0x828   :  { %5694 = vmatprep.subr.bf16.mxu1 %v5693_v38  ;;  %v5729_v38 = vpack.c.bf16 %v4657_v61, %v4655_v32  ;;  %v3461_v32 = vrot.slane %v3456_v29, %v6429_v34  ;;  %v3465_v61 = vrot.slane %v3456_v29, %v6434_v36  ;;  %v3557_v36 = vld [vmem:[%s8608_s8] sm:$0xff]  ;;  %v4706_v29 = vld [vmem:[%s8609_s9 + $0x90] sm:$0xff] }
 0x82b   :  { %5696 = vmatpush1.bf16.msra.mxu1 %v5695_v9  ;;  %v5731_v9 = vpack.c.bf16 %v4656_v28, %v4654_v55 }
 0x82c   :  { %5698 = vmatprep.subr.bf16.mxu1 %v5697_v0  ;;  %v5733_v0 = vpack.c.bf16 %v4661_v8, %v4659_v6 }
 0x82f   :  { %5700 = vmatpush1.bf16.msra.mxu1 %v5699_v15  ;;  %v5735_v15 = vpack.c.bf16 %v4660_v11, %v4658_v10 }
 0x830   :  { %5702 = vmatprep.subr.bf16.mxu1 %v5701_v16  ;;  %v5737_v16 = vpack.c.bf16 %v4667_v17, %v4665_v14  ;;  %v3558_v14 = vld [vmem:[%s8608_s8 + $0x8] sm:$0xff]  ;;  %v3476_v17 = vld [vmem:[%s8607_s7] sm:$0x1f] }
 0x833   :  { %5704 = vmatpush1.bf16.msra.mxu1 %v5703_v43  ;;  %v5739_v43 = vpack.c.bf16 %v4666_v39, %v4664_v19  ;;  %v3560_v19 = vld [vmem:[%s8608_s8 + $0x18] sm:$0xff]  ;;  %v3561_v39 = vld [vmem:[%s8608_s8 + $0x20] sm:$0xff] }
 0x834   :  { %5706 = vmatprep.subr.bf16.mxu1 %v5705_v44  ;;  %v5741_v44 = vpack.c.bf16 %v4671_v42, %v4669_v40  ;;  %v3562_v40 = vld [vmem:[%s8608_s8 + $0x28] sm:$0xff] }
 0x835   :  { %v5778_v42 = vpack.c.bf16 %v3562_v40, %v3561_v39  ;;  %v3656_v39 = vld [vmem:[%s8609_s9 + $0x30] sm:$0xff]  ;;  %v3657_v40 = vld [vmem:[%s8609_s9 + $0x38] sm:$0xff] }
 0x837   :  { %5708 = vmatpush1.bf16.msra.mxu1 %v5707_v48  ;;  %v5743_v48 = vpack.c.bf16 %v4670_v1, %v4668_v45  ;;  %v3565_v1 = vld [vmem:[%s8608_s8 + $0x40] sm:$0xff] }
 0x838   :  { %5710 = vmatprep.subr.bf16.mxu1 %v5709_v49  ;;  %v5745_v49 = vpack.c.bf16 %v4675_v47, %v4673_v46  ;;  %v3566_v46 = vld [vmem:[%s8608_s8 + $0x48] sm:$0xff] }
 0x839   :  { %v5784_v47 = vpack.c.bf16 %v3566_v46, %v3565_v1  ;;  %v4710_v1 = vld [vmem:[%s8609_s9 + $0xa0] sm:$0xff]  ;;  %v4711_v46 = vld [vmem:[%s8609_s9 + $0xa8] sm:$0xff] }
 0x83a   :  { %4632 = vmatmul.mubr.msk.f32.vlgmr.msra.gmra.mrb[22].mxu1 %vm937_vm9, %v7834_v22  ;;  %v4649_v22 = vld [vmem:[%s8605_s5 + $0x318] sm:$0xff] }
 0x83b   :  { %5712 = vmatpush1.bf16.msra.mxu1 %v5711_v58  ;;  %3213 = vmatprep.mubr.f32.mxu1 %v6117_v7  ;;  %v5721_v24 = vpack.c.bf16 %v4649_v22, %v4647_v21  ;;  %v5757_v22 = vpack.c.bf16 %v4687_v20, %v4685_v4  ;;  %v4699_v4 = vld [vmem:[%s8609_s9 + $0x58] sm:$0xff] }
 0x83c   :  { %5714 = vmatprep.subr.bf16.mxu1 %v5713_v59  ;;  %v4676_v59 = vld [vmem:[%s8605_s5 + $0x3e0] sm:$0xff] }
 0x83d   :  { %v5751_v56 = vpack.c.bf16 %v4678_v41, %v4676_v59  ;;  %v3573_v41 = vld [vmem:[%s8608_s8 + $0x80] sm:$0xff] }
 0x83e   :  { %4633 = vmatmul.mubr.msk.f32.gmra.mrb[24].mxu1 %vm937_vm9, %v3137_v27  ;;  %v4653_v27 = vld [vmem:[%s8605_s5 + $0x338] sm:$0xff] }
 0x83f   :  { %5716 = vmatpush1.bf16.msra.mxu1 %v5715_v60  ;;  %3323 = vmatprep.mubr.f32.mxu1 %v6117_v7  ;;  %v5725_v12 = vpack.c.bf16 %v4653_v27, %v4651_v26  ;;  %v4680_v60 = vld [vmem:[%s8605_s5 + $0x400] sm:$0xff]  ;;  %v5761_v27 = vpack.c.bf16 %v4691_v25, %v4689_v13  ;;  %v4702_v25 = vld [vmem:[%s8609_s9 + $0x70] sm:$0xff] }
 0x840   :  { %5718 = vmatprep.subr.bf16.mxu1 %v5717_v62  ;;  %v4682_v62 = vld [vmem:[%s8605_s5 + $0x410] sm:$0xff] }
 0x841   :  { %v5755_v21 = vpack.c.bf16 %v4682_v62, %v4680_v60  ;;  %v4698_v62 = vld [vmem:[%s8609_s9 + $0x50] sm:$0xff] }
 0x843   :  { %5720 = vmatpush1.bf16.msra.mxu1 %v5719_v23  ;;  %v4684_v23 = vld [vmem:[%s8605_s5 + $0x420] sm:$0xff] }
 0x844   :  { %5722 = vmatprep.subr.bf16.mxu1 %v5721_v24  ;;  %v4686_v24 = vld [vmem:[%s8605_s5 + $0x430] sm:$0xff] }
 0x845   :  { %v5759_v26 = vpack.c.bf16 %v4686_v24, %v4684_v23  ;;  %v4700_v23 = vld [vmem:[%s8609_s9 + $0x60] sm:$0xff]  ;;  %v4701_v24 = vld [vmem:[%s8609_s9 + $0x68] sm:$0xff] }
 0x846   :  { %v5805_v13 = vpack.c.bf16 %v4701_v24, %v4700_v23  ;;  %v4726_v23 = vld [vmem:[%s8609_s9 + $0x118] sm:$0xff] }
 0x847   :  { %5724 = vmatpush1.bf16.msra.mxu1 %v5723_v18  ;;  %v4688_v18 = vld [vmem:[%s8605_s5 + $0x440] sm:$0xff] }
 0x848   :  { %5726 = vmatprep.subr.bf16.mxu1 %v5725_v12  ;;  %v4690_v12 = vld [vmem:[%s8605_s5 + $0x450] sm:$0xff] }
 0x849   :  { %v5763_v35 = vpack.c.bf16 %v4690_v12, %v4688_v18  ;;  %v4704_v18 = vld [vmem:[%s8609_s9 + $0x80] sm:$0xff]  ;;  %v4705_v12 = vld [vmem:[%s8609_s9 + $0x88] sm:$0xff] }
 0x84b   :  { %5728 = vmatpush1.bf16.msra.mxu1 %v5727_v37 }
 0x84c   :  { %5730 = vmatprep.subr.bf16.mxu1 %v5729_v38 }
 0x84f   :  { %5732 = vmatpush1.bf16.msra.mxu1 %v5731_v9 }
 0x850   :  { %5734 = vmatprep.subr.bf16.mxu1 %v5733_v0 }
 0x853   :  { %5736 = vmatpush1.bf16.msra.mxu1 %v5735_v15  ;;  %v5772_v15 = vpack.c.bf16 %v3558_v14, %v3557_v36  ;;  %v3652_v14 = vld [vmem:[%s8609_s9 + $0x10] sm:$0xff] }
 0x854   :  { %5738 = vmatprep.subr.bf16.mxu1 %v5737_v16  ;;  %v3559_v16 = vld [vmem:[%s8608_s8 + $0x10] sm:$0xff] }
 0x855   :  { %v5775_v54 = vpack.c.bf16 %v3560_v19, %v3559_v16  ;;  %v3654_v16 = vld [vmem:[%s8609_s9 + $0x20] sm:$0xff]  ;;  %v3655_v19 = vld [vmem:[%s8609_s9 + $0x28] sm:$0xff] }
 0x856   :  { %4662 = vmatmul.mubr.msk.f32.vlgmr.msra.gmra.mrb[22].mxu1 %vm937_vm9, %v7839_v5  ;;  %v4679_v5 = vld [vmem:[%s8605_s5 + $0x3f8] sm:$0xff] }
 0x857   :  { %5740 = vmatpush1.bf16.msra.mxu1 %v5739_v43  ;;  %3329 = vmatprep.mubr.f32.mxu1 %v6117_v7  ;;  %v5749_v58 = vpack.c.bf16 %v4679_v5, %v4677_v53  ;;  %v3563_v43 = vld [vmem:[%s8608_s8 + $0x30] sm:$0xff]  ;;  %v3570_v53 = vld [vmem:[%s8608_s8 + $0x68] sm:$0xff] }
 0x858   :  { %5742 = vmatprep.subr.bf16.mxu1 %v5741_v44  ;;  %v3564_v44 = vld [vmem:[%s8608_s8 + $0x38] sm:$0xff]  ;;  %v5790_v5 = vpack.c.bf16 %v3570_v53, %v3569_v51  ;;  %v4714_v51 = vld [vmem:[%s8609_s9 + $0xc0] sm:$0xff]  ;;  %v4715_v53 = vld [vmem:[%s8609_s9 + $0xc8] sm:$0xff] }
 0x859   :  { %v5781_v45 = vpack.c.bf16 %v3564_v44, %v3563_v43  ;;  %v3658_v43 = vld [vmem:[%s8609_s9 + $0x40] sm:$0xff]  ;;  %v3659_v44 = vld [vmem:[%s8609_s9 + $0x48] sm:$0xff] }
 0x85a   :  { %4663 = vmatmul.mubr.msk.f32.gmra.mrb[24].mxu1 %vm937_vm9, %v3253_v33  ;;  %v4683_v33 = vld [vmem:[%s8605_s5 + $0x418] sm:$0xff] }
 0x85b   :  { %5744 = vmatpush1.bf16.msra.mxu1 %v5743_v48  ;;  %3439 = vmatprep.mubr.f32.mxu1 %v6117_v7  ;;  %v5753_v3 = vpack.c.bf16 %v4683_v33, %v4681_v52  ;;  %v3567_v48 = vld [vmem:[%s8608_s8 + $0x50] sm:$0xff]  ;;  %v3574_v52 = vld [vmem:[%s8608_s8 + $0x88] sm:$0xff] }
 0x85c   :  { %5746 = vmatprep.subr.bf16.mxu1 %v5745_v49  ;;  %v3568_v49 = vld [vmem:[%s8608_s8 + $0x58] sm:$0xff]  ;;  %v5796_v33 = vpack.c.bf16 %v3574_v52, %v3573_v41  ;;  %v4718_v41 = vld [vmem:[%s8609_s9 + $0xe0] sm:$0xff]  ;;  %v4719_v52 = vld [vmem:[%s8609_s9 + $0xe8] sm:$0xff] }
 0x85d   :  { %v5787_v50 = vpack.c.bf16 %v3568_v49, %v3567_v48  ;;  %v4712_v48 = vld [vmem:[%s8609_s9 + $0xb0] sm:$0xff]  ;;  %v4713_v49 = vld [vmem:[%s8609_s9 + $0xb8] sm:$0xff] }
 0x85f   :  { %5748 = vmatpush1.bf16.msra.mxu1 %v5747_v57  ;;  %v3571_v57 = vld [vmem:[%s8608_s8 + $0x70] sm:$0xff] }
 0x860   :  { %5750 = vmatprep.subr.bf16.mxu1 %v5749_v58  ;;  %v3572_v58 = vld [vmem:[%s8608_s8 + $0x78] sm:$0xff] }
 0x861   :  { %v5793_v59 = vpack.c.bf16 %v3572_v58, %v3571_v57  ;;  %v4716_v57 = vld [vmem:[%s8609_s9 + $0xd0] sm:$0xff]  ;;  %v4717_v58 = vld [vmem:[%s8609_s9 + $0xd8] sm:$0xff] }
 0x863   :  { %5752 = vmatpush1.bf16.msra.mxu1 %v5751_v56  ;;  %v3575_v56 = vld [vmem:[%s8608_s8 + $0x90] sm:$0xff] }
 0x864   :  { %5754 = vmatprep.subr.bf16.mxu1 %v5753_v3  ;;  %v3576_v3 = vld [vmem:[%s8608_s8 + $0x98] sm:$0xff] }
 0x865   :  { %v5799_v60 = vpack.c.bf16 %v3576_v3, %v3575_v56  ;;  %v4721_v56 = vld [vmem:[%s8609_s9 + $0xf0] sm:$0xff]  ;;  %v4722_v3 = vld [vmem:[%s8609_s9 + $0xf8] sm:$0xff] }
 0x867   :  { %5756 = vmatpush1.bf16.msra.mxu1 %v5755_v21  ;;  %v5802_v21 = vpack.c.bf16 %v4699_v4, %v4698_v62  ;;  %v4723_v4 = vld [vmem:[%s8609_s9 + $0x100] sm:$0xff] }
 0x868   :  { %5758 = vmatprep.subr.bf16.mxu1 %v5757_v22 }
 0x86b   :  { %5760 = vmatpush1.bf16.msra.mxu1 %v5759_v26  ;;  %v4703_v26 = vld [vmem:[%s8609_s9 + $0x78] sm:$0xff] }
 0x86c   :  { %5762 = vmatprep.subr.bf16.mxu1 %v5761_v27  ;;  %v5808_v27 = vpack.c.bf16 %v4703_v26, %v4702_v25  ;;  %v4728_v25 = vld [vmem:[%s8609_s9 + $0x128] sm:$0xff] }
 0x86f   :  { %5764 = vmatpush1.bf16.msra.mxu1 %v5763_v35  ;;  %v5811_v35 = vpack.c.bf16 %v4705_v12, %v4704_v18  ;;  %v4730_v18 = vld [vmem:[%s8609_s9 + $0x138] sm:$0xff] }
 0x870   :  { %5876 = vmatprep.subr.bf16.mxu1 %v6118_v31 }
 0x872   :  { %4692 = vmatmul.mubr.msk.f32.vlgmr.msra.gmra.mrb[22].mxu1 %vm937_vm9, %v7844_v63 }
 0x873   :  { %3445 = vmatprep.mubr.f32.mxu1 %v6117_v7 }
 0x876   :  { %4693 = vmatmul.mubr.msk.f32.gmra.mrb[24].mxu1 %vm937_vm9, %v3369_v2 }
 0x877   :  { %5152 = vmatprep.mubr.msk.f32.mxu1 %vm6120_vm13, %v6117_v7 }
 0x945   :  { %v3441_v37 = vpop.f32.mrb[22].mxu1 }
 0x946   :  { %v3468_v38 = vadd.f32 %v3461_v32, %v3441_v37  ;;  %v3443_v63 = vpop.f32.mrb[23].mxu1  ;;  %v4079_v37 = vld [vmem:[%s8611_s11] sm:$0xff] }
 0x947   :  { %v3469_v55 = vadd.f32 %v3465_v61, %v3443_v63  ;;  %v4081_v63 = vld [vmem:[%s8611_s11 + $0x10] sm:$0xff] }
 0x948   :  { %6081 = vtanh.f32 %v3468_v38  ;;  %v4080_v38 = vld [vmem:[%s8611_s11 + $0x8] sm:$0xff] }
 0x949   :  { %v3447_v28 = vpop.f32.mrb[24].mxu1  ;;  %6083 = vtanh.f32 %v3469_v55  ;;  %v5877_v55 = vpack.c.bf16 %v4080_v38, %v4079_v37  ;;  %v4734_v37 = vld [vmem:[%s8609_s9 + $0x150] sm:$0xff]  ;;  %v4735_v38 = vld [vmem:[%s8609_s9 + $0x158] sm:$0xff] }
 0x94a   :  { %v3470_v30 = vadd.f32 %v3461_v32, %v3447_v28  ;;  %v3449_v6 = vpop.f32.mrb[25].mxu1  ;;  %v4707_v32 = vld [vmem:[%s8609_s9 + $0x98] sm:$0xff] }
 0x94b   :  { %v3471_v2 = vadd.f32 %v3465_v61, %v3449_v6  ;;  %v5814_v61 = vpack.c.bf16 %v4707_v32, %v4706_v29  ;;  %v4082_v28 = vld [vmem:[%s8611_s11 + $0x18] sm:$0xff]  ;;  %5878 = vmatpush3.bf16.msra.mxu1 %v5877_v55  ;;  %v4083_v6 = vld [vmem:[%s8611_s11 + $0x20] sm:$0xff]  ;;  %v4733_v29 = vld [vmem:[%s8609_s9 + $0x148] sm:$0xff] }
 0x94c   :  { %6085 = vtanh.f32 %v3470_v30  ;;  %v5880_v30 = vpack.c.bf16 %v4082_v28, %v4081_v63  ;;  %5879 = vmatprep.subr.bf16.mxu1 %v6118_v31  ;;  %v5865_v63 = vpack.c.bf16 %v4735_v38, %v4734_v37  ;;  %v4736_v55 = vld [vmem:[%s8609_s9 + $0x160] sm:$0xff]  ;;  %v4737_v28 = vld [vmem:[%s8609_s9 + $0x168] sm:$0xff] }
 0x94d   :  { %6087 = vtanh.f32 %v3471_v2  ;;  %v4084_v2 = vld [vmem:[%s8611_s11 + $0x28] sm:$0xff]  ;;  %v4745_v37 = vld [vmem:[%s8614_s14] ss:$0 sm:$0xff] }
 0x94f   :  { %5881 = vmatpush3.bf16.msra.mxu1 %v5880_v30  ;;  %v5868_v30 = vpack.c.bf16 %v4737_v28, %v4736_v55 }
 0x950   :  { %5882 = vmatprep.subr.bf16.mxu1 %v6118_v31 }
 0x952   :  { %v6082_v8 = vpop.eup %6081 }
 0x953   :  { %v6084_v9 = vpop.eup %6083 }
 0x956   :  { %v6086_v0 = vpop.eup %6085 }
 0x957   :  { %v6088_v10 = vpop.eup %6087  ;;  %v5768_v11 = vpack.c.bf16 %v6086_v0, %v6082_v8  ;;  %v5883_v8 = vpack.c.bf16 %v4084_v2, %v4083_v6  ;;  %v3651_v0 = vld [vmem:[%s8609_s9 + $0x8] sm:$0xff]  ;;  %v4738_v6 = vld [vmem:[%s8609_s9 + $0x170] sm:$0xff]  ;;  %v4739_v2 = vld [vmem:[%s8609_s9 + $0x178] sm:$0xff] }
 0x958   :  { %v5765_v34 = vpack.c.bf16 %v6088_v10, %v6084_v9  ;;  %v3650_v9 = vld [vmem:[%s8609_s9] sm:$0xff] }
 0x959   :  { %5884 = vmatpush3.bf16.msra.mxu1 %v5883_v8  ;;  %v5871_v8 = vpack.c.bf16 %v4739_v2, %v4738_v6 }
 0x95a   :  { %5767 = vmatprep.subr.msk.bf16.mxu0 %vm7147_vm11, %v5765_v34  ;;  %5885 = vmatprep.subr.bf16.mxu1 %v6118_v31 }
 0x95b   :  { %5770 = vmatpush1.bf16.msk.msra.mxu0 %vm7147_vm11, %v5768_v11  ;;  %v5817_v11 = vpack.c.bf16 %v3651_v0, %v3650_v9  ;;  %v4740_v9 = vld [vmem:[%s8609_s9 + $0x180] sm:$0xff]  ;;  %v4741_v0 = vld [vmem:[%s8609_s9 + $0x188] sm:$0xff] }
 0x95c   :  { %5771 = vmatprep.subr.bf16.mxu0 %v6118_v31 }
 0x95e   :  { %4696 = vmatmul.mubr.msk.f32.vlgmr.msra.gmra.mrb[20].mxu0 %vm1472_vm12, %v3476_v17  ;;  %v3653_v17 = vld [vmem:[%s8609_s9 + $0x18] sm:$0xff] }
 0x95f   :  { %5773 = vmatpush1.bf16.msra.mxu0 %v5772_v15  ;;  %v5820_v15 = vpack.c.bf16 %v3653_v17, %v3652_v14  ;;  %v4086_v14 = vld [vmem:[%s8611_s11 + $0x38] sm:$0xff] }
 0x960   :  { %5774 = vmatprep.subr.bf16.mxu0 %v6118_v31 }
 0x963   :  { %5776 = vmatpush1.bf16.msra.mxu0 %v5775_v54  ;;  %v5823_v54 = vpack.c.bf16 %v3655_v19, %v3654_v16  ;;  %v4089_v16 = vld [vmem:[%s8611_s11 + $0x50] sm:$0xff]  ;;  %v4090_v19 = vld [vmem:[%s8611_s11 + $0x58] sm:$0xff] }
 0x964   :  { %5777 = vmatprep.subr.bf16.mxu0 %v6118_v31 }
 0x967   :  { %5779 = vmatpush1.bf16.msra.mxu0 %v5778_v42  ;;  %v5826_v42 = vpack.c.bf16 %v3657_v40, %v3656_v39  ;;  %v4091_v39 = vld [vmem:[%s8611_s11 + $0x60] sm:$0xff]  ;;  %v4092_v40 = vld [vmem:[%s8611_s11 + $0x68] sm:$0xff] }
 0x968   :  { %5780 = vmatprep.subr.bf16.mxu0 %v6118_v31 }
 0x96b   :  { %5782 = vmatpush1.bf16.msra.mxu0 %v5781_v45  ;;  %v5829_v45 = vpack.c.bf16 %v3659_v44, %v3658_v43  ;;  %v4093_v43 = vld [vmem:[%s8611_s11 + $0x70] sm:$0xff]  ;;  %v4094_v44 = vld [vmem:[%s8611_s11 + $0x78] sm:$0xff] }
 0x96c   :  { %5783 = vmatprep.subr.bf16.mxu0 %v6118_v31 }
 0x96f   :  { %5785 = vmatpush1.bf16.msra.mxu0 %v5784_v47  ;;  %v5832_v47 = vpack.c.bf16 %v4711_v46, %v4710_v1  ;;  %v4173_v1 = vld [vmem:[%s8613_s13] sm:$0xff]  ;;  %v4174_v46 = vld [vmem:[%s8613_s13 + $0x8] sm:$0xff] }
 0x970   :  { %5786 = vmatprep.subr.bf16.mxu0 %v6118_v31 }
 0x973   :  { %5788 = vmatpush1.bf16.msra.mxu0 %v5787_v50  ;;  %v5835_v50 = vpack.c.bf16 %v4713_v49, %v4712_v48  ;;  %v5901_v48 = vpack.c.bf16 %v4174_v46, %v4173_v1  ;;  %v4176_v49 = vld [vmem:[%s8613_s13 + $0x18] sm:$0xff] }
 0x974   :  { %5789 = vmatprep.subr.bf16.mxu0 %v6118_v31 }
 0x977   :  { %5791 = vmatpush1.bf16.msra.mxu0 %v5790_v5  ;;  %v5838_v5 = vpack.c.bf16 %v4715_v53, %v4714_v51  ;;  %v4177_v51 = vld [vmem:[%s8613_s13 + $0x20] sm:$0xff]  ;;  %v4178_v53 = vld [vmem:[%s8613_s13 + $0x28] sm:$0xff] }
 0x978   :  { %5792 = vmatprep.subr.bf16.mxu0 %v6118_v31 }
 0x97b   :  { %5794 = vmatpush1.bf16.msra.mxu0 %v5793_v59  ;;  %v5841_v59 = vpack.c.bf16 %v4717_v58, %v4716_v57  ;;  %v4179_v57 = vld [vmem:[%s8613_s13 + $0x30] sm:$0xff]  ;;  %v4180_v58 = vld [vmem:[%s8613_s13 + $0x38] sm:$0xff] }
 0x97c   :  { %5795 = vmatprep.subr.bf16.mxu0 %v6118_v31 }
 0x97f   :  { %5797 = vmatpush1.bf16.msra.mxu0 %v5796_v33  ;;  %v5844_v33 = vpack.c.bf16 %v4719_v52, %v4718_v41  ;;  %v4181_v41 = vld [vmem:[%s8613_s13 + $0x40] sm:$0xff]  ;;  %v4182_v52 = vld [vmem:[%s8613_s13 + $0x48] sm:$0xff] }
 0x980   :  { %5798 = vmatprep.subr.bf16.mxu0 %v6118_v31 }
 0x983   :  { %5800 = vmatpush1.bf16.msra.mxu0 %v5799_v60  ;;  %v5847_v60 = vpack.c.bf16 %v4722_v3, %v4721_v56 }
 0x984   :  { %5801 = vmatprep.subr.bf16.mxu0 %v6118_v31 }
 0xa31   :  { %v3552_v20 = vpop.f32.mrb[20].mxu0 }
 0xa32   :  { %v3554_v22 = vpop.f32.mrb[21].mxu0 }
 0xa33   :  { %4697 = vmatprep.mubr.msk.f32.mxu0 %vm84_vm1, %v3554_v22  ;;  %v4725_v22 = vld [vmem:[%s8609_s9 + $0x110] sm:$0xff] }
 0xa34   :  { %3645 = vmatmul.mubr.f32.vlgmr.msra.gmra.mrb[22].mxu0 %v3552_v20  ;;  %v4724_v20 = vld [vmem:[%s8609_s9 + $0x108] sm:$0xff]  ;;  %v5853_v24 = vpack.c.bf16 %v4726_v23, %v4725_v22  ;;  %v4184_v22 = vld [vmem:[%s8613_s13 + $0x58] sm:$0xff] }
 0xa35   :  { %5803 = vmatpush3.bf16.msra.mxu0 %v5802_v21  ;;  %5025 = vmatprep.mubr.msk.f32.mxu0 %vm6120_vm13, %v6117_v7  ;;  %v5850_v21 = vpack.c.bf16 %v4724_v20, %v4723_v4 }
 0xa36   :  { %5804 = vmatprep.subr.bf16.mxu0 %v6118_v31 }
 0xa39   :  { %5806 = vmatpush3.bf16.msra.mxu0 %v5805_v13  ;;  %v4727_v13 = vld [vmem:[%s8609_s9 + $0x120] sm:$0xff] }
 0xa3a   :  { %5807 = vmatprep.subr.bf16.mxu0 %v6118_v31  ;;  %v5856_v26 = vpack.c.bf16 %v4728_v25, %v4727_v13  ;;  %v4186_v13 = vld [vmem:[%s8613_s13 + $0x68] sm:$0xff] }
 0xa3d   :  { %5809 = vmatpush3.bf16.msra.mxu0 %v5808_v27  ;;  %v4729_v27 = vld [vmem:[%s8609_s9 + $0x130] sm:$0xff] }
 0xa3e   :  { %5810 = vmatprep.subr.bf16.mxu0 %v6118_v31  ;;  %v5859_v12 = vpack.c.bf16 %v4730_v18, %v4729_v27  ;;  %v4188_v27 = vld [vmem:[%s8613_s13 + $0x78] sm:$0xff] }
 0xa41   :  { %5812 = vmatpush3.bf16.msra.mxu0 %v5811_v35  ;;  %v4732_v35 = vld [vmem:[%s8609_s9 + $0x140] sm:$0xff] }
 0xa42   :  { %5813 = vmatprep.subr.bf16.mxu0 %v6118_v31  ;;  %v5862_v32 = vpack.c.bf16 %v4733_v29, %v4732_v35 }
 0xa45   :  { %5815 = vmatpush3.bf16.msra.mxu0 %v5814_v61 }
 0xa46   :  { %5816 = vmatprep.subr.bf16.mxu0 %v6118_v31 }
 0xb07   :  { %v8334_v10 = vpop.f32.mrb[22].mxu0 }
 0xb08   :  { %v3671_v34 = vrot.slane %v8334_v10, 1  ;;  %v3648_v36 = vpop.f32.mrb[23].mxu0  ;;  %v3826_v62 = vrot.slane %v8334_v10, 2  ;;  %v3910_v61 = vrot.slane %v8334_v10, 3 }
 0xb09   :  { %v4085_v36 = vld [vmem:[%s8611_s11 + $0x30] sm:$0xff] }
 0xb0a   :  { %5026 = vmatmul.mubr.msk.f32.vlgmr.msra.gmra.mrb[24].mxu0 %vm1670_vm14, %v3671_v34  ;;  %v3994_v34 = vrot.slane %v8334_v10, 4  ;;  %v5886_v17 = vpack.c.bf16 %v4086_v14, %v4085_v36 }
 0xb0b   :  { %5818 = vmatpush3.bf16.msra.mxu0 %v5817_v11  ;;  %5048 = vmatprep.mubr.msk.f32.mxu0 %vm6120_vm13, %v6117_v7  ;;  %v5874_v11 = vpack.c.bf16 %v4741_v0, %v4740_v9 }
 0xb0c   :  { %5819 = vmatprep.subr.bf16.mxu0 %v6118_v31  ;;  %5887 = vmatpush3.bf16.msra.mxu1 %v5886_v17 }
 0xb0d   :  { %5888 = vmatprep.subr.bf16.mxu1 %v6118_v31 }
 0xb0f   :  { %5821 = vmatpush3.bf16.msra.mxu0 %v5820_v15 }
 0xb10   :  { %5822 = vmatprep.subr.bf16.mxu0 %v6118_v31 }
 0xb13   :  { %5824 = vmatpush3.bf16.msra.mxu0 %v5823_v54  ;;  %v5892_v54 = vpack.c.bf16 %v4090_v19, %v4089_v16 }
 0xb14   :  { %5825 = vmatprep.subr.bf16.mxu0 %v6118_v31 }
 0xb17   :  { %5827 = vmatpush3.bf16.msra.mxu0 %v5826_v42  ;;  %v5895_v42 = vpack.c.bf16 %v4092_v40, %v4091_v39 }
 0xb18   :  { %5828 = vmatprep.subr.bf16.mxu0 %v6118_v31 }
 0xb1b   :  { %5830 = vmatpush3.bf16.msra.mxu0 %v5829_v45  ;;  %v5898_v45 = vpack.c.bf16 %v4094_v44, %v4093_v43 }
 0xb1c   :  { %5831 = vmatprep.subr.bf16.mxu0 %v6118_v31 }
 0xb1e   :  { %5049 = vmatmul.mubr.msk.f32.vlgmr.msra.gmra.mrb[24].mxu0 %vm1670_vm14, %v8334_v10  ;;  %v4087_v10 = vld [vmem:[%s8611_s11 + $0x40] sm:$0xff] }
 0xb1f   :  { %5833 = vmatpush3.bf16.msra.mxu0 %v5832_v47  ;;  %5071 = vmatprep.mubr.msk.f32.mxu0 %vm6120_vm13, %v6117_v7  ;;  %v4175_v47 = vld [vmem:[%s8613_s13 + $0x10] sm:$0xff] }
 0xb20   :  { %5834 = vmatprep.subr.bf16.mxu0 %v6118_v31 }
 0xb23   :  { %5836 = vmatpush3.bf16.msra.mxu0 %v5835_v50  ;;  %v5904_v50 = vpack.c.bf16 %v4176_v49, %v4175_v47 }
 0xb24   :  { %5837 = vmatprep.subr.bf16.mxu0 %v6118_v31 }
 0xb27   :  { %5839 = vmatpush3.bf16.msra.mxu0 %v5838_v5  ;;  %v5907_v5 = vpack.c.bf16 %v4178_v53, %v4177_v51 }
 0xb28   :  { %5840 = vmatprep.subr.bf16.mxu0 %v6118_v31 }
 0xb2b   :  { %5842 = vmatpush3.bf16.msra.mxu0 %v5841_v59  ;;  %v5910_v59 = vpack.c.bf16 %v4180_v58, %v4179_v57 }
 0xb2c   :  { %5843 = vmatprep.subr.bf16.mxu0 %v6118_v31 }
 0xb2f   :  { %5845 = vmatpush3.bf16.msra.mxu0 %v5844_v33  ;;  %v5913_v33 = vpack.c.bf16 %v4182_v52, %v4181_v41 }
 0xb30   :  { %5846 = vmatprep.subr.bf16.mxu0 %v6118_v31 }
 0xb32   :  { %5072 = vmatmul.mubr.msk.f32.vlgmr.msra.gmra.mrb[24].mxu0 %vm1670_vm14, %v3826_v62 }
 0xb33   :  { %5848 = vmatpush3.bf16.msra.mxu0 %v5847_v60  ;;  %5094 = vmatprep.mubr.msk.f32.mxu0 %vm6120_vm13, %v6117_v7  ;;  %v4743_v60 = vld [vmem:[%s8610_s10] ss:$0 sm:$0xff] }
 0xb34   :  { %5849 = vmatprep.subr.bf16.mxu0 %v6118_v31 }
 0xb37   :  { %5851 = vmatpush3.bf16.msra.mxu0 %v5850_v21  ;;  %v4183_v21 = vld [vmem:[%s8613_s13 + $0x50] sm:$0xff] }
 0xb38   :  { %5852 = vmatprep.subr.bf16.mxu0 %v6118_v31  ;;  %v5916_v23 = vpack.c.bf16 %v4184_v22, %v4183_v21 }
 0xb3b   :  { %5854 = vmatpush3.bf16.msra.mxu0 %v5853_v24  ;;  %v4185_v24 = vld [vmem:[%s8613_s13 + $0x60] sm:$0xff] }
 0xb3c   :  { %5855 = vmatprep.subr.bf16.mxu0 %v6118_v31  ;;  %v5919_v25 = vpack.c.bf16 %v4186_v13, %v4185_v24 }
 0xb3f   :  { %5857 = vmatpush3.bf16.msra.mxu0 %v5856_v26  ;;  %v4187_v26 = vld [vmem:[%s8613_s13 + $0x70] sm:$0xff]  ;;  %s6121_s13 = smov [#allocation3]  }
 0xb40   :  { %5858 = vmatprep.subr.bf16.mxu0 %v6118_v31  ;;  %v5922_v18 = vpack.c.bf16 %v4188_v27, %v4187_v26  ;;  %s4273_s27 = sshll.u32 %s6121_s13, 4  ;;  %s4274_s27 = int_to_ptr.vmem [resolvable:$true] %s4273_s27 }
 0xb41   :  { %s6093_s3 = scalar_lea.vmem %s4274_s27, 32  ;;  %p6098_p1 = scmp.lt.s32.totalorder %s4274_s27, %s4274_s27 }
 0xb42   :  { %p6094_p0 = scmp.ne.s32.totalorder %s4274_s27, %s6093_s3  ;;  %p6099_p2 = scmp.lt.s32.totalorder %s6093_s3, %s6093_s3 }
 0xb43   :  { %5860 = vmatpush3.bf16.msra.mxu0 %v5859_v12  ;;  %v4744_v12 = vld [vmem:[%s8612_s12] ss:$0 sm:$0xff] }
 0xb44   :  { %5861 = vmatprep.subr.bf16.mxu0 %v6118_v31  ;;  %p6100_p3 = por %p6099_p2, %p6098_p1 }
 0xb46   :  { %5095 = vmatmul.mubr.msk.f32.vlgmr.msra.gmra.mrb[24].mxu0 %vm1670_vm14, %v3910_v61  ;;  %p6101_p4 = pnand %p6100_p3, %p6094_p0 }
 0xb47   :  { %5863 = vmatpush3.bf16.msra.mxu0 %v5862_v32  ;;  %5117 = vmatprep.mubr.msk.f32.mxu0 %vm6120_vm13, %v6117_v7 }
 0xb48   :  { %5864 = vmatprep.subr.bf16.mxu0 %v6118_v31 }
 0xb4b   :  { %5866 = vmatpush3.bf16.msra.mxu0 %v5865_v63 }
 0xb4c   :  { %5867 = vmatprep.subr.bf16.mxu0 %v6118_v31 }
 0xb4f   :  { %5869 = vmatpush3.bf16.msra.mxu0 %v5868_v30 }
 0xb50   :  { %5870 = vmatprep.subr.bf16.mxu0 %v6118_v31 }
 0xb53   :  { %5872 = vmatpush3.bf16.msra.mxu0 %v5871_v8 }
 0xb54   :  { %5873 = vmatprep.subr.bf16.mxu0 %v6118_v31 }
 0xb57   :  { %5875 = vmatpush3.bf16.msra.mxu0 %v5874_v11 }
 0xb58   :  { %5900 = vmatprep.subr.bf16.mxu0 %v6118_v31 }
 0xb5a   :  { %5118 = vmatmul.mubr.msk.f32.vlgmr.msra.gmra.mrb[24].mxu0 %vm1670_vm14, %v3994_v34 }
 0xb5b   :  { %5187 = vmatprep.mubr.msk.f32.mxu0 %vm6120_vm13, %v6117_v7  ;;  %v4088_v7 = vld [vmem:[%s8611_s11 + $0x48] sm:$0xff]  ;;  %5902 = vmatpush3.bf16.msra.mxu0 %v5901_v48 }
 0xb5c   :  { %v5889_v15 = vpack.c.bf16 %v4088_v7, %v4087_v10  ;;  %5903 = vmatprep.subr.bf16.mxu0 %v6118_v31 }
 0xb5e   :  { %5890 = vmatpush3.bf16.msra.mxu1 %v5889_v15 }
 0xb5f   :  { %5891 = vmatprep.subr.bf16.mxu1 %v6118_v31  ;;  %5905 = vmatpush3.bf16.msra.mxu0 %v5904_v50 }
 0xb60   :  { %5906 = vmatprep.subr.bf16.mxu0 %v6118_v31 }
 0xb62   :  { %5893 = vmatpush3.bf16.msra.mxu1 %v5892_v54 }
 0xb63   :  { %5894 = vmatprep.subr.bf16.mxu1 %v6118_v31  ;;  %5908 = vmatpush3.bf16.msra.mxu0 %v5907_v5 }
 0xb64   :  { %5909 = vmatprep.subr.bf16.mxu0 %v6118_v31 }
 0xb66   :  { %5896 = vmatpush3.bf16.msra.mxu1 %v5895_v42 }
 0xb67   :  { %5897 = vmatprep.subr.bf16.mxu1 %v6118_v31  ;;  %5911 = vmatpush3.bf16.msra.mxu0 %v5910_v59 }
 0xb68   :  { %5912 = vmatprep.subr.bf16.mxu0 %v6118_v31 }
 0xb6a   :  { %5899 = vmatpush3.bf16.msra.mxu1 %v5898_v45 }
 0xb6b   :  { %5914 = vmatpush3.bf16.msra.mxu0 %v5913_v33 }
 0xb6c   :  { %5915 = vmatprep.subr.bf16.mxu0 %v6118_v31 }
 0xb6f   :  { %5917 = vmatpush3.bf16.msra.mxu0 %v5916_v23 }
 0xb70   :  { %5918 = vmatprep.subr.bf16.mxu0 %v6118_v31 }
 0xb73   :  { %5920 = vmatpush3.bf16.msra.mxu0 %v5919_v25 }
 0xb74   :  { %5921 = vmatprep.subr.bf16.mxu0 %v6118_v31 }
 0xb77   :  { %5923 = vmatpush3.bf16.msra.mxu0 %v5922_v18 }
 0xc2d   :  { %v4063_v56 = vpop.f32.mrb[24].mxu0 }
 0xc2e   :  { %4068 = vst [vmem:[#allocation2 + $0x1] sm:$0x1] %v4063_v56  ;;  %v5119_v3 = vpop.f32.mrb[25].mxu0 }
 0xc35   :  { %v4069_v62 = vld [vmem:[#allocation2] sm:$0x3] }
 0xc36   :  { %v4077_v4 = vadd.f32 %v4743_v60, %v4069_v62 }
 0xc38   :  { %6089 = vtanh.f32 %v4077_v4 }
 0xc42   :  { %v6090_v20 = vpop.eup %6089 }
 0xc43   :  { %5153 = vmatmul.mubr.f32.vlgmr.msra.gmra.mrb[26].mxu1 %v6090_v20 }
 0xd16   :  { %v4168_v35 = vpop.f32.mrb[26].mxu1 }
 0xd17   :  { %v4169_v29 = vadd.f32 %v4744_v12, %v4168_v35  ;;  %v5154_v32 = vpop.f32.mrb[27].mxu1 }
 0xd19   :  { %6091 = vtanh.f32 %v4169_v29 }
 0xd23   :  { %v6092_v61 = vpop.eup %6091 }
 0xd24   :  { %5188 = vmatmul.mubr.f32.vlgmr.msra.gmra.mrb[26].mxu0 %v6092_v61 }
 0xdf7   :  { %v4262_v38 = vpop.f32.mrb[26].mxu0 }
 0xdf8   :  { %v4263_v63 = vadd.f32 %v4745_v37, %v4262_v38  ;;  %v5189_v31 = vpop.f32.mrb[27].mxu0 }
 0xdfa   :  { %4266 = vst [vmem:[#allocation3] sm:$0x3] %v4263_v63 }
 0xdfb   :  { %6104 = shalt.err (!%p6101_p4)
}
 0xdfc   :  { %s6105_s29 = scalar_lea.hbm %s8615_s15, 32 }
 0xdfd   :  { %p6106_p5 = scmp.ne.s32.totalorder %s8615_s15, %s6105_s29  ;;  %p6109_p6 = scmp.lt.u32.totalorder %s6105_s29, %s8615_s15 }
 0xdff   :  { %p6111_p7 = pnand %p6109_p6, %p6106_p5 }
 0xe01   :  { %6114 = shalt.err (!%p6111_p7)
}
 0xe02   :  { %4276 = dma.vmem_to_hbm [thread:$0]  %s4274_s27, 32, %s8615_s15, [#allocation4]  }
 0xe03   :  { %6115 = dma.done.wait [#allocation4], 32  }
 0xe04   :  { %6116 = vsyncadd [#allocation4], 4294967264 }
 0xe05   :  { %4280 = vsyncpa [#allocation4], 1 }

</bundles_post_ra>
